<compile_context>
chip_gen: v6e
topology: v6e:2x2x1
jax: 0.10.0
libtpu: 0.0.40
codegen_flags: <defaults>
</compile_context>

<pallas_src>
import functools

import jax
import jax.numpy as jnp
from jax.experimental import pallas as pl
from jax.experimental.pallas import tpu as pltpu


# ----------------------------------------------------------------------------
# Fused conv(as matmul over im2col patches) + BatchNorm(batch stats) + LeakyReLU
# ----------------------------------------------------------------------------
def _conv_bn_lrelu_kernel(p_ref, w_ref, g_ref, b_ref, o_ref, acc_ref, *,
                          eps, slope):
    k = pl.program_id(1)

    @pl.when(k == 0)
    def _():
        acc_ref[...] = jnp.zeros_like(acc_ref)

    # bf16 x bf16 -> f32 on the MXU.
    acc_ref[...] += jnp.dot(p_ref[...], w_ref[...],
                            preferred_element_type=jnp.float32)

    @pl.when(k == pl.num_programs(1) - 1)
    def _():
        y = acc_ref[...]                                     # (M, tn) f32
        # The block holds ALL M = N*OH*OW rows of this channel tile, so the
        # BatchNorm2d batch statistics (biased variance) are exact.
        mean = jnp.mean(y, axis=0, keepdims=True)            # (1, tn)
        diff = y - mean
        var = jnp.mean(diff * diff, axis=0, keepdims=True)
        inv = jax.lax.rsqrt(var + eps)                       # EUP slot
        yn = diff * inv * g_ref[...] + b_ref[...]
        o_ref[...] = jnp.where(yn >= 0, yn, slope * yn).astype(o_ref.dtype)


def _pick_tile(dim, candidates):
    for c in candidates:
        if dim % c == 0:
            return c
    return dim  # fall back to the full (untiled) dimension


def conv_bn_lrelu(patches, w2d, gamma, beta, *, eps=1e-5, slope=0.3,
                  out_dtype=jnp.bfloat16):
    """patches: (M, K) bf16, w2d: (K, cout) bf16, gamma/beta: (1, cout) f32."""
    m, kdim = patches.shape
    kdim2, cout = w2d.shape
    assert kdim == kdim2
    tk = _pick_tile(kdim, (512, 256, 128))     # K tiles (reduction axis)
    tn = _pick_tile(cout, (256, 128))          # lane-dense cout tiles
    grid = (cout // tn, kdim // tk)

    kernel = functools.partial(_conv_bn_lrelu_kernel, eps=eps, slope=slope)
    cost = pl.CostEstimate(
        flops=2 * m * kdim * cout,
        transcendentals=cout,
        bytes_accessed=2 * (m * kdim + kdim * cout + m * cout) + 8 * cout,
    )
    return pl.pallas_call(
        kernel,
        out_shape=jax.ShapeDtypeStruct((m, cout), out_dtype),
        grid_spec=pltpu.PrefetchScalarGridSpec(
            num_scalar_prefetch=0,
            grid=grid,
            in_specs=[
                pl.BlockSpec((m, tk), lambda j, k: (0, k)),    # patches
                pl.BlockSpec((tk, tn), lambda j, k: (k, j)),   # conv weight
                pl.BlockSpec((1, tn), lambda j, k: (0, j)),    # BN gamma
                pl.BlockSpec((1, tn), lambda j, k: (0, j)),    # BN beta
            ],
            out_specs=pl.BlockSpec((m, tn), lambda j, k: (0, j)),
            scratch_shapes=[pltpu.VMEM((m, tn), jnp.float32)],
        ),
        compiler_params=pltpu.CompilerParams(
            dimension_semantics=("parallel", "arbitrary"),
        ),
        cost_estimate=cost,
    )(patches, w2d, gamma, beta)


# ----------------------------------------------------------------------------
# Final Linear(features, 1): dot-reduction kernel (avoids degenerate MXU /
# lane-width-1 tiled stores).
# ----------------------------------------------------------------------------
def _linear_kernel(a_ref, w_ref, b_ref, o_ref):
    a = a_ref[...].astype(jnp.float32)           # (N, K)
    w = w_ref[...].astype(jnp.float32)           # (1, K)
    o_ref[...] = jnp.sum(a * w, axis=-1, keepdims=True) + b_ref[...]


def linear_1out(act, w_row, bias):
    n, _ = act.shape
    return pl.pallas_call(
        _linear_kernel,
        out_shape=jax.ShapeDtypeStruct((n, 1), jnp.float32),
    )(act, w_row, bias)


# ----------------------------------------------------------------------------
# JAX glue
# ----------------------------------------------------------------------------
def _extract_patches(x_nhwc):
    """im2col for a k=4, s=2, p=1 conv.  Rows ordered (n, oh, ow); columns
    ordered (kh, kw, cin) to match the (kh, kw, cin, cout) weight reshape."""
    n, h, w, c = x_nhwc.shape
    oh, ow = h // 2, w // 2
    xp = jnp.pad(x_nhwc, ((0, 0), (1, 1), (1, 1), (0, 0)))
    # TODO(synk): generate these patch tiles inside the Pallas kernel
    # (in-kernel strided loads / manual halo DMA, or allow_input_fusion) so
    # the expanded patch tensor never round-trips through HBM.
    taps = [xp[:, kh:kh + 2 * oh:2, kw:kw + 2 * ow:2, :]
            for kh in range(4) for kw in range(4)]
    patches = jnp.concatenate(taps, axis=-1)                 # (N, OH, OW, 16*C)
    return patches.reshape(n * oh * ow, 16 * c), (n, oh, ow)


def discriminator_forward(x_nchw, params):
    """Pallas forward of Discriminator(in_size).  x: (N, C, H, W) float32."""
    x = jnp.transpose(x_nchw, (0, 2, 3, 1)).astype(jnp.bfloat16)   # NHWC bf16

    for w_oihw, gamma, beta in params["convs"]:
        cout = w_oihw.shape[0]
        patches, (nb, oh, ow) = _extract_patches(x)
        # PyTorch OIHW -> (kh, kw, cin, cout) -> (kh*kw*cin, cout)
        w2d = jnp.transpose(w_oihw, (2, 3, 1, 0)).reshape(-1, cout)
        y = conv_bn_lrelu(patches, w2d.astype(jnp.bfloat16), gamma, beta)
        x = y.reshape(nb, oh, ow, cout)

    nb, hh, ww, cc = x.shape
    act = x.reshape(nb, hh * ww * cc)                        # NHWC flatten
    lin_w, lin_b = params["lin"]                             # (1, C*H'*W'), (1, 1)
    # Permute the (small, static) Linear weight rows from NCHW flatten order
    # (what t.view(N, -1) implies) to our NHWC flatten order, instead of
    # transposing the activation tensor through HBM.
    w_row = jnp.transpose(lin_w.reshape(cc, hh, ww), (1, 2, 0)).reshape(1, -1)
    return linear_1out(act, w_row.astype(jnp.bfloat16), lin_b)   # (N, 1)


# ----------------------------------------------------------------------------
if __name__ == "__main__":
    key = jax.random.PRNGKey(0)
    n, c, h, w = 2, 4, 16, 16                 # in_size = (4, 16, 16)
    assert h % 16 == 0 and w % 16 == 0        # required by Linear(h*w*4, 1)

    channels = [c, 128, 256, 512, 1024]
    keys = iter(jax.random.split(key, 8))
    convs = []
    for cin, cout in zip(channels[:-1], channels[1:]):
        wk = jax.random.normal(next(keys), (cout, cin, 4, 4), jnp.float32) * 0.05
        convs.append((wk,
                      jnp.ones((1, cout), jnp.float32),      # BN gamma init
                      jnp.zeros((1, cout), jnp.float32)))    # BN beta init
    lin_w = jax.random.normal(next(keys), (1, h * w * 4), jnp.float32) * 0.02
    lin_b = jnp.zeros((1, 1), jnp.float32)
    x = jax.random.normal(next(keys), (n, c, h, w), jnp.float32)

    params = {"convs": convs, "lin": (lin_w, lin_b)}
    y = jax.jit(discriminator_forward)(x, params)
    jax.block_until_ready(y)
    assert y.shape == (n, 1)
    assert bool(jnp.isfinite(y).all())
    print("KERNEL_OK")
</pallas_src>

<mosaic_0001>
module attributes {stable_mosaic.version = 11 : i64} {
  func.func @_conv_bn_lrelu_kernel(%arg0: i32, %arg1: i32, %arg2: memref<128x64xbf16, #tpu.memory_space<vmem>>, %arg3: memref<64x128xbf16, #tpu.memory_space<vmem>>, %arg4: memref<1x128xf32, #tpu.memory_space<vmem>>, %arg5: memref<1x128xf32, #tpu.memory_space<vmem>>, %arg6: memref<128x128xbf16, #tpu.memory_space<vmem>>, %arg7: memref<128x128xf32, #tpu.memory_space<vmem>>) attributes {dimension_semantics = [#tpu.dimension_semantics<parallel>, #tpu.dimension_semantics<arbitrary>], iteration_bounds = array<i64: 1, 1>, scalar_prefetch = 0 : i64, scratch_operands = 1 : i64, tpu.core_type = #tpu.core_type<tc>, window_params = [{transform_indices = @transform_0, window_bounds = array<i64: 128, 64>}, {transform_indices = @transform_1, window_bounds = array<i64: 64, 128>}, {transform_indices = @transform_2, window_bounds = array<i64: 1, 128>}, {transform_indices = @transform_3, window_bounds = array<i64: 1, 128>}, {transform_indices = @transform_4, window_bounds = array<i64: 128, 128>}]} {
    %c0_i32 = arith.constant 0 : i32
    %0 = arith.cmpi eq, %arg1, %c0_i32 : i32
    %1 = arith.extui %0 : i1 to i32
    %c0_i32_0 = arith.constant 0 : i32
    %2 = arith.cmpi ne, %1, %c0_i32_0 : i32
    scf.if %2 {
      %cst_10 = arith.constant 0.000000e+00 : f32
      %12 = vector.broadcast %cst_10 : f32 to vector<128x128xf32>
      %c0_11 = arith.constant 0 : index
      %c0_12 = arith.constant 0 : index
      %13 = vector.load %arg7[%c0_11, %c0_12] : memref<128x128xf32, #tpu.memory_space<vmem>>, vector<128x128xf32>
      tpu.vector_store %arg7[%c0_11, %c0_12], %12 {strides = array<i32>} : memref<128x128xf32, #tpu.memory_space<vmem>>, vector<128x128xf32>,
    } else {
    }
    %c0 = arith.constant 0 : index
    %c0_1 = arith.constant 0 : index
    %3 = vector.load %arg7[%c0, %c0_1] : memref<128x128xf32, #tpu.memory_space<vmem>>, vector<128x128xf32>
    %c0_2 = arith.constant 0 : index
    %c0_3 = arith.constant 0 : index
    %4 = vector.load %arg2[%c0_2, %c0_3] : memref<128x64xbf16, #tpu.memory_space<vmem>>, vector<128x64xbf16>
    %c0_4 = arith.constant 0 : index
    %c0_5 = arith.constant 0 : index
    %5 = vector.load %arg3[%c0_4, %c0_5] : memref<64x128xbf16, #tpu.memory_space<vmem>>, vector<64x128xbf16>
    %cst = arith.constant dense<0.000000e+00> : vector<128x128xf32>
    %6 = tpu.matmul %4, %5, %cst {dimension_numbers = #tpu.dot_dimension_numbers<[1], [0], [0], [1], [0, 0, 1, 1], [], []>} : vector<128x64xbf16>, vector<64x128xbf16>, vector<128x128xf32> -> vector<128x128xf32>
    %7 = arith.addf %3, %6 : vector<128x128xf32>
    %c0_6 = arith.constant 0 : index
    %c0_7 = arith.constant 0 : index
    %8 = vector.load %arg7[%c0_6, %c0_7] : memref<128x128xf32, #tpu.memory_space<vmem>>, vector<128x128xf32>
    tpu.vector_store %arg7[%c0_6, %c0_7], %7 {strides = array<i32>} : memref<128x128xf32, #tpu.memory_space<vmem>>, vector<128x128xf32>,
    %c0_i32_8 = arith.constant 0 : i32
    %9 = arith.cmpi eq, %arg1, %c0_i32_8 : i32
    %10 = arith.extui %9 : i1 to i32
    %c0_i32_9 = arith.constant 0 : i32
    %11 = arith.cmpi ne, %10, %c0_i32_9 : i32
    scf.if %11 {
      %c0_10 = arith.constant 0 : index
      %c0_11 = arith.constant 0 : index
      %12 = vector.load %arg7[%c0_10, %c0_11] : memref<128x128xf32, #tpu.memory_space<vmem>>, vector<128x128xf32>
      %cst_12 = arith.constant dense<0.000000e+00> : vector<128xf32>
      %13 = vector.multi_reduction <add>, %12, %cst_12 [0] : vector<128x128xf32> to vector<128xf32>
      %14 = vector.shape_cast %13 : vector<128xf32> to vector<1x128xf32>
      %cst_13 = arith.constant 1.280000e+02 : f32
      %15 = vector.broadcast %cst_13 : f32 to vector<1x128xf32>
      %16 = arith.divf %14, %15 : vector<1x128xf32>
      %17 = vector.broadcast %16 : vector<1x128xf32> to vector<128x128xf32>
      %18 = arith.subf %12, %17 : vector<128x128xf32>
      %19 = arith.mulf %18, %18 : vector<128x128xf32>
      %cst_14 = arith.constant dense<0.000000e+00> : vector<128xf32>
      %20 = vector.multi_reduction <add>, %19, %cst_14 [0] : vector<128x128xf32> to vector<128xf32>
      %21 = vector.shape_cast %20 : vector<128xf32> to vector<1x128xf32>
      %cst_15 = arith.constant 1.280000e+02 : f32
      %22 = vector.broadcast %cst_15 : f32 to vector<1x128xf32>
      %23 = arith.divf %21, %22 : vector<1x128xf32>
      %cst_16 = arith.constant 9.99999974E-6 : f32
      %24 = vector.broadcast %cst_16 : f32 to vector<1x128xf32>
      %25 = arith.addf %23, %24 : vector<1x128xf32>
      %26 = math.rsqrt %25 : vector<1x128xf32>
      %27 = vector.broadcast %26 : vector<1x128xf32> to vector<128x128xf32>
      %28 = arith.mulf %18, %27 : vector<128x128xf32>
      %c0_17 = arith.constant 0 : index
      %c0_18 = arith.constant 0 : index
      %29 = vector.load %arg4[%c0_17, %c0_18] : memref<1x128xf32, #tpu.memory_space<vmem>>, vector<1x128xf32>
      %30 = vector.broadcast %29 : vector<1x128xf32> to vector<128x128xf32>
      %31 = arith.mulf %28, %30 : vector<128x128xf32>
      %c0_19 = arith.constant 0 : index
      %c0_20 = arith.constant 0 : index
      %32 = vector.load %arg5[%c0_19, %c0_20] : memref<1x128xf32, #tpu.memory_space<vmem>>, vector<1x128xf32>
      %33 = vector.broadcast %32 : vector<1x128xf32> to vector<128x128xf32>
      %34 = arith.addf %31, %33 : vector<128x128xf32>
      %cst_21 = arith.constant 0.000000e+00 : f32
      %35 = vector.broadcast %cst_21 : f32 to vector<128x128xf32>
      %36 = arith.cmpf oge, %34, %35 : vector<128x128xf32>
      %cst_22 = arith.constant 3.000000e-01 : f32
      %37 = vector.broadcast %cst_22 : f32 to vector<128x128xf32>
      %38 = arith.mulf %37, %34 : vector<128x128xf32>
      %39 = arith.select %36, %34, %38 : vector<128x128xi1>, vector<128x128xf32>
      %40 = arith.truncf %39 : vector<128x128xf32> to vector<128x128xbf16>
      %c0_23 = arith.constant 0 : index
      %c0_24 = arith.constant 0 : index
      %41 = vector.load %arg6[%c0_23, %c0_24] : memref<128x128xbf16, #tpu.memory_space<vmem>>, vector<128x128xbf16>
      tpu.vector_store %arg6[%c0_23, %c0_24], %40 {strides = array<i32>} : memref<128x128xbf16, #tpu.memory_space<vmem>>, vector<128x128xbf16>,
    } else {
    }
    return
  }
  func.func @transform_0(%arg0: i32, %arg1: i32) -> (i32, i32) {
    %c0_i32 = arith.constant 0 : i32
    %c0_i32_0 = arith.constant 0 : i32
    return %c0_i32, %arg1 : i32, i32
  }
  func.func @transform_1(%arg0: i32, %arg1: i32) -> (i32, i32) {
    %c0_i32 = arith.constant 0 : i32
    return %arg1, %arg0 : i32, i32
  }
  func.func @transform_2(%arg0: i32, %arg1: i32) -> (i32, i32) {
    %c0_i32 = arith.constant 0 : i32
    %c0_i32_0 = arith.constant 0 : i32
    return %c0_i32, %arg0 : i32, i32
  }
  func.func @transform_3(%arg0: i32, %arg1: i32) -> (i32, i32) {
    %c0_i32 = arith.constant 0 : i32
    %c0_i32_0 = arith.constant 0 : i32
    return %c0_i32, %arg0 : i32, i32
  }
  func.func @transform_4(%arg0: i32, %arg1: i32) -> (i32, i32) {
    %c0_i32 = arith.constant 0 : i32
    %c0_i32_0 = arith.constant 0 : i32
    return %c0_i32, %arg0 : i32, i32
  }
}

module attributes {stable_mosaic.version = 11 : i64} {
  func.func @_conv_bn_lrelu_kernel(%arg0: i32, %arg1: i32, %arg2: memref<32x512xbf16, #tpu.memory_space<vmem>>, %arg3: memref<512x256xbf16, #tpu.memory_space<vmem>>, %arg4: memref<1x256xf32, #tpu.memory_space<vmem>>, %arg5: memref<1x256xf32, #tpu.memory_space<vmem>>, %arg6: memref<32x256xbf16, #tpu.memory_space<vmem>>, %arg7: memref<32x256xf32, #tpu.memory_space<vmem>>) attributes {dimension_semantics = [#tpu.dimension_semantics<parallel>, #tpu.dimension_semantics<arbitrary>], iteration_bounds = array<i64: 1, 4>, scalar_prefetch = 0 : i64, scratch_operands = 1 : i64, tpu.core_type = #tpu.core_type<tc>, window_params = [{transform_indices = @transform_0, window_bounds = array<i64: 32, 512>}, {transform_indices = @transform_1, window_bounds = array<i64: 512, 256>}, {transform_indices = @transform_2, window_bounds = array<i64: 1, 256>}, {transform_indices = @transform_3, window_bounds = array<i64: 1, 256>}, {transform_indices = @transform_4, window_bounds = array<i64: 32, 256>}]} {
    %c0_i32 = arith.constant 0 : i32
    %0 = arith.cmpi eq, %arg1, %c0_i32 : i32
    %1 = arith.extui %0 : i1 to i32
    %c0_i32_0 = arith.constant 0 : i32
    %2 = arith.cmpi ne, %1, %c0_i32_0 : i32
    scf.if %2 {
      %cst_9 = arith.constant 0.000000e+00 : f32
      %12 = vector.broadcast %cst_9 : f32 to vector<32x256xf32>
      %c0_10 = arith.constant 0 : index
      %c0_11 = arith.constant 0 : index
      %13 = vector.load %arg7[%c0_10, %c0_11] : memref<32x256xf32, #tpu.memory_space<vmem>>, vector<32x256xf32>
      tpu.vector_store %arg7[%c0_10, %c0_11], %12 {strides = array<i32>} : memref<32x256xf32, #tpu.memory_space<vmem>>, vector<32x256xf32>,
    } else {
    }
    %c0 = arith.constant 0 : index
    %c0_1 = arith.constant 0 : index
    %3 = vector.load %arg7[%c0, %c0_1] : memref<32x256xf32, #tpu.memory_space<vmem>>, vector<32x256xf32>
    %c0_2 = arith.constant 0 : index
    %c0_3 = arith.constant 0 : index
    %4 = vector.load %arg2[%c0_2, %c0_3] : memref<32x512xbf16, #tpu.memory_space<vmem>>, vector<32x512xbf16>
    %c0_4 = arith.constant 0 : index
    %c0_5 = arith.constant 0 : index
    %5 = vector.load %arg3[%c0_4, %c0_5] : memref<512x256xbf16, #tpu.memory_space<vmem>>, vector<512x256xbf16>
    %cst = arith.constant dense<0.000000e+00> : vector<32x256xf32>
    %6 = tpu.matmul %4, %5, %cst {dimension_numbers = #tpu.dot_dimension_numbers<[1], [0], [0], [1], [0, 0, 1, 1], [], []>} : vector<32x512xbf16>, vector<512x256xbf16>, vector<32x256xf32> -> vector<32x256xf32>
    %7 = arith.addf %3, %6 : vector<32x256xf32>
    %c0_6 = arith.constant 0 : index
    %c0_7 = arith.constant 0 : index
    %8 = vector.load %arg7[%c0_6, %c0_7] : memref<32x256xf32, #tpu.memory_space<vmem>>, vector<32x256xf32>
    tpu.vector_store %arg7[%c0_6, %c0_7], %7 {strides = array<i32>} : memref<32x256xf32, #tpu.memory_space<vmem>>, vector<32x256xf32>,
    %c3_i32 = arith.constant 3 : i32
    %9 = arith.cmpi eq, %arg1, %c3_i32 : i32
    %10 = arith.extui %9 : i1 to i32
    %c0_i32_8 = arith.constant 0 : i32
    %11 = arith.cmpi ne, %10, %c0_i32_8 : i32
    scf.if %11 {
      %c0_9 = arith.constant 0 : index
      %c0_10 = arith.constant 0 : index
      %12 = vector.load %arg7[%c0_9, %c0_10] : memref<32x256xf32, #tpu.memory_space<vmem>>, vector<32x256xf32>
      %cst_11 = arith.constant dense<0.000000e+00> : vector<256xf32>
      %13 = vector.multi_reduction <add>, %12, %cst_11 [0] : vector<32x256xf32> to vector<256xf32>
      %14 = vector.shape_cast %13 : vector<256xf32> to vector<1x256xf32>
      %cst_12 = arith.constant 3.200000e+01 : f32
      %15 = vector.broadcast %cst_12 : f32 to vector<1x256xf32>
      %16 = arith.divf %14, %15 : vector<1x256xf32>
      %17 = vector.broadcast %16 : vector<1x256xf32> to vector<32x256xf32>
      %18 = arith.subf %12, %17 : vector<32x256xf32>
      %19 = arith.mulf %18, %18 : vector<32x256xf32>
      %cst_13 = arith.constant dense<0.000000e+00> : vector<256xf32>
      %20 = vector.multi_reduction <add>, %19, %cst_13 [0] : vector<32x256xf32> to vector<256xf32>
      %21 = vector.shape_cast %20 : vector<256xf32> to vector<1x256xf32>
      %cst_14 = arith.constant 3.200000e+01 : f32
      %22 = vector.broadcast %cst_14 : f32 to vector<1x256xf32>
      %23 = arith.divf %21, %22 : vector<1x256xf32>
      %cst_15 = arith.constant 9.99999974E-6 : f32
      %24 = vector.broadcast %cst_15 : f32 to vector<1x256xf32>
      %25 = arith.addf %23, %24 : vector<1x256xf32>
      %26 = math.rsqrt %25 : vector<1x256xf32>
      %27 = vector.broadcast %26 : vector<1x256xf32> to vector<32x256xf32>
      %28 = arith.mulf %18, %27 : vector<32x256xf32>
      %c0_16 = arith.constant 0 : index
      %c0_17 = arith.constant 0 : index
      %29 = vector.load %arg4[%c0_16, %c0_17] : memref<1x256xf32, #tpu.memory_space<vmem>>, vector<1x256xf32>
      %30 = vector.broadcast %29 : vector<1x256xf32> to vector<32x256xf32>
      %31 = arith.mulf %28, %30 : vector<32x256xf32>
      %c0_18 = arith.constant 0 : index
      %c0_19 = arith.constant 0 : index
      %32 = vector.load %arg5[%c0_18, %c0_19] : memref<1x256xf32, #tpu.memory_space<vmem>>, vector<1x256xf32>
      %33 = vector.broadcast %32 : vector<1x256xf32> to vector<32x256xf32>
      %34 = arith.addf %31, %33 : vector<32x256xf32>
      %cst_20 = arith.constant 0.000000e+00 : f32
      %35 = vector.broadcast %cst_20 : f32 to vector<32x256xf32>
      %36 = arith.cmpf oge, %34, %35 : vector<32x256xf32>
      %cst_21 = arith.constant 3.000000e-01 : f32
      %37 = vector.broadcast %cst_21 : f32 to vector<32x256xf32>
      %38 = arith.mulf %37, %34 : vector<32x256xf32>
      %39 = arith.select %36, %34, %38 : vector<32x256xi1>, vector<32x256xf32>
      %40 = arith.truncf %39 : vector<32x256xf32> to vector<32x256xbf16>
      %c0_22 = arith.constant 0 : index
      %c0_23 = arith.constant 0 : index
      %41 = vector.load %arg6[%c0_22, %c0_23] : memref<32x256xbf16, #tpu.memory_space<vmem>>, vector<32x256xbf16>
      tpu.vector_store %arg6[%c0_22, %c0_23], %40 {strides = array<i32>} : memref<32x256xbf16, #tpu.memory_space<vmem>>, vector<32x256xbf16>,
    } else {
    }
    return
  }
  func.func @transform_0(%arg0: i32, %arg1: i32) -> (i32, i32) {
    %c0_i32 = arith.constant 0 : i32
    %c0_i32_0 = arith.constant 0 : i32
    return %c0_i32, %arg1 : i32, i32
  }
  func.func @transform_1(%arg0: i32, %arg1: i32) -> (i32, i32) {
    %c0_i32 = arith.constant 0 : i32
    return %arg1, %arg0 : i32, i32
  }
  func.func @transform_2(%arg0: i32, %arg1: i32) -> (i32, i32) {
    %c0_i32 = arith.constant 0 : i32
    %c0_i32_0 = arith.constant 0 : i32
    return %c0_i32, %arg0 : i32, i32
  }
  func.func @transform_3(%arg0: i32, %arg1: i32) -> (i32, i32) {
    %c0_i32 = arith.constant 0 : i32
    %c0_i32_0 = arith.constant 0 : i32
    return %c0_i32, %arg0 : i32, i32
  }
  func.func @transform_4(%arg0: i32, %arg1: i32) -> (i32, i32) {
    %c0_i32 = arith.constant 0 : i32
    %c0_i32_0 = arith.constant 0 : i32
    return %c0_i32, %arg0 : i32, i32
  }
}

module attributes {stable_mosaic.version = 11 : i64} {
  func.func @_conv_bn_lrelu_kernel(%arg0: i32, %arg1: i32, %arg2: memref<8x512xbf16, #tpu.memory_space<vmem>>, %arg3: memref<512x256xbf16, #tpu.memory_space<vmem>>, %arg4: memref<1x256xf32, #tpu.memory_space<vmem>>, %arg5: memref<1x256xf32, #tpu.memory_space<vmem>>, %arg6: memref<8x256xbf16, #tpu.memory_space<vmem>>, %arg7: memref<8x256xf32, #tpu.memory_space<vmem>>) attributes {dimension_semantics = [#tpu.dimension_semantics<parallel>, #tpu.dimension_semantics<arbitrary>], iteration_bounds = array<i64: 2, 8>, scalar_prefetch = 0 : i64, scratch_operands = 1 : i64, tpu.core_type = #tpu.core_type<tc>, window_params = [{transform_indices = @transform_0, window_bounds = array<i64: 8, 512>}, {transform_indices = @transform_1, window_bounds = array<i64: 512, 256>}, {transform_indices = @transform_2, window_bounds = array<i64: 1, 256>}, {transform_indices = @transform_3, window_bounds = array<i64: 1, 256>}, {transform_indices = @transform_4, window_bounds = array<i64: 8, 256>}]} {
    %c0_i32 = arith.constant 0 : i32
    %0 = arith.cmpi eq, %arg1, %c0_i32 : i32
    %1 = arith.extui %0 : i1 to i32
    %c0_i32_0 = arith.constant 0 : i32
    %2 = arith.cmpi ne, %1, %c0_i32_0 : i32
    scf.if %2 {
      %cst_9 = arith.constant 0.000000e+00 : f32
      %12 = vector.broadcast %cst_9 : f32 to vector<8x256xf32>
      %c0_10 = arith.constant 0 : index
      %c0_11 = arith.constant 0 : index
      %13 = vector.load %arg7[%c0_10, %c0_11] : memref<8x256xf32, #tpu.memory_space<vmem>>, vector<8x256xf32>
      tpu.vector_store %arg7[%c0_10, %c0_11], %12 {strides = array<i32>} : memref<8x256xf32, #tpu.memory_space<vmem>>, vector<8x256xf32>,
    } else {
    }
    %c0 = arith.constant 0 : index
    %c0_1 = arith.constant 0 : index
    %3 = vector.load %arg7[%c0, %c0_1] : memref<8x256xf32, #tpu.memory_space<vmem>>, vector<8x256xf32>
    %c0_2 = arith.constant 0 : index
    %c0_3 = arith.constant 0 : index
    %4 = vector.load %arg2[%c0_2, %c0_3] : memref<8x512xbf16, #tpu.memory_space<vmem>>, vector<8x512xbf16>
    %c0_4 = arith.constant 0 : index
    %c0_5 = arith.constant 0 : index
    %5 = vector.load %arg3[%c0_4, %c0_5] : memref<512x256xbf16, #tpu.memory_space<vmem>>, vector<512x256xbf16>
    %cst = arith.constant dense<0.000000e+00> : vector<8x256xf32>
    %6 = tpu.matmul %4, %5, %cst {dimension_numbers = #tpu.dot_dimension_numbers<[1], [0], [0], [1], [0, 0, 1, 1], [], []>} : vector<8x512xbf16>, vector<512x256xbf16>, vector<8x256xf32> -> vector<8x256xf32>
    %7 = arith.addf %3, %6 : vector<8x256xf32>
    %c0_6 = arith.constant 0 : index
    %c0_7 = arith.constant 0 : index
    %8 = vector.load %arg7[%c0_6, %c0_7] : memref<8x256xf32, #tpu.memory_space<vmem>>, vector<8x256xf32>
    tpu.vector_store %arg7[%c0_6, %c0_7], %7 {strides = array<i32>} : memref<8x256xf32, #tpu.memory_space<vmem>>, vector<8x256xf32>,
    %c7_i32 = arith.constant 7 : i32
    %9 = arith.cmpi eq, %arg1, %c7_i32 : i32
    %10 = arith.extui %9 : i1 to i32
    %c0_i32_8 = arith.constant 0 : i32
    %11 = arith.cmpi ne, %10, %c0_i32_8 : i32
    scf.if %11 {
      %c0_9 = arith.constant 0 : index
      %c0_10 = arith.constant 0 : index
      %12 = vector.load %arg7[%c0_9, %c0_10] : memref<8x256xf32, #tpu.memory_space<vmem>>, vector<8x256xf32>
      %cst_11 = arith.constant dense<0.000000e+00> : vector<256xf32>
      %13 = vector.multi_reduction <add>, %12, %cst_11 [0] : vector<8x256xf32> to vector<256xf32>
      %14 = vector.shape_cast %13 : vector<256xf32> to vector<1x256xf32>
      %cst_12 = arith.constant 8.000000e+00 : f32
      %15 = vector.broadcast %cst_12 : f32 to vector<1x256xf32>
      %16 = arith.divf %14, %15 : vector<1x256xf32>
      %17 = vector.broadcast %16 : vector<1x256xf32> to vector<8x256xf32>
      %18 = arith.subf %12, %17 : vector<8x256xf32>
      %19 = arith.mulf %18, %18 : vector<8x256xf32>
      %cst_13 = arith.constant dense<0.000000e+00> : vector<256xf32>
      %20 = vector.multi_reduction <add>, %19, %cst_13 [0] : vector<8x256xf32> to vector<256xf32>
      %21 = vector.shape_cast %20 : vector<256xf32> to vector<1x256xf32>
      %cst_14 = arith.constant 8.000000e+00 : f32
      %22 = vector.broadcast %cst_14 : f32 to vector<1x256xf32>
      %23 = arith.divf %21, %22 : vector<1x256xf32>
      %cst_15 = arith.constant 9.99999974E-6 : f32
      %24 = vector.broadcast %cst_15 : f32 to vector<1x256xf32>
      %25 = arith.addf %23, %24 : vector<1x256xf32>
      %26 = math.rsqrt %25 : vector<1x256xf32>
      %27 = vector.broadcast %26 : vector<1x256xf32> to vector<8x256xf32>
      %28 = arith.mulf %18, %27 : vector<8x256xf32>
      %c0_16 = arith.constant 0 : index
      %c0_17 = arith.constant 0 : index
      %29 = vector.load %arg4[%c0_16, %c0_17] : memref<1x256xf32, #tpu.memory_space<vmem>>, vector<1x256xf32>
      %30 = vector.broadcast %29 : vector<1x256xf32> to vector<8x256xf32>
      %31 = arith.mulf %28, %30 : vector<8x256xf32>
      %c0_18 = arith.constant 0 : index
      %c0_19 = arith.constant 0 : index
      %32 = vector.load %arg5[%c0_18, %c0_19] : memref<1x256xf32, #tpu.memory_space<vmem>>, vector<1x256xf32>
      %33 = vector.broadcast %32 : vector<1x256xf32> to vector<8x256xf32>
      %34 = arith.addf %31, %33 : vector<8x256xf32>
      %cst_20 = arith.constant 0.000000e+00 : f32
      %35 = vector.broadcast %cst_20 : f32 to vector<8x256xf32>
      %36 = arith.cmpf oge, %34, %35 : vector<8x256xf32>
      %cst_21 = arith.constant 3.000000e-01 : f32
      %37 = vector.broadcast %cst_21 : f32 to vector<8x256xf32>
      %38 = arith.mulf %37, %34 : vector<8x256xf32>
      %39 = arith.select %36, %34, %38 : vector<8x256xi1>, vector<8x256xf32>
      %40 = arith.truncf %39 : vector<8x256xf32> to vector<8x256xbf16>
      %c0_22 = arith.constant 0 : index
      %c0_23 = arith.constant 0 : index
      %41 = vector.load %arg6[%c0_22, %c0_23] : memref<8x256xbf16, #tpu.memory_space<vmem>>, vector<8x256xbf16>
      tpu.vector_store %arg6[%c0_22, %c0_23], %40 {strides = array<i32>} : memref<8x256xbf16, #tpu.memory_space<vmem>>, vector<8x256xbf16>,
    } else {
    }
    return
  }
  func.func @transform_0(%arg0: i32, %arg1: i32) -> (i32, i32) {
    %c0_i32 = arith.constant 0 : i32
    %c0_i32_0 = arith.constant 0 : i32
    return %c0_i32, %arg1 : i32, i32
  }
  func.func @transform_1(%arg0: i32, %arg1: i32) -> (i32, i32) {
    %c0_i32 = arith.constant 0 : i32
    return %arg1, %arg0 : i32, i32
  }
  func.func @transform_2(%arg0: i32, %arg1: i32) -> (i32, i32) {
    %c0_i32 = arith.constant 0 : i32
    %c0_i32_0 = arith.constant 0 : i32
    return %c0_i32, %arg0 : i32, i32
  }
  func.func @transform_3(%arg0: i32, %arg1: i32) -> (i32, i32) {
    %c0_i32 = arith.constant 0 : i32
    %c0_i32_0 = arith.constant 0 : i32
    return %c0_i32, %arg0 : i32, i32
  }
  func.func @transform_4(%arg0: i32, %arg1: i32) -> (i32, i32) {
    %c0_i32 = arith.constant 0 : i32
    %c0_i32_0 = arith.constant 0 : i32
    return %c0_i32, %arg0 : i32, i32
  }
}

module attributes {stable_mosaic.version = 11 : i64} {
  func.func @_conv_bn_lrelu_kernel(%arg0: i32, %arg1: i32, %arg2: memref<2x512xbf16, #tpu.memory_space<vmem>>, %arg3: memref<512x256xbf16, #tpu.memory_space<vmem>>, %arg4: memref<1x256xf32, #tpu.memory_space<vmem>>, %arg5: memref<1x256xf32, #tpu.memory_space<vmem>>, %arg6: memref<2x256xbf16, #tpu.memory_space<vmem>>, %arg7: memref<2x256xf32, #tpu.memory_space<vmem>>) attributes {dimension_semantics = [#tpu.dimension_semantics<parallel>, #tpu.dimension_semantics<arbitrary>], iteration_bounds = array<i64: 4, 16>, scalar_prefetch = 0 : i64, scratch_operands = 1 : i64, tpu.core_type = #tpu.core_type<tc>, window_params = [{transform_indices = @transform_0, window_bounds = array<i64: 2, 512>}, {transform_indices = @transform_1, window_bounds = array<i64: 512, 256>}, {transform_indices = @transform_2, window_bounds = array<i64: 1, 256>}, {transform_indices = @transform_3, window_bounds = array<i64: 1, 256>}, {transform_indices = @transform_4, window_bounds = array<i64: 2, 256>}]} {
    %c0_i32 = arith.constant 0 : i32
    %0 = arith.cmpi eq, %arg1, %c0_i32 : i32
    %1 = arith.extui %0 : i1 to i32
    %c0_i32_0 = arith.constant 0 : i32
    %2 = arith.cmpi ne, %1, %c0_i32_0 : i32
    scf.if %2 {
      %cst_9 = arith.constant 0.000000e+00 : f32
      %12 = vector.broadcast %cst_9 : f32 to vector<2x256xf32>
      %c0_10 = arith.constant 0 : index
      %c0_11 = arith.constant 0 : index
      %13 = vector.load %arg7[%c0_10, %c0_11] : memref<2x256xf32, #tpu.memory_space<vmem>>, vector<2x256xf32>
      tpu.vector_store %arg7[%c0_10, %c0_11], %12 {strides = array<i32>} : memref<2x256xf32, #tpu.memory_space<vmem>>, vector<2x256xf32>,
    } else {
    }
    %c0 = arith.constant 0 : index
    %c0_1 = arith.constant 0 : index
    %3 = vector.load %arg7[%c0, %c0_1] : memref<2x256xf32, #tpu.memory_space<vmem>>, vector<2x256xf32>
    %c0_2 = arith.constant 0 : index
    %c0_3 = arith.constant 0 : index
    %4 = vector.load %arg2[%c0_2, %c0_3] : memref<2x512xbf16, #tpu.memory_space<vmem>>, vector<2x512xbf16>
    %c0_4 = arith.constant 0 : index
    %c0_5 = arith.constant 0 : index
    %5 = vector.load %arg3[%c0_4, %c0_5] : memref<512x256xbf16, #tpu.memory_space<vmem>>, vector<512x256xbf16>
    %cst = arith.constant dense<0.000000e+00> : vector<2x256xf32>
    %6 = tpu.matmul %4, %5, %cst {dimension_numbers = #tpu.dot_dimension_numbers<[1], [0], [0], [1], [0, 0, 1, 1], [], []>} : vector<2x512xbf16>, vector<512x256xbf16>, vector<2x256xf32> -> vector<2x256xf32>
    %7 = arith.addf %3, %6 : vector<2x256xf32>
    %c0_6 = arith.constant 0 : index
    %c0_7 = arith.constant 0 : index
    %8 = vector.load %arg7[%c0_6, %c0_7] : memref<2x256xf32, #tpu.memory_space<vmem>>, vector<2x256xf32>
    tpu.vector_store %arg7[%c0_6, %c0_7], %7 {strides = array<i32>} : memref<2x256xf32, #tpu.memory_space<vmem>>, vector<2x256xf32>,
    %c15_i32 = arith.constant 15 : i32
    %9 = arith.cmpi eq, %arg1, %c15_i32 : i32
    %10 = arith.extui %9 : i1 to i32
    %c0_i32_8 = arith.constant 0 : i32
    %11 = arith.cmpi ne, %10, %c0_i32_8 : i32
    scf.if %11 {
      %c0_9 = arith.constant 0 : index
      %c0_10 = arith.constant 0 : index
      %12 = vector.load %arg7[%c0_9, %c0_10] : memref<2x256xf32, #tpu.memory_space<vmem>>, vector<2x256xf32>
      %cst_11 = arith.constant dense<0.000000e+00> : vector<256xf32>
      %13 = vector.multi_reduction <add>, %12, %cst_11 [0] : vector<2x256xf32> to vector<256xf32>
      %14 = vector.shape_cast %13 : vector<256xf32> to vector<1x256xf32>
      %cst_12 = arith.constant 2.000000e+00 : f32
      %15 = vector.broadcast %cst_12 : f32 to vector<1x256xf32>
      %16 = arith.divf %14, %15 : vector<1x256xf32>
      %17 = vector.broadcast %16 : vector<1x256xf32> to vector<2x256xf32>
      %18 = arith.subf %12, %17 : vector<2x256xf32>
      %19 = arith.mulf %18, %18 : vector<2x256xf32>
      %cst_13 = arith.constant dense<0.000000e+00> : vector<256xf32>
      %20 = vector.multi_reduction <add>, %19, %cst_13 [0] : vector<2x256xf32> to vector<256xf32>
      %21 = vector.shape_cast %20 : vector<256xf32> to vector<1x256xf32>
      %cst_14 = arith.constant 2.000000e+00 : f32
      %22 = vector.broadcast %cst_14 : f32 to vector<1x256xf32>
      %23 = arith.divf %21, %22 : vector<1x256xf32>
      %cst_15 = arith.constant 9.99999974E-6 : f32
      %24 = vector.broadcast %cst_15 : f32 to vector<1x256xf32>
      %25 = arith.addf %23, %24 : vector<1x256xf32>
      %26 = math.rsqrt %25 : vector<1x256xf32>
      %27 = vector.broadcast %26 : vector<1x256xf32> to vector<2x256xf32>
      %28 = arith.mulf %18, %27 : vector<2x256xf32>
      %c0_16 = arith.constant 0 : index
      %c0_17 = arith.constant 0 : index
      %29 = vector.load %arg4[%c0_16, %c0_17] : memref<1x256xf32, #tpu.memory_space<vmem>>, vector<1x256xf32>
      %30 = vector.broadcast %29 : vector<1x256xf32> to vector<2x256xf32>
      %31 = arith.mulf %28, %30 : vector<2x256xf32>
      %c0_18 = arith.constant 0 : index
      %c0_19 = arith.constant 0 : index
      %32 = vector.load %arg5[%c0_18, %c0_19] : memref<1x256xf32, #tpu.memory_space<vmem>>, vector<1x256xf32>
      %33 = vector.broadcast %32 : vector<1x256xf32> to vector<2x256xf32>
      %34 = arith.addf %31, %33 : vector<2x256xf32>
      %cst_20 = arith.constant 0.000000e+00 : f32
      %35 = vector.broadcast %cst_20 : f32 to vector<2x256xf32>
      %36 = arith.cmpf oge, %34, %35 : vector<2x256xf32>
      %cst_21 = arith.constant 3.000000e-01 : f32
      %37 = vector.broadcast %cst_21 : f32 to vector<2x256xf32>
      %38 = arith.mulf %37, %34 : vector<2x256xf32>
      %39 = arith.select %36, %34, %38 : vector<2x256xi1>, vector<2x256xf32>
      %40 = arith.truncf %39 : vector<2x256xf32> to vector<2x256xbf16>
      %c0_22 = arith.constant 0 : index
      %c0_23 = arith.constant 0 : index
      %41 = vector.load %arg6[%c0_22, %c0_23] : memref<2x256xbf16, #tpu.memory_space<vmem>>, vector<2x256xbf16>
      tpu.vector_store %arg6[%c0_22, %c0_23], %40 {strides = array<i32>} : memref<2x256xbf16, #tpu.memory_space<vmem>>, vector<2x256xbf16>,
    } else {
    }
    return
  }
  func.func @transform_0(%arg0: i32, %arg1: i32) -> (i32, i32) {
    %c0_i32 = arith.constant 0 : i32
    %c0_i32_0 = arith.constant 0 : i32
    return %c0_i32, %arg1 : i32, i32
  }
  func.func @transform_1(%arg0: i32, %arg1: i32) -> (i32, i32) {
    %c0_i32 = arith.constant 0 : i32
    return %arg1, %arg0 : i32, i32
  }
  func.func @transform_2(%arg0: i32, %arg1: i32) -> (i32, i32) {
    %c0_i32 = arith.constant 0 : i32
    %c0_i32_0 = arith.constant 0 : i32
    return %c0_i32, %arg0 : i32, i32
  }
  func.func @transform_3(%arg0: i32, %arg1: i32) -> (i32, i32) {
    %c0_i32 = arith.constant 0 : i32
    %c0_i32_0 = arith.constant 0 : i32
    return %c0_i32, %arg0 : i32, i32
  }
  func.func @transform_4(%arg0: i32, %arg1: i32) -> (i32, i32) {
    %c0_i32 = arith.constant 0 : i32
    %c0_i32_0 = arith.constant 0 : i32
    return %c0_i32, %arg0 : i32, i32
  }
}

module attributes {stable_mosaic.version = 11 : i64} {
  func.func @_linear_kernel(%arg0: memref<2x1024xbf16, #tpu.memory_space<vmem>>, %arg1: memref<1x1024xbf16, #tpu.memory_space<vmem>>, %arg2: memref<1x1xf32, #tpu.memory_space<vmem>>, %arg3: memref<2x1xf32, #tpu.memory_space<vmem>>) attributes {dimension_semantics = [], scalar_prefetch = 0 : i64, scratch_operands = 0 : i64, tpu.core_type = #tpu.core_type<tc>} {
    %c0 = arith.constant 0 : index
    %c0_0 = arith.constant 0 : index
    %0 = vector.load %arg0[%c0, %c0_0] : memref<2x1024xbf16, #tpu.memory_space<vmem>>, vector<2x1024xbf16>
    %1 = arith.extf %0 : vector<2x1024xbf16> to vector<2x1024xf32>
    %c0_1 = arith.constant 0 : index
    %c0_2 = arith.constant 0 : index
    %2 = vector.load %arg1[%c0_1, %c0_2] : memref<1x1024xbf16, #tpu.memory_space<vmem>>, vector<1x1024xbf16>
    %3 = arith.extf %2 : vector<1x1024xbf16> to vector<1x1024xf32>
    %4 = vector.broadcast %3 : vector<1x1024xf32> to vector<2x1024xf32>
    %5 = arith.mulf %1, %4 : vector<2x1024xf32>
    %cst = arith.constant dense<0.000000e+00> : vector<2xf32>
    %6 = vector.multi_reduction <add>, %5, %cst [1] : vector<2x1024xf32> to vector<2xf32>
    %7 = vector.shape_cast %6 : vector<2xf32> to vector<2x1xf32>
    %c0_3 = arith.constant 0 : index
    %c0_4 = arith.constant 0 : index
    %8 = vector.load %arg2[%c0_3, %c0_4] : memref<1x1xf32, #tpu.memory_space<vmem>>, vector<1x1xf32>
    %9 = vector.broadcast %8 : vector<1x1xf32> to vector<2x1xf32>
    %10 = arith.addf %7, %9 : vector<2x1xf32>
    %c0_5 = arith.constant 0 : index
    %c0_6 = arith.constant 0 : index
    %11 = vector.load %arg3[%c0_5, %c0_6] : memref<2x1xf32, #tpu.memory_space<vmem>>, vector<2x1xf32>
    tpu.vector_store %arg3[%c0_5, %c0_6], %10 {strides = array<i32>} : memref<2x1xf32, #tpu.memory_space<vmem>>, vector<2x1xf32>,
    return
  }
}

</mosaic_0001>

<bundles_post_ra>
// kernel: discriminator_forward.5
= control target key start
LH: loop header
LB: loop body
LE: loop exit
PB: predicated region body
PF: predicated region fallthrough
CT: control target
= control target key end

     0   :  { %9 = vsyncpa [#allocation4], 0  ;;  %s936_s0 = inlined_call_operand.vmem [shape: bf16[128,64], index: 0, kind: input, shape index: {}]   ;;  %s937_s1 = inlined_call_operand.vmem [shape: bf16[64,128], index: 1, kind: input, shape index: {}]   ;;  %s938_s2 = inlined_call_operand.hbm [shape: f32[1,128], index: 2, kind: input, shape index: {}]   ;;  %s939_s3 = inlined_call_operand.hbm [shape: f32[1,128], index: 3, kind: input, shape index: {}]   ;;  %s940_s4 = inlined_call_operand.vmem [shape: bf16[128,128], index: 4, kind: output, shape index: {}]  }
   0x1   :  { %10 = vsyncpa [#allocation6], 0  ;;  %s819_s15 = smov [#allocation3]   ;;  %s820_s17 = smov [#allocation5]  }
   0x2   :  { %s21_s16 = sshll.u32 %s819_s15, 4  ;;  %s31_s18 = sshll.u32 %s820_s17, 4  ;;  %s22_s16 = int_to_ptr.vmem [resolvable:$true] %s21_s16  ;;  %s32_s18 = int_to_ptr.vmem [resolvable:$true] %s31_s18 }
   0x3   :  { %s783_s19 = scalar_lea.vmem %s22_s16, 16  ;;  %s787_s20 = scalar_lea.vmem %s22_s16, 32 }
   0x4   :  { %p784_p0 = scmp.ne.s32.totalorder %s22_s16, %s783_s19  ;;  %p788_p1 = scmp.lt.s32.totalorder %s22_s16, %s22_s16 }
   0x5   :  { %p789_p2 = scmp.lt.s32.totalorder %s787_s20, %s783_s19 }
   0x7   :  { %p790_p3 = por %p789_p2, %p788_p1 }
   0x9   :  { %p791_p4 = pnand %p790_p3, %p784_p0 }
   0xb   :  { %794 = shalt.err (!%p791_p4)
}
   0xc   :  { %24 = dma.hbm_to_vmem [thread:$0]  %s938_s2, 16, %s22_s16, [#allocation4]  }
   0xd   :  { %s803_s23 = scalar_lea.vmem %s32_s18, 16  ;;  %s807_s24 = scalar_lea.vmem %s32_s18, 32 }
   0xe   :  { %p804_p5 = scmp.ne.s32.totalorder %s32_s18, %s803_s23  ;;  %p808_p6 = scmp.lt.s32.totalorder %s32_s18, %s32_s18 }
   0xf   :  { %p809_p7 = scmp.lt.s32.totalorder %s807_s24, %s803_s23 }
  0x11   :  { %p810_p8 = por %p809_p7, %p808_p6 }
  0x13   :  { %p811_p9 = pnand %p810_p8, %p804_p5 }
  0x15   :  { %814 = shalt.err (!%p811_p9)
}
  0x16   :  { %34 = dma.hbm_to_vmem [thread:$0]  %s939_s3, 16, %s32_s18, [#allocation6]  }
  0x17   :  { %815 = dma.done.wait [#allocation4], 16  }
  0x18   :  { %816 = vsyncadd [#allocation4], 4294967280 }
  0x19   :  { %817 = dma.done.wait [#allocation6], 16  }
  0x1a   :  { %818 = vsyncadd [#allocation6], 4294967280  ;;  %v761_v0 = vld [vmem:[%s937_s1 + $0x18] sm:$0xff]   ;;  %v762_v1 = vld [vmem:[%s937_s1 + $0x10] sm:$0xff]   ;;  %vm166_vm0 = vcmask 523264  }
  0x1b   :  { %727 = vmatprep.subr.bf16.mxu0 %v761_v0  ;;  %751 = vmatprep.subr.bf16.mxu1 %v761_v0  ;;  %v763_v2 = vld [vmem:[%s937_s1 + $0x8] sm:$0xff]   ;;  %v765_v3 = vld [vmem:[%s936_s0] sm:$0xff]   ;;  %v767_v8 = vld [vmem:[%s936_s0 + $0x10] sm:$0xff]  }
  0x1c   :  { %728 = vmatpush3.bf16.msra.mxu0 %v761_v0  ;;  %755 = vmatpush3.bf16.msra.mxu1 %v761_v0  ;;  %v764_v4 = vld [vmem:[%s937_s1] sm:$0xff]   ;;  %v766_v6 = vld [vmem:[%s936_s0 + $0x8] sm:$0xff]   ;;  %v771_v9 = vld [vmem:[%s936_s0 + $0x30] sm:$0xff]  }
  0x1d   :  { %729 = vmatprep.subr.bf16.mxu0 %v762_v1  ;;  %752 = vmatprep.subr.bf16.mxu1 %v762_v1  ;;  %v769_v5 = vld [vmem:[%s936_s0 + $0x20] sm:$0xff]   ;;  %v770_v7 = vld [vmem:[%s936_s0 + $0x28] sm:$0xff]   ;;  %v768_v10 = vld [vmem:[%s936_s0 + $0x18] sm:$0xff]  }
  0x1e   :  { %735 = vmatprep.mubr.msk.bf16.mxu0 %vm166_vm0, %v765_v3  ;;  %743 = vmatprep.mubr.msk.bf16.mxu1 %vm166_vm0, %v769_v5  ;;  %v772_v11 = vld [vmem:[%s936_s0 + $0x38] sm:$0xff]  }
  0x20   :  { %730 = vmatpush3.bf16.msra.mxu0 %v762_v1  ;;  %756 = vmatpush3.bf16.msra.mxu1 %v762_v1 }
  0x21   :  { %731 = vmatprep.subr.bf16.mxu0 %v763_v2  ;;  %753 = vmatprep.subr.bf16.mxu1 %v763_v2 }
  0x24   :  { %732 = vmatpush3.bf16.msra.mxu0 %v763_v2  ;;  %757 = vmatpush3.bf16.msra.mxu1 %v763_v2 }
  0x25   :  { %733 = vmatprep.subr.bf16.mxu0 %v764_v4  ;;  %754 = vmatprep.subr.bf16.mxu1 %v764_v4 }
  0x28   :  { %734 = vmatpush3.bf16.msra.mxu0 %v764_v4  ;;  %758 = vmatpush3.bf16.msra.mxu1 %v764_v4 }
  0x2b   :  { %736 = vmatmul.mubr.msk.bf16.vlgmr.msra.gmra.mxu0 %vm166_vm0, %v766_v6  ;;  %744 = vmatmul.mubr.msk.bf16.vlgmr.msra.gmra.mxu1 %vm166_vm0, %v770_v7 }
  0x2c   :  { %739 = vmatprep.mubr.msk.bf16.mxu0 %vm166_vm0, %v767_v8  ;;  %747 = vmatprep.mubr.msk.bf16.mxu1 %vm166_vm0, %v771_v9 }
  0x33   :  { %740 = vmatmul.mubr.msk.bf16.gmra.mxu0 %vm166_vm0, %v768_v10  ;;  %748 = vmatmul.mubr.msk.bf16.gmra.mxu1 %vm166_vm0, %v772_v11 }
  0xeb   :  { %v737_v12 = vpop.f32.mrf.mxu0  ;;  %v745_v14 = vpop.f32.mrf.mxu1 }
  0xed   :  { %v225_v13 = vpop.f32.mrf.mxu0  ;;  %v257_v17 = vpop.f32.mrf.mxu1 }
  0xef   :  { %v738_v15 = vpop.f32.mrf.mxu0  ;;  %v746_v22 = vpop.f32.mrf.mxu1 }
  0xf1   :  { %v228_v16 = vpop.f32.mrf.mxu0  ;;  %v260_v27 = vpop.f32.mrf.mxu1 }
  0xf2   :  { %v339_v18 = vadd.f32 %v228_v16, %v225_v13 }
  0xf3   :  { %v741_v19 = vpop.f32.mrf.mxu0  ;;  %v749_v30 = vpop.f32.mrf.mxu1 }
  0xf4   :  { %v340_v20 = vadd.f32 %v737_v12, %v339_v18 }
  0xf5   :  { %v241_v21 = vpop.f32.mrf.mxu0  ;;  %v273_v33 = vpop.f32.mrf.mxu1 }
  0xf6   :  { %v341_v23 = vadd.f32 %v738_v15, %v340_v20 }
  0xf7   :  { %v742_v24 = vpop.f32.mrf.mxu0  ;;  %v750_v36 = vpop.f32.mrf.mxu1 }
  0xf8   :  { %v342_v25 = vadd.f32 %v341_v23, %v241_v21 }
  0xf9   :  { %v244_v26 = vpop.f32.mrf.mxu0  ;;  %v276_v39 = vpop.f32.mrf.mxu1 }
  0xfa   :  { %v343_v28 = vadd.f32 %v342_v25, %v244_v26 }
  0xfc   :  { %v344_v29 = vadd.f32 %v741_v19, %v343_v28 }
  0xfe   :  { %v345_v31 = vadd.f32 %v742_v24, %v344_v29 }
 0x100   :  { %v346_v32 = vadd.f32 %v345_v31, %v257_v17 }
 0x102   :  { %v347_v34 = vadd.f32 %v346_v32, %v260_v27 }
 0x104   :  { %v348_v35 = vadd.f32 %v745_v14, %v347_v34 }
 0x106   :  { %v349_v37 = vadd.f32 %v746_v22, %v348_v35 }
 0x108   :  { %v350_v38 = vadd.f32 %v349_v37, %v273_v33 }
 0x10a   :  { %v351_v40 = vadd.f32 %v350_v38, %v276_v39 }
 0x10c   :  { %v352_v41 = vadd.f32 %v749_v30, %v351_v40 }
 0x10e   :  { %v353_v42 = vadd.f32 %v750_v36, %v352_v41 }
 0x110   :  { %v354_v43 = vrot.slane %v353_v42, 4 }
 0x112   :  { %v355_v44 = vadd.f32 %v354_v43, %v353_v42 }
 0x114   :  { %v356_v45 = vrot.slane %v355_v44, 2 }
 0x116   :  { %v357_v46 = vadd.f32 %v356_v45, %v355_v44 }
 0x118   :  { %v358_v47 = vrot.slane %v357_v46, 1 }
 0x11a   :  { %v359_v48 = vadd.f32 %v358_v47, %v357_v46 }
 0x11c   :  { %v361_v49 = vmul.f32 0.0078125, %v359_v48 }
 0x11e   :  { %v362_v50 = vsub.f32 %v225_v13, %v361_v49  ;;  %v363_v51 = vsub.f32 %v228_v16, %v361_v49  ;;  %v364_v52 = vsub.f32 %v737_v12, %v361_v49  ;;  %v365_v55 = vsub.f32 %v738_v15, %v361_v49 }
 0x11f   :  { %v366_v56 = vsub.f32 %v241_v21, %v361_v49  ;;  %v367_v59 = vsub.f32 %v244_v26, %v361_v49  ;;  %v368_v62 = vsub.f32 %v741_v19, %v361_v49  ;;  %v369_v1 = vsub.f32 %v742_v24, %v361_v49 }
 0x120   :  { %v378_v53 = vmul.f32 %v362_v50, %v362_v50  ;;  %v379_v54 = vmul.f32 %v363_v51, %v363_v51  ;;  %v380_v57 = vmul.f32 %v364_v52, %v364_v52  ;;  %v381_v60 = vmul.f32 %v365_v55, %v365_v55 }
 0x121   :  { %v382_v63 = vmul.f32 %v366_v56, %v366_v56  ;;  %v383_v2 = vmul.f32 %v367_v59, %v367_v59  ;;  %v370_v4 = vsub.f32 %v257_v17, %v361_v49  ;;  %v384_v5 = vmul.f32 %v368_v62, %v368_v62 }
 0x122   :  { %v394_v58 = vadd.f32 %v379_v54, %v378_v53  ;;  %v371_v7 = vsub.f32 %v260_v27, %v361_v49  ;;  %v385_v8 = vmul.f32 %v369_v1, %v369_v1  ;;  %v372_v10 = vsub.f32 %v745_v14, %v361_v49  ;;  %v634_v53 = vld [vmem:[#allocation3] ss:$0 sm:$0xff] }
 0x123   :  { %v386_v11 = vmul.f32 %v370_v4, %v370_v4  ;;  %v373_v13 = vsub.f32 %v746_v22, %v361_v49  ;;  %v374_v18 = vsub.f32 %v273_v33, %v361_v49  ;;  %v375_v21 = vsub.f32 %v276_v39, %v361_v49 }
 0x124   :  { %v395_v61 = vadd.f32 %v394_v58, %v380_v57  ;;  %v387_v15 = vmul.f32 %v371_v7, %v371_v7  ;;  %v388_v20 = vmul.f32 %v372_v10, %v372_v10  ;;  %v376_v25 = vsub.f32 %v749_v30, %v361_v49 }
 0x125   :  { %v389_v23 = vmul.f32 %v373_v13, %v373_v13  ;;  %v390_v26 = vmul.f32 %v374_v18, %v374_v18  ;;  %v377_v28 = vsub.f32 %v750_v36, %v361_v49  ;;  %v391_v29 = vmul.f32 %v375_v21, %v375_v21 }
 0x126   :  { %v396_v0 = vadd.f32 %v395_v61, %v381_v60  ;;  %v392_v31 = vmul.f32 %v376_v25, %v376_v25 }
 0x127   :  { %v393_v14 = vmul.f32 %v377_v28, %v377_v28 }
 0x128   :  { %v397_v3 = vadd.f32 %v396_v0, %v382_v63 }
 0x12a   :  { %v398_v6 = vadd.f32 %v397_v3, %v383_v2 }
 0x12c   :  { %v399_v9 = vadd.f32 %v398_v6, %v384_v5 }
 0x12e   :  { %v400_v12 = vadd.f32 %v399_v9, %v385_v8 }
 0x130   :  { %v401_v16 = vadd.f32 %v400_v12, %v386_v11 }
 0x132   :  { %v402_v19 = vadd.f32 %v401_v16, %v387_v15 }
 0x134   :  { %v403_v24 = vadd.f32 %v402_v19, %v388_v20 }
 0x136   :  { %v404_v17 = vadd.f32 %v403_v24, %v389_v23 }
 0x138   :  { %v405_v27 = vadd.f32 %v404_v17, %v390_v26 }
 0x13a   :  { %v406_v32 = vadd.f32 %v405_v27, %v391_v29 }
 0x13c   :  { %v407_v34 = vadd.f32 %v406_v32, %v392_v31 }
 0x13e   :  { %v408_v35 = vadd.f32 %v407_v34, %v393_v14 }
 0x140   :  { %v409_v22 = vrot.slane %v408_v35, 4 }
 0x142   :  { %v410_v37 = vadd.f32 %v409_v22, %v408_v35 }
 0x144   :  { %v411_v38 = vrot.slane %v410_v37, 2 }
 0x146   :  { %v412_v33 = vadd.f32 %v411_v38, %v410_v37 }
 0x148   :  { %v413_v40 = vrot.slane %v412_v33, 1 }
 0x14a   :  { %v414_v41 = vadd.f32 %v413_v40, %v412_v33 }
 0x14c   :  { %v415_v39 = vmul.f32 0.0078125, %v414_v41 }
 0x14e   :  { %v416_v42 = vadd.f32 1e-05, %v415_v39 }
 0x150   :  { %773 = vrsqrt.f32 %v416_v42 }
 0x15d   :  { %v774_v30 = vpop.eup %773 }
 0x15e   :  { %v418_v43 = vmul.f32 %v774_v30, %v362_v50  ;;  %v419_v44 = vmul.f32 %v774_v30, %v363_v51  ;;  %v420_v36 = vmul.f32 %v774_v30, %v364_v52  ;;  %v421_v45 = vmul.f32 %v774_v30, %v365_v55 }
 0x15f   :  { %v422_v46 = vmul.f32 %v774_v30, %v366_v56  ;;  %v423_v47 = vmul.f32 %v774_v30, %v367_v59  ;;  %v424_v48 = vmul.f32 %v774_v30, %v368_v62  ;;  %v425_v49 = vmul.f32 %v774_v30, %v369_v1  ;;  %v635_v59 = vld [vmem:[#allocation5] ss:$0 sm:$0xff] }
 0x160   :  { %v426_v54 = vmul.f32 %v774_v30, %v370_v4  ;;  %v427_v57 = vmul.f32 %v774_v30, %v371_v7  ;;  %v428_v58 = vmul.f32 %v774_v30, %v372_v10  ;;  %v429_v60 = vmul.f32 %v774_v30, %v373_v13 }
 0x161   :  { %v430_v61 = vmul.f32 %v774_v30, %v374_v18  ;;  %v431_v63 = vmul.f32 %v774_v30, %v375_v21  ;;  %v432_v0 = vmul.f32 %v774_v30, %v376_v25  ;;  %v433_v2 = vmul.f32 %v774_v30, %v377_v28 }
 0x162   :  { %v441_v3 = vmul.f32 %v634_v53, %v418_v43  ;;  %v442_v5 = vmul.f32 %v634_v53, %v419_v44  ;;  %v443_v6 = vmul.f32 %v634_v53, %v420_v36  ;;  %v444_v50 = vmul.f32 %v634_v53, %v421_v45 }
 0x163   :  { %v445_v51 = vmul.f32 %v634_v53, %v422_v46  ;;  %v446_v52 = vmul.f32 %v634_v53, %v423_v47  ;;  %v447_v55 = vmul.f32 %v634_v53, %v424_v48  ;;  %v448_v56 = vmul.f32 %v634_v53, %v425_v49 }
 0x164   :  { %v449_v62 = vmul.f32 %v634_v53, %v426_v54  ;;  %v450_v1 = vmul.f32 %v634_v53, %v427_v57  ;;  %v451_v8 = vmul.f32 %v634_v53, %v428_v58  ;;  %v452_v4 = vmul.f32 %v634_v53, %v429_v60 }
 0x165   :  { %v453_v7 = vmul.f32 %v634_v53, %v430_v61  ;;  %v454_v9 = vmul.f32 %v634_v53, %v431_v63  ;;  %v455_v10 = vmul.f32 %v634_v53, %v432_v0  ;;  %v456_v11 = vmul.f32 %v634_v53, %v433_v2 }
 0x166   :  { %v464_v12 = vadd.f32 %v635_v59, %v441_v3  ;;  %v465_v13 = vadd.f32 %v635_v59, %v442_v5  ;;  %v466_v15 = vadd.f32 %v635_v59, %v443_v6  ;;  %v467_v16 = vadd.f32 %v635_v59, %v444_v50 }
 0x167   :  { %v468_v18 = vadd.f32 %v635_v59, %v445_v51  ;;  %v469_v20 = vadd.f32 %v635_v59, %v446_v52  ;;  %v470_v19 = vadd.f32 %v635_v59, %v447_v55  ;;  %v471_v21 = vadd.f32 %v635_v59, %v448_v56 }
 0x168   :  { %v472_v23 = vadd.f32 %v635_v59, %v449_v62  ;;  %v473_v24 = vadd.f32 %v635_v59, %v450_v1  ;;  %v474_v25 = vadd.f32 %v635_v59, %v451_v8  ;;  %v475_v26 = vadd.f32 %v635_v59, %v452_v4 }
 0x169   :  { %v476_v17 = vadd.f32 %v635_v59, %v453_v7  ;;  %v477_v28 = vadd.f32 %v635_v59, %v454_v9  ;;  %v478_v29 = vadd.f32 %v635_v59, %v455_v10  ;;  %v479_v27 = vadd.f32 %v635_v59, %v456_v11 }
 0x16a   :  { %vm480_vm1 = vcmp.ge.f32.partialorder %v464_v12, 0.0  ;;  %vm481_vm2 = vcmp.ge.f32.partialorder %v465_v13, 0.0  ;;  %vm482_vm3 = vcmp.ge.f32.partialorder %v466_v15, 0.0  ;;  %vm483_vm4 = vcmp.ge.f32.partialorder %v467_v16, 0.0 }
 0x16b   :  { %vm484_vm5 = vcmp.ge.f32.partialorder %v468_v18, 0.0  ;;  %vm485_vm6 = vcmp.ge.f32.partialorder %v469_v20, 0.0  ;;  %vm486_vm7 = vcmp.ge.f32.partialorder %v470_v19, 0.0  ;;  %vm487_vm8 = vcmp.ge.f32.partialorder %v471_v21, 0.0 }
 0x16c   :  { %vm488_vm9 = vcmp.ge.f32.partialorder %v472_v23, 0.0  ;;  %vm489_vm10 = vcmp.ge.f32.partialorder %v473_v24, 0.0  ;;  %vm490_vm11 = vcmp.ge.f32.partialorder %v474_v25, 0.0  ;;  %vm491_vm12 = vcmp.ge.f32.partialorder %v475_v26, 0.0 }
 0x16d   :  { %vm492_vm13 = vcmp.ge.f32.partialorder %v476_v17, 0.0  ;;  %vm493_vm14 = vcmp.ge.f32.partialorder %v477_v28, 0.0  ;;  %vm494_vm15 = vcmp.ge.f32.partialorder %v478_v29, 0.0  ;;  %vm495_vm0 = vcmp.ge.f32.partialorder %v479_v27, 0.0 }
 0x16e   :  { %v496_v31 = vmul.f32 0.3, %v464_v12  ;;  %v497_v32 = vmul.f32 0.3, %v465_v13  ;;  %v498_v14 = vmul.f32 0.3, %v466_v15 }
 0x16f   :  { %v499_v34 = vmul.f32 0.3, %v467_v16  ;;  %v500_v35 = vmul.f32 0.3, %v468_v18  ;;  %v501_v22 = vmul.f32 0.3, %v469_v20 }
 0x170   :  { %v502_v37 = vmul.f32 0.3, %v470_v19  ;;  %v503_v38 = vmul.f32 0.3, %v471_v21  ;;  %v504_v33 = vmul.f32 0.3, %v472_v23  ;;  %v512_v40 = vsel %vm480_vm1, %v464_v12, %v496_v31 }
 0x171   :  { %v505_v41 = vmul.f32 0.3, %v473_v24  ;;  %v506_v39 = vmul.f32 0.3, %v474_v25  ;;  %v507_v42 = vmul.f32 0.3, %v475_v26  ;;  %v513_v30 = vsel %vm481_vm2, %v465_v13, %v497_v32 }
 0x172   :  { %v508_v43 = vmul.f32 0.3, %v476_v17  ;;  %v509_v44 = vmul.f32 0.3, %v477_v28  ;;  %v510_v36 = vmul.f32 0.3, %v478_v29  ;;  %v514_v45 = vsel %vm482_vm3, %v466_v15, %v498_v14 }
 0x173   :  { %v511_v46 = vmul.f32 0.3, %v479_v27  ;;  %v515_v47 = vsel %vm483_vm4, %v467_v16, %v499_v34  ;;  %v516_v48 = vsel %vm484_vm5, %v468_v18, %v500_v35  ;;  %v517_v49 = vsel %vm485_vm6, %v469_v20, %v501_v22 }
 0x174   :  { %v518_v53 = vsel %vm486_vm7, %v470_v19, %v502_v37  ;;  %v519_v54 = vsel %vm487_vm8, %v471_v21, %v503_v38  ;;  %v520_v57 = vsel %vm488_vm9, %v472_v23, %v504_v33  ;;  %v521_v58 = vsel %vm489_vm10, %v473_v24, %v505_v41 }
 0x175   :  { %v522_v60 = vsel %vm490_vm11, %v474_v25, %v506_v39  ;;  %v523_v61 = vsel %vm491_vm12, %v475_v26, %v507_v42  ;;  %v524_v63 = vsel %vm492_vm13, %v476_v17, %v508_v43  ;;  %v525_v0 = vsel %vm493_vm14, %v477_v28, %v509_v44 }
 0x176   :  { %v526_v2 = vsel %vm494_vm15, %v478_v29, %v510_v36  ;;  %v527_v3 = vsel %vm495_vm0, %v479_v27, %v511_v46  ;;  %v671_v5 = vpack.c.bf16 %v513_v30, %v512_v40  ;;  %v676_v6 = vpack.c.bf16 %v515_v47, %v514_v45 }
 0x177   :  { %v681_v50 = vpack.c.bf16 %v517_v49, %v516_v48  ;;  %v686_v51 = vpack.c.bf16 %v519_v54, %v518_v53  ;;  %v691_v52 = vpack.c.bf16 %v521_v58, %v520_v57  ;;  %v696_v55 = vpack.c.bf16 %v523_v61, %v522_v60 }
 0x178   :  { %672 = vst [vmem:[%s940_s4] sm:$0xff] %v671_v5   ;;  %708 = vst [vmem:[%s940_s4 + $0x8] sm:$0xff] %v676_v6   ;;  %v701_v56 = vpack.c.bf16 %v525_v0, %v524_v63  ;;  %v706_v59 = vpack.c.bf16 %v527_v3, %v526_v2 }
 0x179   :  { %709 = vst [vmem:[%s940_s4 + $0x10] sm:$0xff] %v681_v50   ;;  %710 = vst [vmem:[%s940_s4 + $0x18] sm:$0xff] %v686_v51  }
 0x17a   :  { %711 = vst [vmem:[%s940_s4 + $0x20] sm:$0xff] %v691_v52   ;;  %712 = vst [vmem:[%s940_s4 + $0x28] sm:$0xff] %v696_v55  }
 0x17b   :  { %713 = vst [vmem:[%s940_s4 + $0x30] sm:$0xff] %v701_v56   ;;  %714 = vst [vmem:[%s940_s4 + $0x38] sm:$0xff] %v706_v59  }
 0x17c   :  { %612 = vsyncpa [#allocation4], 1 }
 0x17d   :  { %613 = vsyncpa [#allocation6], 1 }

// kernel: discriminator_forward.6
= control target key start
LH: loop header
LB: loop body
LE: loop exit
PB: predicated region body
PF: predicated region fallthrough
CT: control target
= control target key end

     0   :  { %9 = vsyncpa [#allocation5], 0  ;;  %s1801_s0 = inlined_call_operand.vmem [shape: bf16[32,2048], index: 0, kind: input, shape index: {}]   ;;  %s1802_s1 = inlined_call_operand.vmem [shape: bf16[2048,256], index: 1, kind: input, shape index: {}]   ;;  %s1803_s2 = inlined_call_operand.hbm [shape: f32[1,256], index: 2, kind: input, shape index: {}]   ;;  %s1804_s3 = inlined_call_operand.hbm [shape: f32[1,256], index: 3, kind: input, shape index: {}]   ;;  %s1805_s4 = inlined_call_operand.vmem [shape: bf16[32,256], index: 4, kind: output, shape index: {}]  }
   0x1   :  { %10 = vsyncpa [#allocation7], 0  ;;  %s1595_s15 = smov 0   ;;  %s1597_s16 = smov 0  }
   0x2   :  { %s1599_s17 = smov 0   ;;  %s1601_s18 = smov 0  }
   0x3   :  { %s1603_s19 = smov 0  }
   0x4 LB: > { %s1190_s20 = sadd.s32 4294967295, %s1565_s19   ;;  %s25_s21 = sadd.s32 1, %s1561_s18  ;;  %s1565_s19 = sphi %s1603_s19, %s16_s19   ;;  %s1561_s18 = sphi %s1601_s18, %s1819_s18   ;;  %s1557_s17 = sphi %s1599_s17, %s1818_s17   ;;  %s1553_s16 = sphi %s1597_s16, %s1817_s16   ;;  %s1549_s15 = sphi %s1595_s15, %s1816_s15  }
   0x5   : > { %p26_p0 = scmp.ge.s32.totalorder %s25_s21, 4  ;;  %s35_s22 = sadd.s32 1, %s1553_s16 }
   0x6   : > { %p42_p1 = scmp.ne.s32.totalorder %s1553_s16, %s1549_s15  ;;  %p43_p2 = scmp.eq.s32.totalorder %s1565_s19, 0 }
   0x7   : > { %s1821_s21 = smov (%p26_p0, %s25_s21), 0  ;;  %p1191_p4 = scmp.ge.s32.totalorder %s1565_s19, 1 }
   0x8   : > { %p1628_p3 = por %p43_p2, %p42_p1  ;;  %s32_s24 = ssub.s32 %s1561_s18, %s1821_s21 }
   0x9   : > { %p165_p5 = scmp.lt.s32.totalorder %s1565_s19, 5  ;;  %p33_p6 = scmp.eq.s32.totalorder %s32_s24, 0 }
   0xa   : > { %s1809_s23 = scalar_select %p1628_p3, 1, 0 }
   0xb   : > { %p1636_p7 = pnand %p1191_p4, %p165_p5  ;;  %p1640_p8 = scmp.eq.s32.totalorder %s1190_s20, 0 }
   0xc   : > { %s1645_s27 = scalar_select %p33_p6, %s1553_s16, %s35_s22  }
   0xd   : > { %s1810_s25 = scalar_select %p1636_p7, 1, 0 }
   0xe   : > { %s1811_s26 = scalar_select %p1640_p8, 1, 0 }
   0xf   : > { %p1301_p9 = pneg %p1636_p7  ;;  %s1567_s28 = smov [#allocation4]  }
  0x10   : > { %s181_s29 = sshll.u32 %s1567_s28, 4  ;;  %s1568_s5 = smov [#allocation6]   ;;  %s182_s29 = int_to_ptr.vmem [resolvable:$true] %s181_s29 }
  0x11   : > { %p1651_p10 = pnand %p1640_p8, %p1301_p9  ;;  %s195_s6 = sshll.u32 %s1568_s5, 4  ;;  %s196_s6 = int_to_ptr.vmem [resolvable:$true] %s195_s6 }
  0x12   : > { %s1478_s7 = scalar_lea.vmem %s182_s29, 32  ;;  %p1486_p1 = scmp.lt.s32.totalorder %s182_s29, %s182_s29 }
  0x13   : > { %p1469_p11 = pneg %p1651_p10  ;;  %p1479_p12 = scmp.ne.s32.totalorder %s182_s29, %s1478_s7 }
  0x14   : > { %p1487_p2 = scmp.lt.s32.totalorder %s1478_s7, %s1478_s7 }
  0x15   : > { %p1481_p13 = pnand %p1479_p12, %p1469_p11 }
  0x16   : > { %p1488_p4 = por %p1487_p2, %p1486_p1 }
  0x17   : > { %p1482_p0 = pneg %p1481_p13 }
  0x19   : > { %p1489_p5 = pnand %p1488_p4, %p1482_p0 }
  0x1b   : > { %1492 = shalt.err (!%p1489_p5)
}
  0x1c   : > { %1304 = dma.hbm_to_vmem [thread:$0]  (!%p1651_p10), %s1803_s2, 32, %s182_s29, [#allocation5]  }
  0x1d   : > { %s1504_s10 = scalar_lea.vmem %s196_s6, 32  ;;  %p1512_p12 = scmp.lt.s32.totalorder %s196_s6, %s196_s6 }
  0x1e   : > { %p1505_p6 = scmp.ne.s32.totalorder %s196_s6, %s1504_s10  ;;  %p1513_p13 = scmp.lt.s32.totalorder %s1504_s10, %s1504_s10 }
  0x20   : > { %p1507_p9 = pnand %p1505_p6, %p1469_p11  ;;  %p1514_p7 = por %p1513_p13, %p1512_p12 }
  0x22   : > { %p1508_p8 = pneg %p1507_p9 }
  0x24   : > { %p1515_p3 = pnand %p1514_p7, %p1508_p8 }
  0x26   : > { %1518 = shalt.err (!%p1515_p3)
}
  0x27   : > { %1307 = dma.hbm_to_vmem [thread:$0]  (!%p1651_p10), %s1804_s3, 32, %s196_s6, [#allocation7]  }
  0x28   : > { %p1194_p0 = scmp.ge.s32.totalorder %s1565_s19, 4 }
  0x29   : > { %p1813_p1 = scmp.ne.s32.totalorder (!%p1194_p0), %s1809_s23, 0 }
  0x2a   : > { %202 = sbr.rel (%p1194_p0) target bundleno = 55 (0x37), region = 24 }
  0x2f   : > { %205 = sbr.rel (!%p1813_p1) target bundleno = 55 (0x37), region = 28  ;;  %s207_s13 = sand.u32 (%p1813_p1), 1, %s1553_s16  }
  0x30   : > { %s1287_s14 = sshll.u32 (%p1813_p1), %s1561_s18, 4  ;;  %s1195_s20 = sshll.u32 (%p1813_p1), %s207_s13, 6 }
  0x31   : > { %s212_s28 = scalar_lea.vmem (%p1813_p1), %s1801_s0, %s1287_s14  ;;  %s209_s29 = scalar_lea.vmem (%p1813_p1), [#allocation3], %s1195_s20 }
  0x32   : > { %v225_v0 = vld [vmem:[%s212_s28] sm:$0xff] (%p1813_p1)  ;;  %v227_v1 = vld [vmem:[%s212_s28 + $0x8] sm:$0xff] (%p1813_p1) }
  0x33   : > { %v229_v2 = vld [vmem:[%s212_s28 + $0x40] sm:$0xff] (%p1813_p1)  ;;  %226 = vst [vmem:[%s209_s29] sm:$0xff] (%p1813_p1), %v225_v0  ;;  %228 = vst [vmem:[%s209_s29 + $0x8] sm:$0xff] (%p1813_p1), %v227_v1  ;;  %v231_v3 = vld [vmem:[%s212_s28 + $0x48] sm:$0xff] (%p1813_p1) }
  0x34   : > { %230 = vst [vmem:[%s209_s29 + $0x10] sm:$0xff] %v229_v2  ;;  %v233_v4 = vld [vmem:[%s212_s28 + $0x80] sm:$0xff]  ;;  %v235_v5 = vld [vmem:[%s212_s28 + $0x88] sm:$0xff]  ;;  %232 = vst [vmem:[%s209_s29 + $0x18] sm:$0xff] %v231_v3 }
  0x35   : > { %234 = vst [vmem:[%s209_s29 + $0x20] sm:$0xff] %v233_v4  ;;  %236 = vst [vmem:[%s209_s29 + $0x28] sm:$0xff] %v235_v5  ;;  %v237_v6 = vld [vmem:[%s212_s28 + $0xc0] sm:$0xff]  ;;  %v239_v7 = vld [vmem:[%s212_s28 + $0xc8] sm:$0xff] }
  0x36   : > { %238 = vst [vmem:[%s209_s29 + $0x30] sm:$0xff] %v237_v6  ;;  %240 = vst [vmem:[%s209_s29 + $0x38] sm:$0xff] %v239_v7 }
  0x37 PF: > { %p1814_p3 = scmp.ne.s32.totalorder %s1810_s25, 0 }
  0x38   : > { %s267_s23 = sand.u32 (!%p1814_p3), 1, %s1549_s15   ;;  %p1815_p7 = scmp.ne.s32.totalorder (!%p1814_p3), %s1811_s26, 0 }
  0x39   : > { %264 = sbr.rel (%p1814_p3) target bundleno = 434 (0x1b2), region = 55  ;;  %s1199_s30 = sshll.u32 (!%p1814_p3), %s267_s23, 6 }
  0x3a   : > { %s1684_s5 = scalar_lea.vmem (!%p1814_p3), [#allocation3], %s1199_s30 }
  0x3e   : > { %1540 = dma.done.wait (%p1815_p7), [#allocation5], 32  }
  0x3f   : > { %1542 = vsyncadd (%p1815_p7), [#allocation5], 4294967264 }
  0x40   : > { %1544 = dma.done.wait (%p1815_p7), [#allocation7], 32  }
  0x41   : > { %1546 = vsyncadd (%p1815_p7), [#allocation7], 4294967264  ;;  %s1202_s25 = sshll.u32 %s1557_s17, 6  ;;  %p1205_p10 = scmp.ne.s32.totalorder %s1557_s17, 0 }
  0x42   : > { %p313_p8 = scmp.lt.s32.totalorder %s1202_s25, 255 }
  0x43   : > { %334 = sbr.rel (%p1205_p10) target bundleno = 77 (0x4d), region = 71 }
  0x44   : > { %s1823_s25 = smov (!%p313_p8, %s1202_s25), 255 }
  0x45   : > { %s1288_s6 = sshll.u32 %s1823_s25, 3 }
  0x46   : > { %s1698_s8 = scalar_lea.vmem %s1802_s1, %s1288_s6 }
  0x48   : > { %v1569_v8 = vmov 0.0  }
  0x49   : > { %335 = vst [vmem:[#allocation2 + $0x30] sm:$0xff] %v1569_v8  ;;  %336 = vst [vmem:[#allocation2] sm:$0xff] %v1569_v8 }
  0x4a   : > { %337 = vst [vmem:[#allocation2 + $0x18] sm:$0xff] %v1569_v8  ;;  %338 = vst [vmem:[#allocation2 + $0x10] sm:$0xff] %v1569_v8 }
  0x4b   : > { %339 = vst [vmem:[#allocation2 + $0x8] sm:$0xff] %v1569_v8  ;;  %340 = vst [vmem:[#allocation2 + $0x20] sm:$0xff] %v1569_v8 }
  0x4c   : > { %341 = vst [vmem:[#allocation2 + $0x28] sm:$0xff] %v1569_v8  ;;  %342 = vst [vmem:[#allocation2 + $0x38] sm:$0xff] %v1569_v8 }
  0x4d PF: > { %v1355_v9 = vld [vmem:[%s1698_s8 + $0x74] ss:$8 sps:$4 sm:$0xff]   ;;  %v1359_v11 = vld [vmem:[%s1698_s8 + $0x70] ss:$8 sps:$4 sm:$0xff]   ;;  %v1361_v13 = vld [vmem:[%s1698_s8 + $0x64] ss:$8 sps:$4 sm:$0xff]  }
  0x4e   : > { %v1357_v10 = vld [vmem:[%s1698_s8 + $0x174] ss:$8 sps:$4 sm:$0xff]   ;;  %783 = vmatprep.subr.bf16.mxu0 %v1355_v9  ;;  %v1360_v12 = vld [vmem:[%s1698_s8 + $0x170] ss:$8 sps:$4 sm:$0xff]   ;;  %v1363_v14 = vld [vmem:[%s1698_s8 + $0x164] ss:$8 sps:$4 sm:$0xff]  }
  0x4f   : > { %836 = vmatprep.subr.bf16.mxu1 %v1357_v10  ;;  %784 = vmatpush1.bf16.msra.mxu0 %v1359_v11  ;;  %v1365_v15 = vld [vmem:[%s1698_s8 + $0x60] ss:$8 sps:$4 sm:$0xff]   ;;  %v1367_v17 = vld [vmem:[%s1698_s8 + $0x54] ss:$8 sps:$4 sm:$0xff]   ;;  %v1371_v19 = vld [vmem:[%s1698_s8 + $0x50] ss:$8 sps:$4 sm:$0xff]  }
  0x50   : > { %837 = vmatpush1.bf16.msra.mxu1 %v1360_v12  ;;  %785 = vmatprep.subr.bf16.mxu0 %v1361_v13  ;;  %v1366_v16 = vld [vmem:[%s1698_s8 + $0x160] ss:$8 sps:$4 sm:$0xff]   ;;  %v1369_v18 = vld [vmem:[%s1698_s8 + $0x154] ss:$8 sps:$4 sm:$0xff]   ;;  %v1372_v20 = vld [vmem:[%s1698_s8 + $0x150] ss:$8 sps:$4 sm:$0xff]  }
  0x51   : > { %838 = vmatprep.subr.bf16.mxu1 %v1363_v14  ;;  %v1373_v21 = vld [vmem:[%s1698_s8 + $0x44] ss:$8 sps:$4 sm:$0xff]   ;;  %v1377_v23 = vld [vmem:[%s1698_s8 + $0x40] ss:$8 sps:$4 sm:$0xff]   ;;  %v1379_v25 = vld [vmem:[%s1698_s8 + $0x34] ss:$8 sps:$4 sm:$0xff]  }
  0x52   : > { %v1375_v22 = vld [vmem:[%s1698_s8 + $0x144] ss:$8 sps:$4 sm:$0xff]   ;;  %v1378_v24 = vld [vmem:[%s1698_s8 + $0x140] ss:$8 sps:$4 sm:$0xff]   ;;  %v1381_v26 = vld [vmem:[%s1698_s8 + $0x134] ss:$8 sps:$4 sm:$0xff]  }
  0x53   : > { %786 = vmatpush1.bf16.msra.mxu0 %v1365_v15  ;;  %v1383_v27 = vld [vmem:[%s1698_s8 + $0x30] ss:$8 sps:$4 sm:$0xff]   ;;  %v1385_v29 = vld [vmem:[%s1698_s8 + $0x24] ss:$8 sps:$4 sm:$0xff]   ;;  %v1389_v31 = vld [vmem:[%s1698_s8 + $0x20] ss:$8 sps:$4 sm:$0xff]  }
  0x54   : > { %839 = vmatpush1.bf16.msra.mxu1 %v1366_v16  ;;  %787 = vmatprep.subr.bf16.mxu0 %v1367_v17  ;;  %v1384_v28 = vld [vmem:[%s1698_s8 + $0x130] ss:$8 sps:$4 sm:$0xff]   ;;  %v1387_v30 = vld [vmem:[%s1698_s8 + $0x124] ss:$8 sps:$4 sm:$0xff]   ;;  %v1390_v32 = vld [vmem:[%s1698_s8 + $0x120] ss:$8 sps:$4 sm:$0xff]  }
  0x55   : > { %840 = vmatprep.subr.bf16.mxu1 %v1369_v18  ;;  %v1391_v33 = vld [vmem:[%s1698_s8 + $0x14] ss:$8 sps:$4 sm:$0xff]   ;;  %v1395_v35 = vld [vmem:[%s1698_s8 + $0x10] ss:$8 sps:$4 sm:$0xff]   ;;  %v1397_v37 = vld [vmem:[%s1698_s8 + $0x4] ss:$8 sps:$4 sm:$0xff]  }
  0x56   : > { %v1393_v34 = vld [vmem:[%s1698_s8 + $0x114] ss:$8 sps:$4 sm:$0xff]   ;;  %v1396_v36 = vld [vmem:[%s1698_s8 + $0x110] ss:$8 sps:$4 sm:$0xff]   ;;  %v1399_v38 = vld [vmem:[%s1698_s8 + $0x104] ss:$8 sps:$4 sm:$0xff]  }
  0x57   : > { %788 = vmatpush1.bf16.msra.mxu0 %v1371_v19  ;;  %v1401_v39 = vld [vmem:[%s1698_s8] ss:$8 sps:$4 sm:$0xff]   ;;  %v1403_v41 = vld [vmem:[%s1698_s8 + $0xf4] ss:$8 sps:$4 sm:$0xff]   ;;  %v1407_v43 = vld [vmem:[%s1698_s8 + $0xf0] ss:$8 sps:$4 sm:$0xff]  }
  0x58   : > { %841 = vmatpush1.bf16.msra.mxu1 %v1372_v20  ;;  %789 = vmatprep.subr.bf16.mxu0 %v1373_v21  ;;  %v1402_v40 = vld [vmem:[%s1698_s8 + $0x100] ss:$8 sps:$4 sm:$0xff]   ;;  %v1405_v42 = vld [vmem:[%s1698_s8 + $0x1f4] ss:$8 sps:$4 sm:$0xff]   ;;  %v1408_v44 = vld [vmem:[%s1698_s8 + $0x1f0] ss:$8 sps:$4 sm:$0xff]  }
  0x59   : > { %842 = vmatprep.subr.bf16.mxu1 %v1375_v22  ;;  %v1409_v45 = vld [vmem:[%s1698_s8 + $0xe4] ss:$8 sps:$4 sm:$0xff]   ;;  %v1413_v47 = vld [vmem:[%s1698_s8 + $0xe0] ss:$8 sps:$4 sm:$0xff]   ;;  %v1415_v49 = vld [vmem:[%s1698_s8 + $0xd4] ss:$8 sps:$4 sm:$0xff]  }
  0x5a   : > { %v1411_v46 = vld [vmem:[%s1698_s8 + $0x1e4] ss:$8 sps:$4 sm:$0xff]   ;;  %v1414_v48 = vld [vmem:[%s1698_s8 + $0x1e0] ss:$8 sps:$4 sm:$0xff]   ;;  %v1417_v50 = vld [vmem:[%s1698_s8 + $0x1d4] ss:$8 sps:$4 sm:$0xff]  }
  0x5b   : > { %790 = vmatpush1.bf16.msra.mxu0 %v1377_v23  ;;  %v1419_v51 = vld [vmem:[%s1698_s8 + $0xd0] ss:$8 sps:$4 sm:$0xff]   ;;  %v1421_v53 = vld [vmem:[%s1698_s8 + $0xc4] ss:$8 sps:$4 sm:$0xff]   ;;  %v1425_v55 = vld [vmem:[%s1698_s8 + $0xc0] ss:$8 sps:$4 sm:$0xff]  }
  0x5c   : > { %843 = vmatpush1.bf16.msra.mxu1 %v1378_v24  ;;  %791 = vmatprep.subr.bf16.mxu0 %v1379_v25  ;;  %v1420_v52 = vld [vmem:[%s1698_s8 + $0x1d0] ss:$8 sps:$4 sm:$0xff]   ;;  %v1423_v54 = vld [vmem:[%s1698_s8 + $0x1c4] ss:$8 sps:$4 sm:$0xff]   ;;  %v1426_v56 = vld [vmem:[%s1698_s8 + $0x1c0] ss:$8 sps:$4 sm:$0xff]  }
  0x5d   : > { %844 = vmatprep.subr.bf16.mxu1 %v1381_v26  ;;  %v1427_v57 = vld [vmem:[%s1698_s8 + $0xb4] ss:$8 sps:$4 sm:$0xff]   ;;  %v1431_v61 = vld [vmem:[%s1698_s8 + $0xb0] ss:$8 sps:$4 sm:$0xff]   ;;  %v1433_v63 = vld [vmem:[%s1698_s8 + $0xa4] ss:$8 sps:$4 sm:$0xff]  }
  0x5e   : > { %v1453_v58 = vld [vmem:[%s1684_s5 + $0x4] ss:$16 sps:$4 sm:$0xff]   ;;  %v1456_v60 = vld [vmem:[%s1684_s5 + $0xc] ss:$16 sps:$4 sm:$0xff]   ;;  %v1432_v62 = vld [vmem:[%s1698_s8 + $0x1b0] ss:$8 sps:$4 sm:$0xff]  }
  0x5f   : > { %792 = vmatpush1.bf16.msra.mxu0 %v1383_v27  ;;  %v1429_v59 = vld [vmem:[%s1698_s8 + $0x1b4] ss:$8 sps:$4 sm:$0xff]   ;;  %815 = vmatprep.mubr.bf16.mxu0 %v1453_v58  ;;  %v1435_v0 = vld [vmem:[%s1698_s8 + $0x1a4] ss:$8 sps:$4 sm:$0xff]   ;;  %v1437_v1 = vld [vmem:[%s1698_s8 + $0xa0] ss:$8 sps:$4 sm:$0xff]  }
  0x60   : > { %845 = vmatpush1.bf16.msra.mxu1 %v1384_v28  ;;  %793 = vmatprep.subr.bf16.mxu0 %v1385_v29  ;;  %v1438_v2 = vld [vmem:[%s1698_s8 + $0x1a0] ss:$8 sps:$4 sm:$0xff]   ;;  %v1439_v3 = vld [vmem:[%s1698_s8 + $0x94] ss:$8 sps:$4 sm:$0xff]   ;;  %v1443_v5 = vld [vmem:[%s1698_s8 + $0x90] ss:$8 sps:$4 sm:$0xff]  }
  0x61   : > { %846 = vmatprep.subr.bf16.mxu1 %v1387_v30  ;;  %868 = vmatprep.mubr.bf16.mxu1 %v1456_v60  ;;  %v1441_v4 = vld [vmem:[%s1698_s8 + $0x194] ss:$8 sps:$4 sm:$0xff]   ;;  %v1444_v6 = vld [vmem:[%s1698_s8 + $0x190] ss:$8 sps:$4 sm:$0xff]   ;;  %v1445_v7 = vld [vmem:[%s1698_s8 + $0x84] ss:$8 sps:$4 sm:$0xff]  }
  0x62   : > { %v1447_v8 = vld [vmem:[%s1698_s8 + $0x184] ss:$8 sps:$4 sm:$0xff]   ;;  %v1449_v9 = vld [vmem:[%s1698_s8 + $0x80] ss:$8 sps:$4 sm:$0xff]   ;;  %v343_v18 = vld [vmem:[#allocation2 + $0x30] sm:$0xff]  ;;  %p1278_p11 = scmp.ne.s32.totalorder %s1557_s17, 3 }
  0x63   : > { %794 = vmatpush1.bf16.msra.mxu0 %v1389_v31  ;;  %v1450_v10 = vld [vmem:[%s1698_s8 + $0x180] ss:$8 sps:$4 sm:$0xff]   ;;  %v1457_v13 = vld [vmem:[%s1684_s5 + $0x24] ss:$16 sps:$4 sm:$0xff]   ;;  %v1459_v14 = vld [vmem:[%s1684_s5 + $0x2c] ss:$16 sps:$4 sm:$0xff]  }
  0x64   : > { %847 = vmatpush1.bf16.msra.mxu1 %v1390_v32  ;;  %795 = vmatprep.subr.bf16.mxu0 %v1391_v33  ;;  %v1451_v11 = vld [vmem:[%s1684_s5] ss:$16 sps:$4 sm:$0xff]   ;;  %v1454_v12 = vld [vmem:[%s1684_s5 + $0x8] ss:$16 sps:$4 sm:$0xff]  }
  0x65   : > { %848 = vmatprep.subr.bf16.mxu1 %v1393_v34  ;;  %v1461_v15 = vld [vmem:[%s1684_s5 + $0x20] ss:$16 sps:$4 sm:$0xff]   ;;  %v1462_v16 = vld [vmem:[%s1684_s5 + $0x28] ss:$16 sps:$4 sm:$0xff]  }
  0x66   : > { %v344_v22 = vld [vmem:[#allocation2] sm:$0xff]  ;;  %v345_v27 = vld [vmem:[#allocation2 + $0x18] sm:$0xff]  ;;  %v346_v32 = vld [vmem:[#allocation2 + $0x10] sm:$0xff] }
  0x67   : > { %796 = vmatpush1.bf16.msra.mxu0 %v1395_v35 }
  0x68   : > { %849 = vmatpush1.bf16.msra.mxu1 %v1396_v36  ;;  %797 = vmatprep.subr.bf16.mxu0 %v1397_v37  ;;  %v347_v37 = vld [vmem:[#allocation2 + $0x8] sm:$0xff] }
  0x69   : > { %850 = vmatprep.subr.bf16.mxu1 %v1399_v38 }
  0x6b   : > { %798 = vmatpush1.bf16.msra.mxu0 %v1401_v39 }
  0x6c   : > { %851 = vmatpush1.bf16.msra.mxu1 %v1402_v40  ;;  %799 = vmatprep.subr.bf16.mxu0 %v1403_v41 }
  0x6d   : > { %852 = vmatprep.subr.bf16.mxu1 %v1405_v42  ;;  %v348_v42 = vld [vmem:[#allocation2 + $0x20] sm:$0xff] }
  0x6f   : > { %800 = vmatpush2.bf16.msra.mxu0 %v1407_v43 }
  0x70   : > { %853 = vmatpush2.bf16.msra.mxu1 %v1408_v44  ;;  %801 = vmatprep.subr.bf16.mxu0 %v1409_v45 }
  0x71   : > { %854 = vmatprep.subr.bf16.mxu1 %v1411_v46 }
  0x73   : > { %802 = vmatpush2.bf16.msra.mxu0 %v1413_v47  ;;  %v349_v47 = vld [vmem:[#allocation2 + $0x28] sm:$0xff] }
  0x74   : > { %855 = vmatpush2.bf16.msra.mxu1 %v1414_v48  ;;  %803 = vmatprep.subr.bf16.mxu0 %v1415_v49 }
  0x75   : > { %856 = vmatprep.subr.bf16.mxu1 %v1417_v50 }
  0x77   : > { %804 = vmatpush2.bf16.msra.mxu0 %v1419_v51 }
  0x78   : > { %857 = vmatpush2.bf16.msra.mxu1 %v1420_v52  ;;  %805 = vmatprep.subr.bf16.mxu0 %v1421_v53  ;;  %v350_v52 = vld [vmem:[#allocation2 + $0x38] sm:$0xff] }
  0x79   : > { %858 = vmatprep.subr.bf16.mxu1 %v1423_v54 }
  0x7b   : > { %806 = vmatpush2.bf16.msra.mxu0 %v1425_v55 }
  0x7c   : > { %859 = vmatpush2.bf16.msra.mxu1 %v1426_v56  ;;  %807 = vmatprep.subr.bf16.mxu0 %v1427_v57 }
  0x7d   : > { %860 = vmatprep.subr.bf16.mxu1 %v1429_v59 }
  0x7f   : > { %808 = vmatpush2.bf16.msra.mxu0 %v1431_v61 }
  0x80   : > { %861 = vmatpush2.bf16.msra.mxu1 %v1432_v62  ;;  %809 = vmatprep.subr.bf16.mxu0 %v1433_v63 }
  0x81   : > { %862 = vmatprep.subr.bf16.mxu1 %v1435_v0 }
  0x83   : > { %810 = vmatpush2.bf16.msra.mxu0 %v1437_v1 }
  0x84   : > { %863 = vmatpush2.bf16.msra.mxu1 %v1438_v2  ;;  %811 = vmatprep.subr.bf16.mxu0 %v1439_v3 }
  0x85   : > { %864 = vmatprep.subr.bf16.mxu1 %v1441_v4 }
  0x87   : > { %812 = vmatpush2.bf16.msra.mxu0 %v1443_v5 }
  0x88   : > { %865 = vmatpush2.bf16.msra.mxu1 %v1444_v6  ;;  %813 = vmatprep.subr.bf16.mxu0 %v1445_v7 }
  0x89   : > { %866 = vmatprep.subr.bf16.mxu1 %v1447_v8 }
  0x8b   : > { %814 = vmatpush2.bf16.msra.mxu0 %v1449_v9 }
  0x8c   : > { %867 = vmatpush2.bf16.msra.mxu1 %v1450_v10 }
  0x8e   : > { %816 = vmatmul.mubr.bf16.vlgmr.msra.gmra.mxu0 %v1451_v11 }
  0x8f   : > { %869 = vmatmul.mubr.bf16.vlgmr.msra.gmra.mxu1 %v1454_v12  ;;  %825 = vmatprep.mubr.bf16.mxu0 %v1457_v13 }
  0x90   : > { %878 = vmatprep.mubr.bf16.mxu1 %v1459_v14 }
  0x96   : > { %826 = vmatmul.mubr.bf16.gmra.mxu0 %v1461_v15 }
  0x97   : > { %879 = vmatmul.mubr.bf16.gmra.mxu1 %v1462_v16 }
 0x14e   : > { %v817_v17 = vpop.f32.mrf.mxu0 }
 0x14f   : > { %v870_v19 = vpop.f32.mrf.mxu1 }
 0x150   : > { %v871_v20 = vadd.f32 %v870_v19, %v817_v17  ;;  %v819_v21 = vpop.f32.mrf.mxu0 }
 0x151   : > { %v872_v23 = vpop.f32.mrf.mxu1 }
 0x152   : > { %v889_v24 = vadd.f32 %v871_v20, %v343_v18  ;;  %v873_v25 = vadd.f32 %v872_v23, %v819_v21  ;;  %v821_v26 = vpop.f32.mrf.mxu0 }
 0x153   : > { %v874_v28 = vpop.f32.mrf.mxu1 }
 0x154   : > { %897 = vst [vmem:[#allocation2 + $0x30] sm:$0xff] %v889_v24  ;;  %v890_v29 = vadd.f32 %v873_v25, %v344_v22  ;;  %v875_v30 = vadd.f32 %v874_v28, %v821_v26  ;;  %v823_v31 = vpop.f32.mrf.mxu0 }
 0x155   : > { %v876_v33 = vpop.f32.mrf.mxu1 }
 0x156   : > { %898 = vst [vmem:[#allocation2] sm:$0xff] %v890_v29  ;;  %v891_v34 = vadd.f32 %v875_v30, %v345_v27  ;;  %v877_v35 = vadd.f32 %v876_v33, %v823_v31  ;;  %v827_v36 = vpop.f32.mrf.mxu0 }
 0x157   : > { %v880_v38 = vpop.f32.mrf.mxu1 }
 0x158   : > { %899 = vst [vmem:[#allocation2 + $0x18] sm:$0xff] %v891_v34  ;;  %v892_v39 = vadd.f32 %v877_v35, %v346_v32  ;;  %v881_v40 = vadd.f32 %v880_v38, %v827_v36  ;;  %v829_v41 = vpop.f32.mrf.mxu0 }
 0x159   : > { %v882_v43 = vpop.f32.mrf.mxu1 }
 0x15a   : > { %900 = vst [vmem:[#allocation2 + $0x10] sm:$0xff] %v892_v39  ;;  %v893_v44 = vadd.f32 %v881_v40, %v347_v37  ;;  %v883_v45 = vadd.f32 %v882_v43, %v829_v41  ;;  %v831_v46 = vpop.f32.mrf.mxu0 }
 0x15b   : > { %v884_v48 = vpop.f32.mrf.mxu1 }
 0x15c   : > { %901 = vst [vmem:[#allocation2 + $0x8] sm:$0xff] %v893_v44  ;;  %v894_v49 = vadd.f32 %v883_v45, %v348_v42  ;;  %v885_v50 = vadd.f32 %v884_v48, %v831_v46  ;;  %v833_v51 = vpop.f32.mrf.mxu0 }
 0x15d   : > { %v886_v53 = vpop.f32.mrf.mxu1 }
 0x15e   : > { %902 = vst [vmem:[#allocation2 + $0x20] sm:$0xff] %v894_v49  ;;  %v895_v54 = vadd.f32 %v885_v50, %v349_v47  ;;  %v887_v55 = vadd.f32 %v886_v53, %v833_v51  ;;  %908 = sbr.rel (%p1278_p11) target bundleno = 434 (0x1b2), region = 75 }
 0x160   : > { %903 = vst [vmem:[#allocation2 + $0x28] sm:$0xff] %v895_v54  ;;  %v896_v56 = vadd.f32 %v887_v55, %v350_v52 }
 0x162   : > { %904 = vst [vmem:[#allocation2 + $0x38] sm:$0xff] %v896_v56 }
 0x163   : > { %v909_v57 = vld [vmem:[#allocation2 + $0x30] sm:$0xff]  ;;  %v910_v58 = vld [vmem:[#allocation2] sm:$0xff]  ;;  %v911_v59 = vld [vmem:[#allocation2 + $0x18] sm:$0xff] }
 0x164   : > { %v912_v60 = vld [vmem:[#allocation2 + $0x10] sm:$0xff]  ;;  %v913_v61 = vld [vmem:[#allocation2 + $0x8] sm:$0xff]  ;;  %v917_v63 = vadd.f32 %v911_v59, %v909_v57 }
 0x165   : > { %v914_v62 = vld [vmem:[#allocation2 + $0x20] sm:$0xff]  ;;  %v926_v1 = vadd.f32 %v912_v60, %v910_v58 }
 0x166   : > { %v918_v3 = vadd.f32 %v917_v63, %v913_v61 }
 0x167   : > { %v915_v0 = vld [vmem:[#allocation2 + $0x28] sm:$0xff]  ;;  %v927_v4 = vadd.f32 %v926_v1, %v914_v62 }
 0x168   : > { %v919_v5 = vadd.f32 %v918_v3, %v915_v0 }
 0x169   : > { %v916_v2 = vld [vmem:[#allocation2 + $0x38] sm:$0xff] }
 0x16a   : > { %v928_v6 = vadd.f32 %v927_v4, %v916_v2  ;;  %v920_v7 = vrot.slane %v919_v5, 4 }
 0x16c   : > { %v929_v8 = vrot.slane %v928_v6, 4  ;;  %v921_v9 = vadd.f32 %v920_v7, %v919_v5 }
 0x16e   : > { %v930_v10 = vadd.f32 %v929_v8, %v928_v6  ;;  %v922_v11 = vrot.slane %v921_v9, 2 }
 0x170   : > { %v931_v12 = vrot.slane %v930_v10, 2  ;;  %v923_v13 = vadd.f32 %v922_v11, %v921_v9 }
 0x172   : > { %v932_v14 = vadd.f32 %v931_v12, %v930_v10  ;;  %v924_v15 = vrot.slane %v923_v13, 1 }
 0x174   : > { %v933_v16 = vrot.slane %v932_v14, 1  ;;  %v925_v17 = vadd.f32 %v924_v15, %v923_v13 }
 0x176   : > { %v934_v18 = vadd.f32 %v933_v16, %v932_v14  ;;  %v936_v19 = vmul.f32 0.03125, %v925_v17 }
 0x178   : > { %v937_v20 = vmul.f32 0.03125, %v934_v18  ;;  %v938_v21 = vsub.f32 %v909_v57, %v936_v19  ;;  %v940_v22 = vsub.f32 %v911_v59, %v936_v19  ;;  %v942_v23 = vsub.f32 %v913_v61, %v936_v19 }
 0x179   : > { %v944_v24 = vsub.f32 %v915_v0, %v936_v19  ;;  %v988_v59 = vlaneseq  ;;  %v1006_v0 = vld [vmem:[#allocation6] sm:$0x3] }
 0x17a   : > { %v939_v25 = vsub.f32 %v910_v58, %v937_v20  ;;  %v941_v26 = vsub.f32 %v912_v60, %v937_v20  ;;  %v943_v27 = vsub.f32 %v914_v62, %v937_v20  ;;  %v945_v28 = vsub.f32 %v916_v2, %v937_v20  ;;  %v986_v62 = vld [vmem:[#allocation4] sm:$0x3] }
 0x17b   : > { %v946_v29 = vmul.f32 %v938_v21, %v938_v21  ;;  %v948_v30 = vmul.f32 %v940_v22, %v940_v22  ;;  %v950_v31 = vmul.f32 %v942_v23, %v942_v23  ;;  %v952_v35 = vmul.f32 %v944_v24, %v944_v24 }
 0x17c   : > { %v947_v32 = vmul.f32 %v939_v25, %v939_v25  ;;  %v949_v33 = vmul.f32 %v941_v26, %v941_v26  ;;  %v951_v34 = vmul.f32 %v943_v27, %v943_v27  ;;  %v953_v37 = vmul.f32 %v945_v28, %v945_v28 }
 0x17d   : > { %v954_v36 = vadd.f32 %v948_v30, %v946_v29  ;;  %v989_v60 = vshrl.u32 %v988_v59, 7 }
 0x17e   : > { %v963_v38 = vadd.f32 %v949_v33, %v947_v32 }
 0x17f   : > { %v955_v39 = vadd.f32 %v954_v36, %v950_v31  ;;  %v990_v61 = vsub.s32 0, %v989_v60  ;;  %v994_v63 = vsub.s32 1, %v989_v60 }
 0x180   : > { %v964_v40 = vadd.f32 %v963_v38, %v951_v34 }
 0x181   : > { %v956_v41 = vadd.f32 %v955_v39, %v952_v35  ;;  %v991_v1 = vrot.slane %v986_v62, %v990_v61  ;;  %v995_v3 = vrot.slane %v986_v62, %v994_v63  ;;  %v1011_v4 = vrot.slane %v1006_v0, %v990_v61 }
 0x182   : > { %v965_v42 = vadd.f32 %v964_v40, %v953_v37  ;;  %v1015_v5 = vrot.slane %v1006_v0, %v994_v63 }
 0x183   : > { %v957_v43 = vrot.slane %v956_v41, 4 }
 0x184   : > { %v966_v44 = vrot.slane %v965_v42, 4 }
 0x185   : > { %v958_v45 = vadd.f32 %v957_v43, %v956_v41 }
 0x186   : > { %v967_v46 = vadd.f32 %v966_v44, %v965_v42 }
 0x187   : > { %v959_v47 = vrot.slane %v958_v45, 2 }
 0x188   : > { %v968_v48 = vrot.slane %v967_v46, 2 }
 0x189   : > { %v960_v49 = vadd.f32 %v959_v47, %v958_v45 }
 0x18a   : > { %v969_v50 = vadd.f32 %v968_v48, %v967_v46 }
 0x18b   : > { %v961_v51 = vrot.slane %v960_v49, 1 }
 0x18c   : > { %v970_v52 = vrot.slane %v969_v50, 1 }
 0x18d   : > { %v962_v53 = vadd.f32 %v961_v51, %v960_v49 }
 0x18e   : > { %v971_v54 = vadd.f32 %v970_v52, %v969_v50 }
 0x18f   : > { %v972_v55 = vmul.f32 0.03125, %v962_v53 }
 0x190   : > { %v973_v56 = vmul.f32 0.03125, %v971_v54 }
 0x191   : > { %v974_v57 = vadd.f32 1e-05, %v972_v55 }
 0x192   : > { %v975_v58 = vadd.f32 1e-05, %v973_v56 }
 0x193   : > { %1463 = vrsqrt.f32 %v974_v57 }
 0x194   : > { %1465 = vrsqrt.f32 %v975_v58 }
 0x1a0   : > { %v1464_v2 = vpop.eup %1463 }
 0x1a1   : > { %v1466_v6 = vpop.eup %1465  ;;  %v978_v7 = vmul.f32 %v1464_v2, %v938_v21  ;;  %v980_v8 = vmul.f32 %v1464_v2, %v940_v22  ;;  %v982_v9 = vmul.f32 %v1464_v2, %v942_v23  ;;  %v984_v10 = vmul.f32 %v1464_v2, %v944_v24 }
 0x1a2   : > { %v979_v11 = vmul.f32 %v1466_v6, %v939_v25  ;;  %v981_v12 = vmul.f32 %v1466_v6, %v941_v26  ;;  %v983_v13 = vmul.f32 %v1466_v6, %v943_v27  ;;  %v985_v14 = vmul.f32 %v1466_v6, %v945_v28 }
 0x1a3   : > { %v998_v15 = vmul.f32 %v991_v1, %v978_v7  ;;  %v1000_v16 = vmul.f32 %v991_v1, %v980_v8  ;;  %v1002_v17 = vmul.f32 %v991_v1, %v982_v9  ;;  %v1004_v18 = vmul.f32 %v991_v1, %v984_v10 }
 0x1a4   : > { %v999_v19 = vmul.f32 %v995_v3, %v979_v11  ;;  %v1001_v20 = vmul.f32 %v995_v3, %v981_v12  ;;  %v1003_v29 = vmul.f32 %v995_v3, %v983_v13  ;;  %v1005_v30 = vmul.f32 %v995_v3, %v985_v14 }
 0x1a5   : > { %v1018_v31 = vadd.f32 %v1011_v4, %v998_v15  ;;  %v1020_v32 = vadd.f32 %v1011_v4, %v1000_v16  ;;  %v1022_v33 = vadd.f32 %v1011_v4, %v1002_v17  ;;  %v1024_v34 = vadd.f32 %v1011_v4, %v1004_v18 }
 0x1a6   : > { %v1019_v21 = vadd.f32 %v1015_v5, %v999_v19  ;;  %v1021_v22 = vadd.f32 %v1015_v5, %v1001_v20  ;;  %v1023_v23 = vadd.f32 %v1015_v5, %v1003_v29  ;;  %v1025_v24 = vadd.f32 %v1015_v5, %v1005_v30 }
 0x1a7   : > { %vm1026_vm0 = vcmp.ge.f32.partialorder %v1018_v31, 0.0  ;;  %v1034_v25 = vmul.f32 0.3, %v1018_v31  ;;  %vm1028_vm1 = vcmp.ge.f32.partialorder %v1020_v32, 0.0  ;;  %v1036_v26 = vmul.f32 0.3, %v1020_v32 }
 0x1a8   : > { %vm1027_vm2 = vcmp.ge.f32.partialorder %v1019_v21, 0.0  ;;  %v1035_v27 = vmul.f32 0.3, %v1019_v21  ;;  %vm1029_vm3 = vcmp.ge.f32.partialorder %v1021_v22, 0.0  ;;  %v1037_v28 = vmul.f32 0.3, %v1021_v22 }
 0x1a9   : > { %v1042_v35 = vsel %vm1026_vm0, %v1018_v31, %v1034_v25  ;;  %v1044_v36 = vsel %vm1028_vm1, %v1020_v32, %v1036_v26  ;;  %vm1030_vm4 = vcmp.ge.f32.partialorder %v1022_v33, 0.0  ;;  %vm1031_vm5 = vcmp.ge.f32.partialorder %v1023_v23, 0.0 }
 0x1aa   : > { %v1043_v37 = vsel %vm1027_vm2, %v1019_v21, %v1035_v27  ;;  %v1045_v38 = vsel %vm1029_vm3, %v1021_v22, %v1037_v28  ;;  %v1038_v39 = vmul.f32 0.3, %v1022_v33  ;;  %v1039_v40 = vmul.f32 0.3, %v1023_v23 }
 0x1ab   : > { %v1289_v41 = vpack.c.bf16 %v1043_v37, %v1042_v35  ;;  %v1290_v42 = vpack.c.bf16 %v1045_v38, %v1044_v36  ;;  %vm1032_vm6 = vcmp.ge.f32.partialorder %v1024_v34, 0.0  ;;  %vm1033_vm7 = vcmp.ge.f32.partialorder %v1025_v24, 0.0 }
 0x1ac   : > { %v1046_v43 = vsel %vm1030_vm4, %v1022_v33, %v1038_v39  ;;  %v1047_v44 = vsel %vm1031_vm5, %v1023_v23, %v1039_v40  ;;  %v1040_v45 = vmul.f32 0.3, %v1024_v34  ;;  %v1041_v46 = vmul.f32 0.3, %v1025_v24 }
 0x1ad   : > { %1074 = vst [vmem:[%s1805_s4] sm:$0xff] %v1289_v41  ;;  %1075 = vst [vmem:[%s1805_s4 + $0x8] sm:$0xff] %v1290_v42  ;;  %v1291_v47 = vpack.c.bf16 %v1047_v44, %v1046_v43 }
 0x1ae   : > { %v1048_v48 = vsel %vm1032_vm6, %v1024_v34, %v1040_v45  ;;  %v1049_v49 = vsel %vm1033_vm7, %v1025_v24, %v1041_v46 }
 0x1af   : > { %1076 = vst [vmem:[%s1805_s4 + $0x10] sm:$0xff] %v1291_v47  ;;  %v1292_v50 = vpack.c.bf16 %v1049_v49, %v1048_v48 }
 0x1b1   : > { %1077 = vst [vmem:[%s1805_s4 + $0x18] sm:$0xff] %v1292_v50 }
 0x1b2 PF: > { %s16_s19 = sadd.s32 1, %s1565_s19   ;;  %s1816_s15 = smov %s1553_s16 }
 0x1b3   : > { %p13_p2 = scmp.ge.s32.totalorder %s16_s19, 6   ;;  %s1817_s16 = smov %s1645_s27 }
 0x1b4   : > { %s1818_s17 = smov %s1561_s18  ;;  %s1819_s18 = smov %s1821_s21 }
 0x1b5   :  { %15 = sbr.rel (!%p13_p2) target bundleno = 4 (0x4), region = 116 }
 0x1ba   :  { %1100 = vsyncpa [#allocation5], 1 }
 0x1bb   :  { %1102 = vsyncpa [#allocation5 + $0x1], 1 }
 0x1bc   :  { %1103 = vsyncpa [#allocation7], 1 }

// kernel: discriminator_forward.7
= control target key start
LH: loop header
LB: loop body
LE: loop exit
PB: predicated region body
PF: predicated region fallthrough
CT: control target
= control target key end

     0   :  { %s1590_s15 = smov 0   ;;  %s1592_s16 = smov 0   ;;  %s1910_s0 = inlined_call_operand.vmem [shape: bf16[8,4096], index: 0, kind: input, shape index: {}]   ;;  %s1911_s1 = inlined_call_operand.vmem [shape: bf16[4096,512], index: 1, kind: input, shape index: {}]   ;;  %s1912_s2 = inlined_call_operand.vmem [shape: f32[1,512], index: 2, kind: input, shape index: {}]   ;;  %s1913_s3 = inlined_call_operand.vmem [shape: f32[1,512], index: 3, kind: input, shape index: {}]   ;;  %s1914_s4 = inlined_call_operand.vmem [shape: bf16[8,512], index: 4, kind: output, shape index: {}]  }
   0x1   :  { %s1594_s17 = smov 0   ;;  %s1596_s18 = smov 0  }
   0x2   :  { %s1598_s19 = smov 0   ;;  %s1600_s20 = smov 0  }
   0x3   :  { %s1602_s21 = smov 0  }
   0x4 LB: > { %s23_s22 = sadd.s32 1, %s1554_s19  ;;  %s26_s23 = sadd.s32 1, %s1558_s20  ;;  %s1562_s21 = sphi %s1602_s21, %s14_s21   ;;  %s1558_s20 = sphi %s1600_s20, %s1920_s20   ;;  %s1554_s19 = sphi %s1598_s19, %s1919_s19   ;;  %s1550_s18 = sphi %s1596_s18, %s1918_s18   ;;  %s1546_s17 = sphi %s1594_s17, %s1917_s17   ;;  %s1542_s16 = sphi %s1592_s16, %s1916_s16   ;;  %s1538_s15 = sphi %s1590_s15, %s1915_s15  }
   0x5   : > { %p24_p0 = scmp.ge.s32.totalorder %s23_s22, 8  ;;  %p68_p1 = scmp.ne.s32.totalorder %s1542_s16, %s1538_s15 }
   0x6   : > { %p69_p2 = scmp.eq.s32.totalorder %s1562_s21, 0  ;;  %s61_s27 = sadd.s32 1, %s1542_s16 }
   0x7   : > { %s1922_s22 = smov (%p24_p0, %s23_s22), 0  ;;  %s1924_s23 = smov (!%p24_p0, %s26_s23), %s1558_s20 }
   0x8   : > { %p70_p3 = por %p69_p2, %p68_p1  ;;  %p28_p4 = scmp.ge.s32.totalorder %s1924_s23, 2 }
   0x9   : > { %s56_s24 = ssub.s32 %s1554_s19, %s1922_s22  ;;  %p1258_p6 = scmp.ge.s32.totalorder %s1562_s21, 16 }
   0xa   : > { %s1926_s23 = smov (%p28_p4, %s1924_s23), 0 }
   0xb   : > { %s57_s25 = ssub.s32 %s1558_s20, %s1926_s23  ;;  %172 = sbr.rel (%p1258_p6) target bundleno = 55 (0x37), region = 16 }
   0xc   : > { %s58_s26 = sor.u32 %s57_s25, %s56_s24 }
   0xd   : > { %p59_p5 = scmp.eq.s32.totalorder %s58_s26, 0 }
   0xf   : > { %s1641_s28 = scalar_select %p59_p5, %s1542_s16, %s61_s27  }
  0x10   : > { %184 = sbr.rel (!%p70_p3) target bundleno = 55 (0x37), region = 24  ;;  %s186_s29 = sand.u32 (%p70_p3), 1, %s1542_s16  }
  0x11   : > { %s1261_s30 = sshll.u32 (%p70_p3), %s1558_s20, 1  ;;  %s1259_s5 = sshll.u32 (%p70_p3), %s186_s29, 9 }
  0x12   : > { %s1345_s6 = sshll.u32 (%p70_p3), %s1554_s19, 8  ;;  %s1655_s12 = scalar_lea.vmem (%p70_p3), [#allocation3], %s1259_s5 }
  0x13   : > { %s192_s7 = sadd.s32 (%p70_p3), %s1345_s6, %s1261_s30 }
  0x14   : > { %s1263_s8 = sshll.u32 (%p70_p3), %s192_s7, 2 }
  0x15   : > { %s1650_s11 = scalar_lea.vmem %s1911_s1, %s1263_s8 }
  0x16   : > { %v349_v0 = vld [vmem:[%s1650_s11] sm:$0xff]  ;;  %v351_v1 = vld [vmem:[%s1650_s11 + $0x10] sm:$0xff] }
  0x17   : > { %v353_v2 = vld [vmem:[%s1650_s11 + $0x20] sm:$0xff]  ;;  %350 = vst [vmem:[%s1655_s12] sm:$0xff] %v349_v0  ;;  %352 = vst [vmem:[%s1655_s12 + $0x8] sm:$0xff] %v351_v1  ;;  %v355_v3 = vld [vmem:[%s1650_s11 + $0x30] sm:$0xff] }
  0x18   : > { %354 = vst [vmem:[%s1655_s12 + $0x10] sm:$0xff] %v353_v2  ;;  %v357_v4 = vld [vmem:[%s1650_s11 + $0x40] sm:$0xff]  ;;  %v359_v5 = vld [vmem:[%s1650_s11 + $0x50] sm:$0xff]  ;;  %356 = vst [vmem:[%s1655_s12 + $0x18] sm:$0xff] %v355_v3 }
  0x19   : > { %358 = vst [vmem:[%s1655_s12 + $0x20] sm:$0xff] %v357_v4  ;;  %360 = vst [vmem:[%s1655_s12 + $0x28] sm:$0xff] %v359_v5  ;;  %v361_v6 = vld [vmem:[%s1650_s11 + $0x60] sm:$0xff]  ;;  %v363_v7 = vld [vmem:[%s1650_s11 + $0x70] sm:$0xff] }
  0x1a   : > { %v365_v8 = vld [vmem:[%s1650_s11 + $0x80] sm:$0xff]  ;;  %362 = vst [vmem:[%s1655_s12 + $0x30] sm:$0xff] %v361_v6  ;;  %364 = vst [vmem:[%s1655_s12 + $0x38] sm:$0xff] %v363_v7  ;;  %v367_v9 = vld [vmem:[%s1650_s11 + $0x90] sm:$0xff] }
  0x1b   : > { %366 = vst [vmem:[%s1655_s12 + $0x40] sm:$0xff] %v365_v8  ;;  %v369_v10 = vld [vmem:[%s1650_s11 + $0xa0] sm:$0xff]  ;;  %v371_v11 = vld [vmem:[%s1650_s11 + $0xb0] sm:$0xff]  ;;  %368 = vst [vmem:[%s1655_s12 + $0x48] sm:$0xff] %v367_v9 }
  0x1c   : > { %370 = vst [vmem:[%s1655_s12 + $0x50] sm:$0xff] %v369_v10  ;;  %372 = vst [vmem:[%s1655_s12 + $0x58] sm:$0xff] %v371_v11  ;;  %v373_v12 = vld [vmem:[%s1650_s11 + $0xc0] sm:$0xff]  ;;  %v375_v13 = vld [vmem:[%s1650_s11 + $0xd0] sm:$0xff] }
  0x1d   : > { %v377_v14 = vld [vmem:[%s1650_s11 + $0xe0] sm:$0xff]  ;;  %374 = vst [vmem:[%s1655_s12 + $0x60] sm:$0xff] %v373_v12  ;;  %376 = vst [vmem:[%s1655_s12 + $0x68] sm:$0xff] %v375_v13  ;;  %v379_v15 = vld [vmem:[%s1650_s11 + $0xf0] sm:$0xff] }
  0x1e   : > { %378 = vst [vmem:[%s1655_s12 + $0x70] sm:$0xff] %v377_v14  ;;  %v381_v16 = vld [vmem:[%s1650_s11 + $0x100] sm:$0xff]  ;;  %v383_v17 = vld [vmem:[%s1650_s11 + $0x110] sm:$0xff]  ;;  %380 = vst [vmem:[%s1655_s12 + $0x78] sm:$0xff] %v379_v15 }
  0x1f   : > { %382 = vst [vmem:[%s1655_s12 + $0x80] sm:$0xff] %v381_v16  ;;  %384 = vst [vmem:[%s1655_s12 + $0x88] sm:$0xff] %v383_v17  ;;  %v385_v18 = vld [vmem:[%s1650_s11 + $0x120] sm:$0xff]  ;;  %v387_v19 = vld [vmem:[%s1650_s11 + $0x130] sm:$0xff] }
  0x20   : > { %v389_v20 = vld [vmem:[%s1650_s11 + $0x140] sm:$0xff]  ;;  %386 = vst [vmem:[%s1655_s12 + $0x90] sm:$0xff] %v385_v18  ;;  %388 = vst [vmem:[%s1655_s12 + $0x98] sm:$0xff] %v387_v19  ;;  %v391_v21 = vld [vmem:[%s1650_s11 + $0x150] sm:$0xff] }
  0x21   : > { %390 = vst [vmem:[%s1655_s12 + $0xa0] sm:$0xff] %v389_v20  ;;  %v393_v22 = vld [vmem:[%s1650_s11 + $0x160] sm:$0xff]  ;;  %v395_v23 = vld [vmem:[%s1650_s11 + $0x170] sm:$0xff]  ;;  %392 = vst [vmem:[%s1655_s12 + $0xa8] sm:$0xff] %v391_v21 }
  0x22   : > { %394 = vst [vmem:[%s1655_s12 + $0xb0] sm:$0xff] %v393_v22  ;;  %396 = vst [vmem:[%s1655_s12 + $0xb8] sm:$0xff] %v395_v23  ;;  %v397_v24 = vld [vmem:[%s1650_s11 + $0x180] sm:$0xff]  ;;  %v399_v25 = vld [vmem:[%s1650_s11 + $0x190] sm:$0xff] }
  0x23   : > { %v401_v26 = vld [vmem:[%s1650_s11 + $0x1a0] sm:$0xff]  ;;  %398 = vst [vmem:[%s1655_s12 + $0xc0] sm:$0xff] %v397_v24  ;;  %400 = vst [vmem:[%s1655_s12 + $0xc8] sm:$0xff] %v399_v25  ;;  %v403_v27 = vld [vmem:[%s1650_s11 + $0x1b0] sm:$0xff] }
  0x24   : > { %402 = vst [vmem:[%s1655_s12 + $0xd0] sm:$0xff] %v401_v26  ;;  %v405_v28 = vld [vmem:[%s1650_s11 + $0x1c0] sm:$0xff]  ;;  %v407_v29 = vld [vmem:[%s1650_s11 + $0x1d0] sm:$0xff]  ;;  %404 = vst [vmem:[%s1655_s12 + $0xd8] sm:$0xff] %v403_v27 }
  0x25   : > { %406 = vst [vmem:[%s1655_s12 + $0xe0] sm:$0xff] %v405_v28  ;;  %408 = vst [vmem:[%s1655_s12 + $0xe8] sm:$0xff] %v407_v29  ;;  %v409_v30 = vld [vmem:[%s1650_s11 + $0x1e0] sm:$0xff]  ;;  %v411_v31 = vld [vmem:[%s1650_s11 + $0x1f0] sm:$0xff] }
  0x26   : > { %v413_v32 = vld [vmem:[%s1650_s11 + $0x200] sm:$0xff]  ;;  %410 = vst [vmem:[%s1655_s12 + $0xf0] sm:$0xff] %v409_v30  ;;  %412 = vst [vmem:[%s1655_s12 + $0xf8] sm:$0xff] %v411_v31  ;;  %v415_v33 = vld [vmem:[%s1650_s11 + $0x210] sm:$0xff] }
  0x27   : > { %414 = vst [vmem:[%s1655_s12 + $0x100] sm:$0xff] %v413_v32  ;;  %v417_v34 = vld [vmem:[%s1650_s11 + $0x220] sm:$0xff]  ;;  %v419_v35 = vld [vmem:[%s1650_s11 + $0x230] sm:$0xff]  ;;  %416 = vst [vmem:[%s1655_s12 + $0x108] sm:$0xff] %v415_v33 }
  0x28   : > { %418 = vst [vmem:[%s1655_s12 + $0x110] sm:$0xff] %v417_v34  ;;  %420 = vst [vmem:[%s1655_s12 + $0x118] sm:$0xff] %v419_v35  ;;  %v421_v36 = vld [vmem:[%s1650_s11 + $0x240] sm:$0xff]  ;;  %v423_v37 = vld [vmem:[%s1650_s11 + $0x250] sm:$0xff] }
  0x29   : > { %v425_v38 = vld [vmem:[%s1650_s11 + $0x260] sm:$0xff]  ;;  %422 = vst [vmem:[%s1655_s12 + $0x120] sm:$0xff] %v421_v36  ;;  %424 = vst [vmem:[%s1655_s12 + $0x128] sm:$0xff] %v423_v37  ;;  %v427_v39 = vld [vmem:[%s1650_s11 + $0x270] sm:$0xff] }
  0x2a   : > { %426 = vst [vmem:[%s1655_s12 + $0x130] sm:$0xff] %v425_v38  ;;  %v429_v40 = vld [vmem:[%s1650_s11 + $0x280] sm:$0xff]  ;;  %v431_v41 = vld [vmem:[%s1650_s11 + $0x290] sm:$0xff]  ;;  %428 = vst [vmem:[%s1655_s12 + $0x138] sm:$0xff] %v427_v39 }
  0x2b   : > { %430 = vst [vmem:[%s1655_s12 + $0x140] sm:$0xff] %v429_v40  ;;  %432 = vst [vmem:[%s1655_s12 + $0x148] sm:$0xff] %v431_v41  ;;  %v433_v42 = vld [vmem:[%s1650_s11 + $0x2a0] sm:$0xff]  ;;  %v435_v43 = vld [vmem:[%s1650_s11 + $0x2b0] sm:$0xff] }
  0x2c   : > { %v437_v44 = vld [vmem:[%s1650_s11 + $0x2c0] sm:$0xff]  ;;  %434 = vst [vmem:[%s1655_s12 + $0x150] sm:$0xff] %v433_v42  ;;  %436 = vst [vmem:[%s1655_s12 + $0x158] sm:$0xff] %v435_v43  ;;  %v439_v45 = vld [vmem:[%s1650_s11 + $0x2d0] sm:$0xff] }
  0x2d   : > { %438 = vst [vmem:[%s1655_s12 + $0x160] sm:$0xff] %v437_v44  ;;  %v441_v46 = vld [vmem:[%s1650_s11 + $0x2e0] sm:$0xff]  ;;  %v443_v47 = vld [vmem:[%s1650_s11 + $0x2f0] sm:$0xff]  ;;  %440 = vst [vmem:[%s1655_s12 + $0x168] sm:$0xff] %v439_v45 }
  0x2e   : > { %442 = vst [vmem:[%s1655_s12 + $0x170] sm:$0xff] %v441_v46  ;;  %444 = vst [vmem:[%s1655_s12 + $0x178] sm:$0xff] %v443_v47  ;;  %v445_v48 = vld [vmem:[%s1650_s11 + $0x300] sm:$0xff]  ;;  %v447_v49 = vld [vmem:[%s1650_s11 + $0x310] sm:$0xff] }
  0x2f   : > { %v449_v50 = vld [vmem:[%s1650_s11 + $0x320] sm:$0xff]  ;;  %446 = vst [vmem:[%s1655_s12 + $0x180] sm:$0xff] %v445_v48  ;;  %448 = vst [vmem:[%s1655_s12 + $0x188] sm:$0xff] %v447_v49  ;;  %v451_v51 = vld [vmem:[%s1650_s11 + $0x330] sm:$0xff] }
  0x30   : > { %450 = vst [vmem:[%s1655_s12 + $0x190] sm:$0xff] %v449_v50  ;;  %v453_v52 = vld [vmem:[%s1650_s11 + $0x340] sm:$0xff]  ;;  %v455_v53 = vld [vmem:[%s1650_s11 + $0x350] sm:$0xff]  ;;  %452 = vst [vmem:[%s1655_s12 + $0x198] sm:$0xff] %v451_v51 }
  0x31   : > { %454 = vst [vmem:[%s1655_s12 + $0x1a0] sm:$0xff] %v453_v52  ;;  %456 = vst [vmem:[%s1655_s12 + $0x1a8] sm:$0xff] %v455_v53  ;;  %v457_v54 = vld [vmem:[%s1650_s11 + $0x360] sm:$0xff]  ;;  %v459_v55 = vld [vmem:[%s1650_s11 + $0x370] sm:$0xff] }
  0x32   : > { %v461_v56 = vld [vmem:[%s1650_s11 + $0x380] sm:$0xff]  ;;  %458 = vst [vmem:[%s1655_s12 + $0x1b0] sm:$0xff] %v457_v54  ;;  %460 = vst [vmem:[%s1655_s12 + $0x1b8] sm:$0xff] %v459_v55  ;;  %v463_v57 = vld [vmem:[%s1650_s11 + $0x390] sm:$0xff] }
  0x33   : > { %462 = vst [vmem:[%s1655_s12 + $0x1c0] sm:$0xff] %v461_v56  ;;  %v465_v58 = vld [vmem:[%s1650_s11 + $0x3a0] sm:$0xff]  ;;  %v467_v59 = vld [vmem:[%s1650_s11 + $0x3b0] sm:$0xff]  ;;  %464 = vst [vmem:[%s1655_s12 + $0x1c8] sm:$0xff] %v463_v57 }
  0x34   : > { %466 = vst [vmem:[%s1655_s12 + $0x1d0] sm:$0xff] %v465_v58  ;;  %468 = vst [vmem:[%s1655_s12 + $0x1d8] sm:$0xff] %v467_v59  ;;  %v469_v60 = vld [vmem:[%s1650_s11 + $0x3c0] sm:$0xff]  ;;  %v471_v61 = vld [vmem:[%s1650_s11 + $0x3d0] sm:$0xff] }
  0x35   : > { %v473_v62 = vld [vmem:[%s1650_s11 + $0x3e0] sm:$0xff]  ;;  %470 = vst [vmem:[%s1655_s12 + $0x1e0] sm:$0xff] %v469_v60  ;;  %472 = vst [vmem:[%s1655_s12 + $0x1e8] sm:$0xff] %v471_v61  ;;  %v475_v63 = vld [vmem:[%s1650_s11 + $0x3f0] sm:$0xff] }
  0x36   : > { %474 = vst [vmem:[%s1655_s12 + $0x1f0] sm:$0xff] %v473_v62  ;;  %476 = vst [vmem:[%s1655_s12 + $0x1f8] sm:$0xff] %v475_v63 }
  0x37 PF: > { %p1264_p7 = scmp.ge.s32.totalorder %s1562_s21, 1  ;;  %p497_p8 = scmp.lt.s32.totalorder %s1562_s21, 17 }
  0x39   : > { %p498_p9 = pnand %p1264_p7, %p497_p8 }
  0x3a   : > { %s504_s13 = sand.u32 (!%p498_p9), 1, %s1538_s15   ;;  %s1266_s14 = sshll.u32 (!%p498_p9), %s1546_s17, 2 }
  0x3b   : > { %501 = sbr.rel (%p498_p9) target bundleno = 407 (0x197), region = 70  ;;  %s1265_s24 = sshll.u32 (!%p498_p9), %s504_s13, 9 }
  0x3c   : > { %p543_p10 = scmp.lt.s32.totalorder (!%p498_p9), %s1266_s14, 31  ;;  %s1268_s25 = sshll.u32 (!%p498_p9), %s1550_s18, 1 }
  0x3d   : > { %p551_p11 = scmp.lt.s32.totalorder (!%p498_p9), %s1268_s25, 3  ;;  %s1808_s13 = scalar_lea.vmem (!%p498_p9), [#allocation3], %s1265_s24 }
  0x3e   : > { %p1272_p12 = scmp.ne.s32.totalorder (!%p498_p9), %s1546_s17, 0 }
  0x40   : > { %s1928_s14 = smov (!%p543_p10, %s1266_s14), 31  ;;  %s1930_s25 = smov (!%p551_p11, %s1268_s25), 3 }
  0x41   : > { %s1267_s26 = sshll.u32 %s1928_s14, 2  ;;  %s553_s15 = scalar_lea.vmem %s1912_s2, %s1930_s25 }
  0x42   : > { %s1790_s30 = scalar_lea.vmem %s1910_s0, %s1267_s26  ;;  %s558_s18 = scalar_lea.vmem %s1913_s3, %s1930_s25 }
  0x43   : > { %s1271_s9 = sshll.u32 %s1930_s25, 2  ;;  %569 = sbr.rel (%p1272_p12) target bundleno = 74 (0x4a), region = 78 }
  0x44   : > { %s1806_s12 = scalar_lea.vmem %s1914_s4, %s1271_s9 }
  0x48   : > { %v1564_v0 = vmov 0.0  }
  0x49   : > { %570 = vst [vmem:[#allocation2] sm:$0xff] %v1564_v0  ;;  %571 = vst [vmem:[#allocation2 + $0x8] sm:$0xff] %v1564_v0 }
  0x4a PF: > { %v1404_v1 = vld [vmem:[%s1808_s13 + $0x74] ss:$8 sps:$4 sm:$0xff]   ;;  %v1408_v3 = vld [vmem:[%s1808_s13 + $0x70] ss:$8 sps:$4 sm:$0xff]   ;;  %v1410_v5 = vld [vmem:[%s1808_s13 + $0x64] ss:$8 sps:$4 sm:$0xff]  }
  0x4b   : > { %v1406_v2 = vld [vmem:[%s1808_s13 + $0x174] ss:$8 sps:$4 sm:$0xff]   ;;  %974 = vmatprep.subr.bf16.mxu0 %v1404_v1  ;;  %v1409_v4 = vld [vmem:[%s1808_s13 + $0x170] ss:$8 sps:$4 sm:$0xff]   ;;  %v1412_v6 = vld [vmem:[%s1808_s13 + $0x164] ss:$8 sps:$4 sm:$0xff]  }
  0x4c   : > { %1015 = vmatprep.subr.bf16.mxu1 %v1406_v2  ;;  %975 = vmatpush1.bf16.msra.mxu0 %v1408_v3  ;;  %v1414_v7 = vld [vmem:[%s1808_s13 + $0x60] ss:$8 sps:$4 sm:$0xff]   ;;  %v1416_v9 = vld [vmem:[%s1808_s13 + $0x54] ss:$8 sps:$4 sm:$0xff]   ;;  %v1420_v11 = vld [vmem:[%s1808_s13 + $0x50] ss:$8 sps:$4 sm:$0xff]  }
  0x4d   : > { %1016 = vmatpush1.bf16.msra.mxu1 %v1409_v4  ;;  %976 = vmatprep.subr.bf16.mxu0 %v1410_v5  ;;  %v1415_v8 = vld [vmem:[%s1808_s13 + $0x160] ss:$8 sps:$4 sm:$0xff]   ;;  %v1418_v10 = vld [vmem:[%s1808_s13 + $0x154] ss:$8 sps:$4 sm:$0xff]   ;;  %v1421_v12 = vld [vmem:[%s1808_s13 + $0x150] ss:$8 sps:$4 sm:$0xff]  }
  0x4e   : > { %1017 = vmatprep.subr.bf16.mxu1 %v1412_v6  ;;  %v1422_v13 = vld [vmem:[%s1808_s13 + $0x44] ss:$8 sps:$4 sm:$0xff]   ;;  %v1426_v15 = vld [vmem:[%s1808_s13 + $0x40] ss:$8 sps:$4 sm:$0xff]   ;;  %v1428_v17 = vld [vmem:[%s1808_s13 + $0x34] ss:$8 sps:$4 sm:$0xff]  }
  0x4f   : > { %v1424_v14 = vld [vmem:[%s1808_s13 + $0x144] ss:$8 sps:$4 sm:$0xff]   ;;  %v1427_v16 = vld [vmem:[%s1808_s13 + $0x140] ss:$8 sps:$4 sm:$0xff]   ;;  %v1430_v18 = vld [vmem:[%s1808_s13 + $0x134] ss:$8 sps:$4 sm:$0xff]  }
  0x50   : > { %977 = vmatpush1.bf16.msra.mxu0 %v1414_v7  ;;  %v1432_v19 = vld [vmem:[%s1808_s13 + $0x30] ss:$8 sps:$4 sm:$0xff]   ;;  %v1434_v21 = vld [vmem:[%s1808_s13 + $0x24] ss:$8 sps:$4 sm:$0xff]   ;;  %v1438_v23 = vld [vmem:[%s1808_s13 + $0x20] ss:$8 sps:$4 sm:$0xff]  }
  0x51   : > { %1018 = vmatpush1.bf16.msra.mxu1 %v1415_v8  ;;  %978 = vmatprep.subr.bf16.mxu0 %v1416_v9  ;;  %v1433_v20 = vld [vmem:[%s1808_s13 + $0x130] ss:$8 sps:$4 sm:$0xff]   ;;  %v1436_v22 = vld [vmem:[%s1808_s13 + $0x124] ss:$8 sps:$4 sm:$0xff]   ;;  %v1439_v24 = vld [vmem:[%s1808_s13 + $0x120] ss:$8 sps:$4 sm:$0xff]  }
  0x52   : > { %1019 = vmatprep.subr.bf16.mxu1 %v1418_v10  ;;  %v1440_v25 = vld [vmem:[%s1808_s13 + $0x14] ss:$8 sps:$4 sm:$0xff]   ;;  %v1444_v27 = vld [vmem:[%s1808_s13 + $0x10] ss:$8 sps:$4 sm:$0xff]   ;;  %v1446_v29 = vld [vmem:[%s1808_s13 + $0x4] ss:$8 sps:$4 sm:$0xff]  }
  0x53   : > { %v1442_v26 = vld [vmem:[%s1808_s13 + $0x114] ss:$8 sps:$4 sm:$0xff]   ;;  %v1445_v28 = vld [vmem:[%s1808_s13 + $0x110] ss:$8 sps:$4 sm:$0xff]   ;;  %v1448_v30 = vld [vmem:[%s1808_s13 + $0x104] ss:$8 sps:$4 sm:$0xff]  }
  0x54   : > { %979 = vmatpush1.bf16.msra.mxu0 %v1420_v11  ;;  %v1450_v31 = vld [vmem:[%s1808_s13] ss:$8 sps:$4 sm:$0xff]   ;;  %v1452_v33 = vld [vmem:[%s1808_s13 + $0xf4] ss:$8 sps:$4 sm:$0xff]   ;;  %v1456_v35 = vld [vmem:[%s1808_s13 + $0xf0] ss:$8 sps:$4 sm:$0xff]  }
  0x55   : > { %1020 = vmatpush1.bf16.msra.mxu1 %v1421_v12  ;;  %980 = vmatprep.subr.bf16.mxu0 %v1422_v13  ;;  %v1451_v32 = vld [vmem:[%s1808_s13 + $0x100] ss:$8 sps:$4 sm:$0xff]   ;;  %v1454_v34 = vld [vmem:[%s1808_s13 + $0x1f4] ss:$8 sps:$4 sm:$0xff]   ;;  %v1457_v36 = vld [vmem:[%s1808_s13 + $0x1f0] ss:$8 sps:$4 sm:$0xff]  }
  0x56   : > { %1021 = vmatprep.subr.bf16.mxu1 %v1424_v14  ;;  %v1458_v37 = vld [vmem:[%s1808_s13 + $0xe4] ss:$8 sps:$4 sm:$0xff]   ;;  %v1462_v39 = vld [vmem:[%s1808_s13 + $0xe0] ss:$8 sps:$4 sm:$0xff]   ;;  %v1464_v41 = vld [vmem:[%s1808_s13 + $0xd4] ss:$8 sps:$4 sm:$0xff]  }
  0x57   : > { %v1460_v38 = vld [vmem:[%s1808_s13 + $0x1e4] ss:$8 sps:$4 sm:$0xff]   ;;  %v1463_v40 = vld [vmem:[%s1808_s13 + $0x1e0] ss:$8 sps:$4 sm:$0xff]   ;;  %v1466_v42 = vld [vmem:[%s1808_s13 + $0x1d4] ss:$8 sps:$4 sm:$0xff]  }
  0x58   : > { %981 = vmatpush1.bf16.msra.mxu0 %v1426_v15  ;;  %v1468_v43 = vld [vmem:[%s1808_s13 + $0xd0] ss:$8 sps:$4 sm:$0xff]   ;;  %v1470_v45 = vld [vmem:[%s1808_s13 + $0xc4] ss:$8 sps:$4 sm:$0xff]   ;;  %v1474_v50 = vld [vmem:[%s1808_s13 + $0xc0] ss:$8 sps:$4 sm:$0xff]  }
  0x59   : > { %1022 = vmatpush1.bf16.msra.mxu1 %v1427_v16  ;;  %982 = vmatprep.subr.bf16.mxu0 %v1428_v17  ;;  %v1469_v44 = vld [vmem:[%s1808_s13 + $0x1d0] ss:$8 sps:$4 sm:$0xff]   ;;  %v1472_v46 = vld [vmem:[%s1808_s13 + $0x1c4] ss:$8 sps:$4 sm:$0xff]   ;;  %v1475_v51 = vld [vmem:[%s1808_s13 + $0x1c0] ss:$8 sps:$4 sm:$0xff]  }
  0x5a   : > { %1023 = vmatprep.subr.bf16.mxu1 %v1430_v18  ;;  %v574_v47 = vld [vmem:[%s1790_s30] sm:$0xff]  ;;  %v575_v49 = vld [vmem:[%s1790_s30 + $0x8] sm:$0xff]  ;;  %v1482_v57 = vld [vmem:[%s1808_s13 + $0xa4] ss:$8 sps:$4 sm:$0xff]   ;;  %p1341_p13 = scmp.ne.s32.totalorder %s1546_s17, 7 }
  0x5b   : > { %v1274_v48 = vcombine.high %v574_v47, %v574_v47  ;;  %v1276_v52 = vcombine.high %v575_v49, %v575_v49  ;;  %v1476_v53 = vld [vmem:[%s1808_s13 + $0xb4] ss:$8 sps:$4 sm:$0xff]   ;;  %v1480_v55 = vld [vmem:[%s1808_s13 + $0xb0] ss:$8 sps:$4 sm:$0xff]   ;;  %v1484_v58 = vld [vmem:[%s1808_s13 + $0x1a4] ss:$8 sps:$4 sm:$0xff]   ;;  %v1273_v5 = vcombine.low %v574_v47, %v574_v47  ;;  %v1275_v6 = vcombine.low %v575_v49, %v575_v49 }
  0x5c   : > { %983 = vmatpush1.bf16.msra.mxu0 %v1432_v19  ;;  %v1478_v54 = vld [vmem:[%s1808_s13 + $0x1b4] ss:$8 sps:$4 sm:$0xff]   ;;  %v1481_v56 = vld [vmem:[%s1808_s13 + $0x1b0] ss:$8 sps:$4 sm:$0xff]   ;;  %v1486_v59 = vld [vmem:[%s1808_s13 + $0xa0] ss:$8 sps:$4 sm:$0xff]  }
  0x5d   : > { %1024 = vmatpush1.bf16.msra.mxu1 %v1433_v20  ;;  %984 = vmatprep.subr.bf16.mxu0 %v1434_v21  ;;  %v1487_v60 = vld [vmem:[%s1808_s13 + $0x1a0] ss:$8 sps:$4 sm:$0xff]   ;;  %v1488_v61 = vld [vmem:[%s1808_s13 + $0x94] ss:$8 sps:$4 sm:$0xff]   ;;  %v1492_v63 = vld [vmem:[%s1808_s13 + $0x90] ss:$8 sps:$4 sm:$0xff]  }
  0x5e   : > { %1025 = vmatprep.subr.bf16.mxu1 %v1436_v22  ;;  %1006 = vmatprep.mubr.bf16.mxu0 %v1274_v48  ;;  %v1490_v62 = vld [vmem:[%s1808_s13 + $0x194] ss:$8 sps:$4 sm:$0xff]   ;;  %v1493_v0 = vld [vmem:[%s1808_s13 + $0x190] ss:$8 sps:$4 sm:$0xff]   ;;  %v1494_v1 = vld [vmem:[%s1808_s13 + $0x84] ss:$8 sps:$4 sm:$0xff]  }
  0x5f   : > { %1047 = vmatprep.mubr.bf16.mxu1 %v1276_v52  ;;  %v1496_v2 = vld [vmem:[%s1808_s13 + $0x184] ss:$8 sps:$4 sm:$0xff]   ;;  %v1498_v3 = vld [vmem:[%s1808_s13 + $0x80] ss:$8 sps:$4 sm:$0xff]   ;;  %v572_v8 = vld [vmem:[#allocation2] sm:$0xff] }
  0x60   : > { %985 = vmatpush1.bf16.msra.mxu0 %v1438_v23  ;;  %v1499_v4 = vld [vmem:[%s1808_s13 + $0x180] ss:$8 sps:$4 sm:$0xff]   ;;  %v573_v12 = vld [vmem:[#allocation2 + $0x8] sm:$0xff] }
  0x61   : > { %1026 = vmatpush1.bf16.msra.mxu1 %v1439_v24  ;;  %986 = vmatprep.subr.bf16.mxu0 %v1440_v25 }
  0x62   : > { %1027 = vmatprep.subr.bf16.mxu1 %v1442_v26 }
  0x64   : > { %987 = vmatpush1.bf16.msra.mxu0 %v1444_v27 }
  0x65   : > { %1028 = vmatpush1.bf16.msra.mxu1 %v1445_v28  ;;  %988 = vmatprep.subr.bf16.mxu0 %v1446_v29 }
  0x66   : > { %1029 = vmatprep.subr.bf16.mxu1 %v1448_v30 }
  0x68   : > { %989 = vmatpush1.bf16.msra.mxu0 %v1450_v31 }
  0x69   : > { %1030 = vmatpush1.bf16.msra.mxu1 %v1451_v32  ;;  %990 = vmatprep.subr.bf16.mxu0 %v1452_v33 }
  0x6a   : > { %1031 = vmatprep.subr.bf16.mxu1 %v1454_v34 }
  0x6c   : > { %991 = vmatpush2.bf16.msra.mxu0 %v1456_v35 }
  0x6d   : > { %1032 = vmatpush2.bf16.msra.mxu1 %v1457_v36  ;;  %992 = vmatprep.subr.bf16.mxu0 %v1458_v37 }
  0x6e   : > { %1033 = vmatprep.subr.bf16.mxu1 %v1460_v38 }
  0x70   : > { %993 = vmatpush2.bf16.msra.mxu0 %v1462_v39 }
  0x71   : > { %1034 = vmatpush2.bf16.msra.mxu1 %v1463_v40  ;;  %994 = vmatprep.subr.bf16.mxu0 %v1464_v41 }
  0x72   : > { %1035 = vmatprep.subr.bf16.mxu1 %v1466_v42 }
  0x74   : > { %995 = vmatpush2.bf16.msra.mxu0 %v1468_v43 }
  0x75   : > { %1036 = vmatpush2.bf16.msra.mxu1 %v1469_v44  ;;  %996 = vmatprep.subr.bf16.mxu0 %v1470_v45 }
  0x76   : > { %1037 = vmatprep.subr.bf16.mxu1 %v1472_v46 }
  0x78   : > { %997 = vmatpush2.bf16.msra.mxu0 %v1474_v50 }
  0x79   : > { %1038 = vmatpush2.bf16.msra.mxu1 %v1475_v51  ;;  %998 = vmatprep.subr.bf16.mxu0 %v1476_v53 }
  0x7a   : > { %1039 = vmatprep.subr.bf16.mxu1 %v1478_v54 }
  0x7c   : > { %999 = vmatpush2.bf16.msra.mxu0 %v1480_v55 }
  0x7d   : > { %1040 = vmatpush2.bf16.msra.mxu1 %v1481_v56  ;;  %1000 = vmatprep.subr.bf16.mxu0 %v1482_v57 }
  0x7e   : > { %1041 = vmatprep.subr.bf16.mxu1 %v1484_v58 }
  0x80   : > { %1001 = vmatpush2.bf16.msra.mxu0 %v1486_v59 }
  0x81   : > { %1042 = vmatpush2.bf16.msra.mxu1 %v1487_v60  ;;  %1002 = vmatprep.subr.bf16.mxu0 %v1488_v61 }
  0x82   : > { %1043 = vmatprep.subr.bf16.mxu1 %v1490_v62 }
  0x84   : > { %1003 = vmatpush2.bf16.msra.mxu0 %v1492_v63 }
  0x85   : > { %1044 = vmatpush2.bf16.msra.mxu1 %v1493_v0  ;;  %1004 = vmatprep.subr.bf16.mxu0 %v1494_v1 }
  0x86   : > { %1045 = vmatprep.subr.bf16.mxu1 %v1496_v2 }
  0x88   : > { %1005 = vmatpush2.bf16.msra.mxu0 %v1498_v3 }
  0x89   : > { %1046 = vmatpush2.bf16.msra.mxu1 %v1499_v4 }
  0x8b   : > { %1007 = vmatmul.mubr.bf16.vlgmr.msra.gmra.mxu0 %v1273_v5 }
  0x8c   : > { %1048 = vmatmul.mubr.bf16.vlgmr.msra.gmra.mxu1 %v1275_v6 }
 0x14b   : > { %v1008_v7 = vpop.f32.mrf.mxu0 }
 0x14c   : > { %v1049_v9 = vpop.f32.mrf.mxu1 }
 0x14d   : > { %v1050_v10 = vadd.f32 %v1049_v9, %v1008_v7  ;;  %v1010_v11 = vpop.f32.mrf.mxu0 }
 0x14e   : > { %v1051_v13 = vpop.f32.mrf.mxu1 }
 0x14f   : > { %v1056_v14 = vadd.f32 %v1050_v10, %v572_v8  ;;  %v1052_v15 = vadd.f32 %v1051_v13, %v1010_v11  ;;  %v1012_v16 = vpop.f32.mrf.mxu0  ;;  %1063 = sbr.rel (%p1341_p13) target bundleno = 407 (0x197), region = 82 }
 0x150   : > { %v1053_v17 = vpop.f32.mrf.mxu1 }
 0x151   : > { %1058 = vst [vmem:[#allocation2] sm:$0xff] %v1056_v14  ;;  %v1057_v18 = vadd.f32 %v1052_v15, %v573_v12  ;;  %v1013_v19 = vpop.f32.mrf.mxu0 }
 0x152   : > { %v1054_v20 = vpop.f32.mrf.mxu1 }
 0x153   : > { %1059 = vst [vmem:[#allocation2 + $0x8] sm:$0xff] %v1057_v18 }
 0x154   : > { %v1107_v57 = vlaneseq  ;;  %v1105_v60 = vld [vmem:[%s553_s15] sm:$0x3] }
 0x155   : > { %v1119_v62 = vld [vmem:[%s558_s18] sm:$0x3] }
 0x156   : > { %v1108_v58 = vshrl.u32 %v1107_v57, 7 }
 0x158   : > { %v1064_v21 = vld [vmem:[#allocation2] sm:$0xff]  ;;  %v1109_v59 = vsub.s32 0, %v1108_v58  ;;  %v1113_v61 = vsub.s32 1, %v1108_v58 }
 0x159   : > { %v1066_v23 = vrot.slane %v1064_v21, 4 }
 0x15a   : > { %v1065_v22 = vld [vmem:[#allocation2 + $0x8] sm:$0xff]  ;;  %v1110_v63 = vrot.slane %v1105_v60, %v1109_v59  ;;  %v1114_v1 = vrot.slane %v1105_v60, %v1113_v61  ;;  %v1124_v4 = vrot.slane %v1119_v62, %v1109_v59  ;;  %v1128_v6 = vrot.slane %v1119_v62, %v1113_v61 }
 0x15b   : > { %v1072_v24 = vrot.slane %v1065_v22, 4  ;;  %v1067_v25 = vadd.f32 %v1066_v23, %v1064_v21 }
 0x15d   : > { %v1073_v26 = vadd.f32 %v1072_v24, %v1065_v22  ;;  %v1068_v27 = vrot.slane %v1067_v25, 2 }
 0x15f   : > { %v1074_v28 = vrot.slane %v1073_v26, 2  ;;  %v1069_v29 = vadd.f32 %v1068_v27, %v1067_v25 }
 0x161   : > { %v1075_v30 = vadd.f32 %v1074_v28, %v1073_v26  ;;  %v1070_v31 = vrot.slane %v1069_v29, 1 }
 0x163   : > { %v1076_v32 = vrot.slane %v1075_v30, 1  ;;  %v1071_v33 = vadd.f32 %v1070_v31, %v1069_v29 }
 0x165   : > { %v1077_v34 = vadd.f32 %v1076_v32, %v1075_v30  ;;  %v1079_v35 = vmul.f32 0.125, %v1071_v33 }
 0x167   : > { %v1080_v36 = vmul.f32 0.125, %v1077_v34  ;;  %v1081_v37 = vsub.f32 %v1064_v21, %v1079_v35 }
 0x169   : > { %v1082_v38 = vsub.f32 %v1065_v22, %v1080_v36  ;;  %v1083_v39 = vmul.f32 %v1081_v37, %v1081_v37 }
 0x16b   : > { %v1084_v40 = vmul.f32 %v1082_v38, %v1082_v38  ;;  %v1085_v41 = vrot.slane %v1083_v39, 4 }
 0x16d   : > { %v1091_v42 = vrot.slane %v1084_v40, 4  ;;  %v1086_v43 = vadd.f32 %v1085_v41, %v1083_v39 }
 0x16f   : > { %v1092_v44 = vadd.f32 %v1091_v42, %v1084_v40  ;;  %v1087_v45 = vrot.slane %v1086_v43, 2 }
 0x171   : > { %v1093_v46 = vrot.slane %v1092_v44, 2  ;;  %v1088_v47 = vadd.f32 %v1087_v45, %v1086_v43 }
 0x173   : > { %v1094_v48 = vadd.f32 %v1093_v46, %v1092_v44  ;;  %v1089_v49 = vrot.slane %v1088_v47, 1 }
 0x175   : > { %v1095_v50 = vrot.slane %v1094_v48, 1  ;;  %v1090_v51 = vadd.f32 %v1089_v49, %v1088_v47 }
 0x177   : > { %v1096_v52 = vadd.f32 %v1095_v50, %v1094_v48  ;;  %v1097_v53 = vmul.f32 0.125, %v1090_v51 }
 0x179   : > { %v1098_v54 = vmul.f32 0.125, %v1096_v52  ;;  %v1099_v55 = vadd.f32 1e-05, %v1097_v53 }
 0x17b   : > { %v1100_v56 = vadd.f32 1e-05, %v1098_v54  ;;  %1504 = vrsqrt.f32 %v1099_v55 }
 0x17d   : > { %1506 = vrsqrt.f32 %v1100_v56 }
 0x188   : > { %v1505_v0 = vpop.eup %1504 }
 0x189   : > { %v1103_v3 = vmul.f32 %v1505_v0, %v1081_v37 }
 0x18a   : > { %v1507_v2 = vpop.eup %1506 }
 0x18b   : > { %v1104_v5 = vmul.f32 %v1507_v2, %v1082_v38  ;;  %v1117_v7 = vmul.f32 %v1110_v63, %v1103_v3 }
 0x18d   : > { %v1118_v8 = vmul.f32 %v1114_v1, %v1104_v5  ;;  %v1131_v9 = vadd.f32 %v1124_v4, %v1117_v7 }
 0x18f   : > { %v1132_v10 = vadd.f32 %v1128_v6, %v1118_v8  ;;  %vm1133_vm0 = vcmp.ge.f32.partialorder %v1131_v9, 0.0  ;;  %v1135_v11 = vmul.f32 0.3, %v1131_v9 }
 0x191   : > { %vm1134_vm1 = vcmp.ge.f32.partialorder %v1132_v10, 0.0  ;;  %v1136_v12 = vmul.f32 0.3, %v1132_v10  ;;  %v1137_v13 = vsel %vm1133_vm0, %v1131_v9, %v1135_v11 }
 0x193   : > { %v1138_v14 = vsel %vm1134_vm1, %v1132_v10, %v1136_v12 }
 0x194   : > { %v1346_v15 = vpack.c.bf16 %v1138_v14, %v1137_v13 }
 0x196   : > { %1147 = vst [vmem:[%s1806_s12] sm:$0xff] %v1346_v15 }
 0x197 PF: > { %s14_s21 = sadd.s32 1, %s1562_s21   ;;  %s1915_s15 = smov %s1542_s16 }
 0x198   : > { %p11_p0 = scmp.ge.s32.totalorder %s14_s21, 18   ;;  %s1916_s16 = smov %s1641_s28 }
 0x199   : > { %s1917_s17 = smov %s1554_s19  ;;  %s1918_s18 = smov %s1558_s20 }
 0x19a   : > { %s1919_s19 = smov %s1922_s22  ;;  %s1920_s20 = smov %s1926_s23 }
 0x19b   :  { %13 = sbr.rel (!%p11_p0) target bundleno = 4 (0x4), region = 126 }

// kernel: discriminator_forward.8
= control target key start
LH: loop header
LB: loop body
LE: loop exit
PB: predicated region body
PF: predicated region fallthrough
CT: control target
= control target key end

     0   :  { %s1669_s15 = smov 0   ;;  %s1671_s16 = smov 0   ;;  %s2020_s0 = inlined_call_operand.vmem [shape: bf16[2,8192], index: 0, kind: input, shape index: {}]   ;;  %s2021_s1 = inlined_call_operand.vmem [shape: bf16[8192,1024], index: 1, kind: input, shape index: {}]   ;;  %s2022_s2 = inlined_call_operand.vmem [shape: f32[1,1024], index: 2, kind: input, shape index: {}]   ;;  %s2023_s3 = inlined_call_operand.vmem [shape: f32[1,1024], index: 3, kind: input, shape index: {}]   ;;  %s2024_s4 = inlined_call_operand.vmem [shape: bf16[2,1024], index: 4, kind: output, shape index: {}]  }
   0x1   :  { %s1673_s17 = smov 0   ;;  %s1675_s18 = smov 0  }
   0x2   :  { %s1677_s19 = smov 0   ;;  %s1679_s20 = smov 0  }
   0x3   :  { %s1681_s21 = smov 0  }
   0x4 LB: > { %s23_s22 = sadd.s32 1, %s1631_s19  ;;  %s26_s23 = sadd.s32 1, %s1635_s20  ;;  %s1639_s21 = sphi %s1681_s21, %s14_s21   ;;  %s1635_s20 = sphi %s1679_s20, %s2030_s20   ;;  %s1631_s19 = sphi %s1677_s19, %s2029_s19   ;;  %s1627_s18 = sphi %s1675_s18, %s2028_s18   ;;  %s1623_s17 = sphi %s1673_s17, %s2027_s17   ;;  %s1619_s16 = sphi %s1671_s16, %s2026_s16   ;;  %s1615_s15 = sphi %s1669_s15, %s2025_s15  }
   0x5   : > { %p24_p0 = scmp.ge.s32.totalorder %s23_s22, 16  ;;  %p68_p1 = scmp.ne.s32.totalorder %s1619_s16, %s1615_s15 }
   0x6   : > { %p69_p2 = scmp.eq.s32.totalorder %s1639_s21, 0  ;;  %s61_s27 = sadd.s32 1, %s1619_s16 }
   0x7   : > { %s2032_s22 = smov (%p24_p0, %s23_s22), 0  ;;  %s2034_s23 = smov (!%p24_p0, %s26_s23), %s1635_s20 }
   0x8   : > { %p70_p3 = por %p69_p2, %p68_p1  ;;  %p28_p4 = scmp.ge.s32.totalorder %s2034_s23, 4 }
   0x9   : > { %s56_s24 = ssub.s32 %s1631_s19, %s2032_s22  ;;  %p1342_p6 = scmp.ge.s32.totalorder %s1639_s21, 64 }
   0xa   : > { %s2036_s23 = smov (%p28_p4, %s2034_s23), 0 }
   0xb   : > { %s57_s25 = ssub.s32 %s1635_s20, %s2036_s23  ;;  %172 = sbr.rel (%p1342_p6) target bundleno = 87 (0x57), region = 16 }
   0xc   : > { %s58_s26 = sor.u32 %s57_s25, %s56_s24 }
   0xd   : > { %p59_p5 = scmp.eq.s32.totalorder %s58_s26, 0 }
   0xf   : > { %s1720_s28 = scalar_select %p59_p5, %s1619_s16, %s61_s27  }
  0x10   : > { %183 = sbr.rel (!%p70_p3) target bundleno = 87 (0x57), region = 24  ;;  %s185_s29 = sand.u32 (%p70_p3), 1, %s1619_s16  }
  0x11   : > { %s1345_s30 = sshll.u32 (%p70_p3), %s1635_s20, 1  ;;  %s1343_s5 = sshll.u32 (%p70_p3), %s185_s29, 9 }
  0x12   : > { %s1425_s6 = sshll.u32 (%p70_p3), %s1631_s19, 9  ;;  %s1734_s12 = scalar_lea.vmem (%p70_p3), [#allocation3], %s1343_s5 }
  0x13   : > { %s191_s7 = sadd.s32 (%p70_p3), %s1425_s6, %s1345_s30 }
  0x14   : > { %s1347_s8 = sshll.u32 (%p70_p3), %s191_s7, 2 }
  0x15   : > { %s1729_s11 = scalar_lea.vmem %s2021_s1, %s1347_s8 }
  0x16   : > { %v348_v0 = vld [vmem:[%s1729_s11] sm:$0xff] }
  0x17   : > { %v350_v1 = vld [vmem:[%s1729_s11 + $0x20] sm:$0xff]  ;;  %349 = vst [vmem:[%s1734_s12] sm:$0xff] %v348_v0 }
  0x18   : > { %v352_v2 = vld [vmem:[%s1729_s11 + $0x40] sm:$0xff]  ;;  %351 = vst [vmem:[%s1734_s12 + $0x8] sm:$0xff] %v350_v1 }
  0x19   : > { %353 = vst [vmem:[%s1734_s12 + $0x10] sm:$0xff] %v352_v2  ;;  %v354_v3 = vld [vmem:[%s1729_s11 + $0x60] sm:$0xff] }
  0x1a   : > { %v356_v4 = vld [vmem:[%s1729_s11 + $0x80] sm:$0xff]  ;;  %355 = vst [vmem:[%s1734_s12 + $0x18] sm:$0xff] %v354_v3 }
  0x1b   : > { %v358_v5 = vld [vmem:[%s1729_s11 + $0xa0] sm:$0xff]  ;;  %357 = vst [vmem:[%s1734_s12 + $0x20] sm:$0xff] %v356_v4 }
  0x1c   : > { %359 = vst [vmem:[%s1734_s12 + $0x28] sm:$0xff] %v358_v5  ;;  %v360_v6 = vld [vmem:[%s1729_s11 + $0xc0] sm:$0xff] }
  0x1d   : > { %v362_v7 = vld [vmem:[%s1729_s11 + $0xe0] sm:$0xff]  ;;  %361 = vst [vmem:[%s1734_s12 + $0x30] sm:$0xff] %v360_v6 }
  0x1e   : > { %v364_v8 = vld [vmem:[%s1729_s11 + $0x100] sm:$0xff]  ;;  %363 = vst [vmem:[%s1734_s12 + $0x38] sm:$0xff] %v362_v7 }
  0x1f   : > { %365 = vst [vmem:[%s1734_s12 + $0x40] sm:$0xff] %v364_v8  ;;  %v366_v9 = vld [vmem:[%s1729_s11 + $0x120] sm:$0xff] }
  0x20   : > { %v368_v10 = vld [vmem:[%s1729_s11 + $0x140] sm:$0xff]  ;;  %367 = vst [vmem:[%s1734_s12 + $0x48] sm:$0xff] %v366_v9 }
  0x21   : > { %v370_v11 = vld [vmem:[%s1729_s11 + $0x160] sm:$0xff]  ;;  %369 = vst [vmem:[%s1734_s12 + $0x50] sm:$0xff] %v368_v10 }
  0x22   : > { %371 = vst [vmem:[%s1734_s12 + $0x58] sm:$0xff] %v370_v11  ;;  %v372_v12 = vld [vmem:[%s1729_s11 + $0x180] sm:$0xff] }
  0x23   : > { %v374_v13 = vld [vmem:[%s1729_s11 + $0x1a0] sm:$0xff]  ;;  %373 = vst [vmem:[%s1734_s12 + $0x60] sm:$0xff] %v372_v12 }
  0x24   : > { %v376_v14 = vld [vmem:[%s1729_s11 + $0x1c0] sm:$0xff]  ;;  %375 = vst [vmem:[%s1734_s12 + $0x68] sm:$0xff] %v374_v13 }
  0x25   : > { %377 = vst [vmem:[%s1734_s12 + $0x70] sm:$0xff] %v376_v14  ;;  %v378_v15 = vld [vmem:[%s1729_s11 + $0x1e0] sm:$0xff] }
  0x26   : > { %v380_v16 = vld [vmem:[%s1729_s11 + $0x200] sm:$0xff]  ;;  %379 = vst [vmem:[%s1734_s12 + $0x78] sm:$0xff] %v378_v15 }
  0x27   : > { %v382_v17 = vld [vmem:[%s1729_s11 + $0x220] sm:$0xff]  ;;  %381 = vst [vmem:[%s1734_s12 + $0x80] sm:$0xff] %v380_v16 }
  0x28   : > { %383 = vst [vmem:[%s1734_s12 + $0x88] sm:$0xff] %v382_v17  ;;  %v384_v18 = vld [vmem:[%s1729_s11 + $0x240] sm:$0xff] }
  0x29   : > { %v386_v19 = vld [vmem:[%s1729_s11 + $0x260] sm:$0xff]  ;;  %385 = vst [vmem:[%s1734_s12 + $0x90] sm:$0xff] %v384_v18 }
  0x2a   : > { %v388_v20 = vld [vmem:[%s1729_s11 + $0x280] sm:$0xff]  ;;  %387 = vst [vmem:[%s1734_s12 + $0x98] sm:$0xff] %v386_v19 }
  0x2b   : > { %389 = vst [vmem:[%s1734_s12 + $0xa0] sm:$0xff] %v388_v20  ;;  %v390_v21 = vld [vmem:[%s1729_s11 + $0x2a0] sm:$0xff] }
  0x2c   : > { %v392_v22 = vld [vmem:[%s1729_s11 + $0x2c0] sm:$0xff]  ;;  %391 = vst [vmem:[%s1734_s12 + $0xa8] sm:$0xff] %v390_v21 }
  0x2d   : > { %v394_v23 = vld [vmem:[%s1729_s11 + $0x2e0] sm:$0xff]  ;;  %393 = vst [vmem:[%s1734_s12 + $0xb0] sm:$0xff] %v392_v22 }
  0x2e   : > { %395 = vst [vmem:[%s1734_s12 + $0xb8] sm:$0xff] %v394_v23  ;;  %v396_v24 = vld [vmem:[%s1729_s11 + $0x300] sm:$0xff] }
  0x2f   : > { %v398_v25 = vld [vmem:[%s1729_s11 + $0x320] sm:$0xff]  ;;  %397 = vst [vmem:[%s1734_s12 + $0xc0] sm:$0xff] %v396_v24 }
  0x30   : > { %v400_v26 = vld [vmem:[%s1729_s11 + $0x340] sm:$0xff]  ;;  %399 = vst [vmem:[%s1734_s12 + $0xc8] sm:$0xff] %v398_v25 }
  0x31   : > { %401 = vst [vmem:[%s1734_s12 + $0xd0] sm:$0xff] %v400_v26  ;;  %v402_v27 = vld [vmem:[%s1729_s11 + $0x360] sm:$0xff] }
  0x32   : > { %v404_v28 = vld [vmem:[%s1729_s11 + $0x380] sm:$0xff]  ;;  %403 = vst [vmem:[%s1734_s12 + $0xd8] sm:$0xff] %v402_v27 }
  0x33   : > { %v406_v29 = vld [vmem:[%s1729_s11 + $0x3a0] sm:$0xff]  ;;  %405 = vst [vmem:[%s1734_s12 + $0xe0] sm:$0xff] %v404_v28 }
  0x34   : > { %407 = vst [vmem:[%s1734_s12 + $0xe8] sm:$0xff] %v406_v29  ;;  %v408_v30 = vld [vmem:[%s1729_s11 + $0x3c0] sm:$0xff] }
  0x35   : > { %v410_v31 = vld [vmem:[%s1729_s11 + $0x3e0] sm:$0xff]  ;;  %409 = vst [vmem:[%s1734_s12 + $0xf0] sm:$0xff] %v408_v30 }
  0x36   : > { %v412_v32 = vld [vmem:[%s1729_s11 + $0x400] sm:$0xff]  ;;  %411 = vst [vmem:[%s1734_s12 + $0xf8] sm:$0xff] %v410_v31 }
  0x37   : > { %413 = vst [vmem:[%s1734_s12 + $0x100] sm:$0xff] %v412_v32  ;;  %v414_v33 = vld [vmem:[%s1729_s11 + $0x420] sm:$0xff] }
  0x38   : > { %v416_v34 = vld [vmem:[%s1729_s11 + $0x440] sm:$0xff]  ;;  %415 = vst [vmem:[%s1734_s12 + $0x108] sm:$0xff] %v414_v33 }
  0x39   : > { %v418_v35 = vld [vmem:[%s1729_s11 + $0x460] sm:$0xff]  ;;  %417 = vst [vmem:[%s1734_s12 + $0x110] sm:$0xff] %v416_v34 }
  0x3a   : > { %419 = vst [vmem:[%s1734_s12 + $0x118] sm:$0xff] %v418_v35  ;;  %v420_v36 = vld [vmem:[%s1729_s11 + $0x480] sm:$0xff] }
  0x3b   : > { %v422_v37 = vld [vmem:[%s1729_s11 + $0x4a0] sm:$0xff]  ;;  %421 = vst [vmem:[%s1734_s12 + $0x120] sm:$0xff] %v420_v36 }
  0x3c   : > { %v424_v38 = vld [vmem:[%s1729_s11 + $0x4c0] sm:$0xff]  ;;  %423 = vst [vmem:[%s1734_s12 + $0x128] sm:$0xff] %v422_v37 }
  0x3d   : > { %425 = vst [vmem:[%s1734_s12 + $0x130] sm:$0xff] %v424_v38  ;;  %v426_v39 = vld [vmem:[%s1729_s11 + $0x4e0] sm:$0xff] }
  0x3e   : > { %v428_v40 = vld [vmem:[%s1729_s11 + $0x500] sm:$0xff]  ;;  %427 = vst [vmem:[%s1734_s12 + $0x138] sm:$0xff] %v426_v39 }
  0x3f   : > { %v430_v41 = vld [vmem:[%s1729_s11 + $0x520] sm:$0xff]  ;;  %429 = vst [vmem:[%s1734_s12 + $0x140] sm:$0xff] %v428_v40 }
  0x40   : > { %431 = vst [vmem:[%s1734_s12 + $0x148] sm:$0xff] %v430_v41  ;;  %v432_v42 = vld [vmem:[%s1729_s11 + $0x540] sm:$0xff] }
  0x41   : > { %v434_v43 = vld [vmem:[%s1729_s11 + $0x560] sm:$0xff]  ;;  %433 = vst [vmem:[%s1734_s12 + $0x150] sm:$0xff] %v432_v42 }
  0x42   : > { %v436_v44 = vld [vmem:[%s1729_s11 + $0x580] sm:$0xff]  ;;  %435 = vst [vmem:[%s1734_s12 + $0x158] sm:$0xff] %v434_v43 }
  0x43   : > { %437 = vst [vmem:[%s1734_s12 + $0x160] sm:$0xff] %v436_v44  ;;  %v438_v45 = vld [vmem:[%s1729_s11 + $0x5a0] sm:$0xff] }
  0x44   : > { %v440_v46 = vld [vmem:[%s1729_s11 + $0x5c0] sm:$0xff]  ;;  %439 = vst [vmem:[%s1734_s12 + $0x168] sm:$0xff] %v438_v45 }
  0x45   : > { %v442_v47 = vld [vmem:[%s1729_s11 + $0x5e0] sm:$0xff]  ;;  %441 = vst [vmem:[%s1734_s12 + $0x170] sm:$0xff] %v440_v46 }
  0x46   : > { %443 = vst [vmem:[%s1734_s12 + $0x178] sm:$0xff] %v442_v47  ;;  %v444_v48 = vld [vmem:[%s1729_s11 + $0x600] sm:$0xff] }
  0x47   : > { %v446_v49 = vld [vmem:[%s1729_s11 + $0x620] sm:$0xff]  ;;  %445 = vst [vmem:[%s1734_s12 + $0x180] sm:$0xff] %v444_v48 }
  0x48   : > { %v448_v50 = vld [vmem:[%s1729_s11 + $0x640] sm:$0xff]  ;;  %447 = vst [vmem:[%s1734_s12 + $0x188] sm:$0xff] %v446_v49 }
  0x49   : > { %449 = vst [vmem:[%s1734_s12 + $0x190] sm:$0xff] %v448_v50  ;;  %v450_v51 = vld [vmem:[%s1729_s11 + $0x660] sm:$0xff] }
  0x4a   : > { %v452_v52 = vld [vmem:[%s1729_s11 + $0x680] sm:$0xff]  ;;  %451 = vst [vmem:[%s1734_s12 + $0x198] sm:$0xff] %v450_v51 }
  0x4b   : > { %v454_v53 = vld [vmem:[%s1729_s11 + $0x6a0] sm:$0xff]  ;;  %453 = vst [vmem:[%s1734_s12 + $0x1a0] sm:$0xff] %v452_v52 }
  0x4c   : > { %455 = vst [vmem:[%s1734_s12 + $0x1a8] sm:$0xff] %v454_v53  ;;  %v456_v54 = vld [vmem:[%s1729_s11 + $0x6c0] sm:$0xff] }
  0x4d   : > { %v458_v55 = vld [vmem:[%s1729_s11 + $0x6e0] sm:$0xff]  ;;  %457 = vst [vmem:[%s1734_s12 + $0x1b0] sm:$0xff] %v456_v54 }
  0x4e   : > { %v460_v56 = vld [vmem:[%s1729_s11 + $0x700] sm:$0xff]  ;;  %459 = vst [vmem:[%s1734_s12 + $0x1b8] sm:$0xff] %v458_v55 }
  0x4f   : > { %461 = vst [vmem:[%s1734_s12 + $0x1c0] sm:$0xff] %v460_v56  ;;  %v462_v57 = vld [vmem:[%s1729_s11 + $0x720] sm:$0xff] }
  0x50   : > { %v464_v58 = vld [vmem:[%s1729_s11 + $0x740] sm:$0xff]  ;;  %463 = vst [vmem:[%s1734_s12 + $0x1c8] sm:$0xff] %v462_v57 }
  0x51   : > { %v466_v59 = vld [vmem:[%s1729_s11 + $0x760] sm:$0xff]  ;;  %465 = vst [vmem:[%s1734_s12 + $0x1d0] sm:$0xff] %v464_v58 }
  0x52   : > { %467 = vst [vmem:[%s1734_s12 + $0x1d8] sm:$0xff] %v466_v59  ;;  %v468_v60 = vld [vmem:[%s1729_s11 + $0x780] sm:$0xff] }
  0x53   : > { %v470_v61 = vld [vmem:[%s1729_s11 + $0x7a0] sm:$0xff]  ;;  %469 = vst [vmem:[%s1734_s12 + $0x1e0] sm:$0xff] %v468_v60 }
  0x54   : > { %v472_v62 = vld [vmem:[%s1729_s11 + $0x7c0] sm:$0xff]  ;;  %471 = vst [vmem:[%s1734_s12 + $0x1e8] sm:$0xff] %v470_v61 }
  0x55   : > { %473 = vst [vmem:[%s1734_s12 + $0x1f0] sm:$0xff] %v472_v62  ;;  %v474_v63 = vld [vmem:[%s1729_s11 + $0x7e0] sm:$0xff] }
  0x56   : > { %475 = vst [vmem:[%s1734_s12 + $0x1f8] sm:$0xff] %v474_v63 }
  0x57 PF: > { %p1348_p7 = scmp.ge.s32.totalorder %s1639_s21, 1  ;;  %p496_p8 = scmp.lt.s32.totalorder %s1639_s21, 65 }
  0x59   : > { %p497_p9 = pnand %p1348_p7, %p496_p8 }
  0x5a   : > { %s503_s13 = sand.u32 (!%p497_p9), 1, %s1615_s15   ;;  %s1350_s14 = sshll.u32 (!%p497_p9), %s1623_s17, 2 }
  0x5b   : > { %500 = sbr.rel (%p497_p9) target bundleno = 467 (0x1d3), region = 70  ;;  %s1349_s24 = sshll.u32 (!%p497_p9), %s503_s13, 9 }
  0x5c   : > { %p540_p10 = scmp.lt.s32.totalorder (!%p497_p9), %s1350_s14, 63  ;;  %s1351_s25 = sshll.u32 (!%p497_p9), %s1627_s18, 1 }
  0x5d   : > { %p547_p11 = scmp.lt.s32.totalorder (!%p497_p9), %s1351_s25, 7  ;;  %s1886_s11 = scalar_lea.vmem (!%p497_p9), [#allocation3], %s1349_s24 }
  0x5e   : > { %p1354_p12 = scmp.ne.s32.totalorder (!%p497_p9), %s1623_s17, 0 }
  0x60   : > { %s2038_s14 = smov (!%p540_p10, %s1350_s14), 63  ;;  %s2040_s25 = smov (!%p547_p11, %s1351_s25), 7 }
  0x61   : > { %s542_s29 = scalar_lea.vmem %s2020_s0, %s2038_s14  ;;  %s549_s15 = scalar_lea.vmem %s2022_s2, %s2040_s25 }
  0x62   : > { %s554_s18 = scalar_lea.vmem %s2023_s3, %s2040_s25  ;;  %s559_s10 = scalar_lea.vmem %s2024_s4, %s2040_s25 }
  0x63   : > { %564 = sbr.rel (%p1354_p12) target bundleno = 106 (0x6a), region = 78 }
  0x68   : > { %v1641_v0 = vmov 0.0  }
  0x69   : > { %565 = vst [vmem:[#allocation2] sm:$0xf] %v1641_v0 }
  0x6a PF: > { %v1485_v1 = vld [vmem:[%s1886_s11 + $0x74] ss:$8 sps:$4 sm:$0xff]   ;;  %v1489_v3 = vld [vmem:[%s1886_s11 + $0x70] ss:$8 sps:$4 sm:$0xff]   ;;  %v1491_v5 = vld [vmem:[%s1886_s11 + $0x64] ss:$8 sps:$4 sm:$0xff]   ;;  %v644_v41 = vlaneseq }
  0x6b   : > { %v1487_v2 = vld [vmem:[%s1886_s11 + $0x174] ss:$8 sps:$4 sm:$0xff]   ;;  %981 = vmatprep.subr.bf16.mxu0 %v1485_v1  ;;  %v1490_v4 = vld [vmem:[%s1886_s11 + $0x170] ss:$8 sps:$4 sm:$0xff]   ;;  %v1493_v6 = vld [vmem:[%s1886_s11 + $0x164] ss:$8 sps:$4 sm:$0xff]  }
  0x6c   : > { %1022 = vmatprep.subr.bf16.mxu1 %v1487_v2  ;;  %982 = vmatpush1.bf16.msra.mxu0 %v1489_v3  ;;  %v1495_v7 = vld [vmem:[%s1886_s11 + $0x60] ss:$8 sps:$4 sm:$0xff]   ;;  %v1497_v9 = vld [vmem:[%s1886_s11 + $0x54] ss:$8 sps:$4 sm:$0xff]   ;;  %v1501_v11 = vld [vmem:[%s1886_s11 + $0x50] ss:$8 sps:$4 sm:$0xff]  }
  0x6d   : > { %1023 = vmatpush1.bf16.msra.mxu1 %v1490_v4  ;;  %983 = vmatprep.subr.bf16.mxu0 %v1491_v5  ;;  %v1496_v8 = vld [vmem:[%s1886_s11 + $0x160] ss:$8 sps:$4 sm:$0xff]   ;;  %v1499_v10 = vld [vmem:[%s1886_s11 + $0x154] ss:$8 sps:$4 sm:$0xff]   ;;  %v1502_v12 = vld [vmem:[%s1886_s11 + $0x150] ss:$8 sps:$4 sm:$0xff]  }
  0x6e   : > { %1024 = vmatprep.subr.bf16.mxu1 %v1493_v6  ;;  %v1503_v13 = vld [vmem:[%s1886_s11 + $0x44] ss:$8 sps:$4 sm:$0xff]   ;;  %v1507_v15 = vld [vmem:[%s1886_s11 + $0x40] ss:$8 sps:$4 sm:$0xff]   ;;  %v1509_v17 = vld [vmem:[%s1886_s11 + $0x34] ss:$8 sps:$4 sm:$0xff]  }
  0x6f   : > { %v1505_v14 = vld [vmem:[%s1886_s11 + $0x144] ss:$8 sps:$4 sm:$0xff]   ;;  %v1508_v16 = vld [vmem:[%s1886_s11 + $0x140] ss:$8 sps:$4 sm:$0xff]   ;;  %v1511_v18 = vld [vmem:[%s1886_s11 + $0x134] ss:$8 sps:$4 sm:$0xff]  }
  0x70   : > { %984 = vmatpush1.bf16.msra.mxu0 %v1495_v7  ;;  %v1513_v19 = vld [vmem:[%s1886_s11 + $0x30] ss:$8 sps:$4 sm:$0xff]   ;;  %v1515_v21 = vld [vmem:[%s1886_s11 + $0x24] ss:$8 sps:$4 sm:$0xff]   ;;  %v1519_v23 = vld [vmem:[%s1886_s11 + $0x20] ss:$8 sps:$4 sm:$0xff]  }
  0x71   : > { %1025 = vmatpush1.bf16.msra.mxu1 %v1496_v8  ;;  %985 = vmatprep.subr.bf16.mxu0 %v1497_v9  ;;  %v1514_v20 = vld [vmem:[%s1886_s11 + $0x130] ss:$8 sps:$4 sm:$0xff]   ;;  %v1517_v22 = vld [vmem:[%s1886_s11 + $0x124] ss:$8 sps:$4 sm:$0xff]   ;;  %v1520_v24 = vld [vmem:[%s1886_s11 + $0x120] ss:$8 sps:$4 sm:$0xff]  }
  0x72   : > { %1026 = vmatprep.subr.bf16.mxu1 %v1499_v10  ;;  %v1521_v25 = vld [vmem:[%s1886_s11 + $0x14] ss:$8 sps:$4 sm:$0xff]   ;;  %v1525_v27 = vld [vmem:[%s1886_s11 + $0x10] ss:$8 sps:$4 sm:$0xff]   ;;  %v1527_v29 = vld [vmem:[%s1886_s11 + $0x4] ss:$8 sps:$4 sm:$0xff]  }
  0x73   : > { %v1523_v26 = vld [vmem:[%s1886_s11 + $0x114] ss:$8 sps:$4 sm:$0xff]   ;;  %v1526_v28 = vld [vmem:[%s1886_s11 + $0x110] ss:$8 sps:$4 sm:$0xff]   ;;  %v1529_v30 = vld [vmem:[%s1886_s11 + $0x104] ss:$8 sps:$4 sm:$0xff]  }
  0x74   : > { %986 = vmatpush1.bf16.msra.mxu0 %v1501_v11  ;;  %v1531_v31 = vld [vmem:[%s1886_s11] ss:$8 sps:$4 sm:$0xff]   ;;  %v1533_v33 = vld [vmem:[%s1886_s11 + $0xf4] ss:$8 sps:$4 sm:$0xff]   ;;  %v1537_v35 = vld [vmem:[%s1886_s11 + $0xf0] ss:$8 sps:$4 sm:$0xff]  }
  0x75   : > { %1027 = vmatpush1.bf16.msra.mxu1 %v1502_v12  ;;  %987 = vmatprep.subr.bf16.mxu0 %v1503_v13  ;;  %v1532_v32 = vld [vmem:[%s1886_s11 + $0x100] ss:$8 sps:$4 sm:$0xff]   ;;  %v1535_v34 = vld [vmem:[%s1886_s11 + $0x1f4] ss:$8 sps:$4 sm:$0xff]   ;;  %v1538_v36 = vld [vmem:[%s1886_s11 + $0x1f0] ss:$8 sps:$4 sm:$0xff]  }
  0x76   : > { %1028 = vmatprep.subr.bf16.mxu1 %v1505_v14  ;;  %v1539_v37 = vld [vmem:[%s1886_s11 + $0xe4] ss:$8 sps:$4 sm:$0xff]   ;;  %v1642_v39 = vmov 1966171168   ;;  %v1543_v42 = vld [vmem:[%s1886_s11 + $0xe0] ss:$8 sps:$4 sm:$0xff]  }
  0x77   : > { %v1541_v38 = vld [vmem:[%s1886_s11 + $0x1e4] ss:$8 sps:$4 sm:$0xff]   ;;  %v642_v40 = vunpack.c.l.s4 %v1642_v39  ;;  %v1544_v43 = vld [vmem:[%s1886_s11 + $0x1e0] ss:$8 sps:$4 sm:$0xff]   ;;  %v1545_v44 = vld [vmem:[%s1886_s11 + $0xd4] ss:$8 sps:$4 sm:$0xff]  }
  0x78   : > { %988 = vmatpush1.bf16.msra.mxu0 %v1507_v15  ;;  %v1547_v45 = vld [vmem:[%s1886_s11 + $0x1d4] ss:$8 sps:$4 sm:$0xff]   ;;  %v1931_v47 = vshrl.u32 %v644_v41, 7  ;;  %v1549_v48 = vld [vmem:[%s1886_s11 + $0xd0] ss:$8 sps:$4 sm:$0xff]   ;;  %p1420_p13 = scmp.ne.s32.totalorder %s1623_s17, 15 }
  0x79   : > { %1029 = vmatpush1.bf16.msra.mxu1 %v1508_v16  ;;  %989 = vmatprep.subr.bf16.mxu0 %v1509_v17  ;;  %v643_v46 = vunpack.c.0.s8 %v642_v40  ;;  %v1550_v49 = vld [vmem:[%s1886_s11 + $0x1d0] ss:$8 sps:$4 sm:$0xff]   ;;  %v1551_v50 = vld [vmem:[%s1886_s11 + $0xc4] ss:$8 sps:$4 sm:$0xff]   ;;  %v1555_v54 = vld [vmem:[%s1886_s11 + $0xc0] ss:$8 sps:$4 sm:$0xff]  }
  0x7a   : > { %1030 = vmatprep.subr.bf16.mxu1 %v1511_v18  ;;  %v1553_v51 = vld [vmem:[%s1886_s11 + $0x1c4] ss:$8 sps:$4 sm:$0xff]   ;;  %v1355_v53 = vld.sshfl [vmem:[%s542_s29] sm:$0x33 pattern:$0x75316420] }
  0x7b   : > { %v1938_v52 = vsub.s32 %v643_v46, %v1931_v47  ;;  %v1556_v55 = vld [vmem:[%s1886_s11 + $0x1c0] ss:$8 sps:$4 sm:$0xff]   ;;  %v640_v56 = vcombine.high %v1355_v53, %v1355_v53  ;;  %v1557_v57 = vld [vmem:[%s1886_s11 + $0xb4] ss:$8 sps:$4 sm:$0xff]   ;;  %v1561_v60 = vld [vmem:[%s1886_s11 + $0xb0] ss:$8 sps:$4 sm:$0xff]  }
  0x7c   : > { %990 = vmatpush1.bf16.msra.mxu0 %v1513_v19  ;;  %v1559_v58 = vld [vmem:[%s1886_s11 + $0x1b4] ss:$8 sps:$4 sm:$0xff]   ;;  %v1562_v61 = vld [vmem:[%s1886_s11 + $0x1b0] ss:$8 sps:$4 sm:$0xff]   ;;  %v1563_v63 = vld [vmem:[%s1886_s11 + $0xa4] ss:$8 sps:$4 sm:$0xff]  }
  0x7d   : > { %1031 = vmatpush1.bf16.msra.mxu1 %v1514_v20  ;;  %991 = vmatprep.subr.bf16.mxu0 %v1515_v21  ;;  %v654_v59 = vrot.slane %v640_v56, %v1938_v52  ;;  %v1565_v0 = vld [vmem:[%s1886_s11 + $0x1a4] ss:$8 sps:$4 sm:$0xff]   ;;  %v1567_v1 = vld [vmem:[%s1886_s11 + $0xa0] ss:$8 sps:$4 sm:$0xff]   ;;  %v1569_v3 = vld [vmem:[%s1886_s11 + $0x94] ss:$8 sps:$4 sm:$0xff]   ;;  %v647_v9 = vrot.slane %v1355_v53, %v1938_v52 }
  0x7e   : > { %1032 = vmatprep.subr.bf16.mxu1 %v1517_v22  ;;  %v1568_v2 = vld [vmem:[%s1886_s11 + $0x1a0] ss:$8 sps:$4 sm:$0xff]   ;;  %v1571_v4 = vld [vmem:[%s1886_s11 + $0x194] ss:$8 sps:$4 sm:$0xff]   ;;  %v1573_v5 = vld [vmem:[%s1886_s11 + $0x90] ss:$8 sps:$4 sm:$0xff]  }
  0x7f   : > { %v656_v62 = vcombine.high %v654_v59, %v654_v59  ;;  %1013 = vmatprep.mubr.bf16.mxu0 %v654_v59  ;;  %v1574_v6 = vld [vmem:[%s1886_s11 + $0x190] ss:$8 sps:$4 sm:$0xff]   ;;  %v1575_v7 = vld [vmem:[%s1886_s11 + $0x84] ss:$8 sps:$4 sm:$0xff]   ;;  %v1579_v10 = vld [vmem:[%s1886_s11 + $0x80] ss:$8 sps:$4 sm:$0xff]   ;;  %v655_v12 = vcombine.high %v647_v9, %v647_v9 }
  0x80   : > { %992 = vmatpush1.bf16.msra.mxu0 %v1519_v23  ;;  %v1577_v8 = vld [vmem:[%s1886_s11 + $0x184] ss:$8 sps:$4 sm:$0xff]   ;;  %v1580_v11 = vld [vmem:[%s1886_s11 + $0x180] ss:$8 sps:$4 sm:$0xff]   ;;  %v1643_v13 = vmov 1983009808  }
  0x81   : > { %1033 = vmatpush1.bf16.msra.mxu1 %v1520_v24  ;;  %993 = vmatprep.subr.bf16.mxu0 %v1521_v25  ;;  %v1067_v14 = vunpack.c.l.s4 %v1643_v13 }
  0x82   : > { %1034 = vmatprep.subr.bf16.mxu1 %v1523_v26  ;;  %1054 = vmatprep.mubr.bf16.mxu1 %v656_v62  ;;  %v566_v26 = vld [vmem:[#allocation2] sm:$0xf] }
  0x83   : > { %v1068_v15 = vunpack.c.0.s8 %v1067_v14 }
  0x84   : > { %994 = vmatpush1.bf16.msra.mxu0 %v1525_v27 }
  0x85   : > { %1035 = vmatpush1.bf16.msra.mxu1 %v1526_v28  ;;  %995 = vmatprep.subr.bf16.mxu0 %v1527_v29  ;;  %v1966_v22 = vsub.s32 %v1068_v15, %v1931_v47 }
  0x86   : > { %1036 = vmatprep.subr.bf16.mxu1 %v1529_v30 }
  0x88   : > { %996 = vmatpush1.bf16.msra.mxu0 %v1531_v31 }
  0x89   : > { %1037 = vmatpush1.bf16.msra.mxu1 %v1532_v32  ;;  %997 = vmatprep.subr.bf16.mxu0 %v1533_v33 }
  0x8a   : > { %1038 = vmatprep.subr.bf16.mxu1 %v1535_v34 }
  0x8c   : > { %998 = vmatpush2.bf16.msra.mxu0 %v1537_v35 }
  0x8d   : > { %1039 = vmatpush2.bf16.msra.mxu1 %v1538_v36  ;;  %999 = vmatprep.subr.bf16.mxu0 %v1539_v37 }
  0x8e   : > { %1040 = vmatprep.subr.bf16.mxu1 %v1541_v38 }
  0x90   : > { %1000 = vmatpush2.bf16.msra.mxu0 %v1543_v42 }
  0x91   : > { %1041 = vmatpush2.bf16.msra.mxu1 %v1544_v43  ;;  %1001 = vmatprep.subr.bf16.mxu0 %v1545_v44 }
  0x92   : > { %1042 = vmatprep.subr.bf16.mxu1 %v1547_v45 }
  0x94   : > { %1002 = vmatpush2.bf16.msra.mxu0 %v1549_v48 }
  0x95   : > { %1043 = vmatpush2.bf16.msra.mxu1 %v1550_v49  ;;  %1003 = vmatprep.subr.bf16.mxu0 %v1551_v50 }
  0x96   : > { %1044 = vmatprep.subr.bf16.mxu1 %v1553_v51 }
  0x98   : > { %1004 = vmatpush2.bf16.msra.mxu0 %v1555_v54 }
  0x99   : > { %1045 = vmatpush2.bf16.msra.mxu1 %v1556_v55  ;;  %1005 = vmatprep.subr.bf16.mxu0 %v1557_v57 }
  0x9a   : > { %1046 = vmatprep.subr.bf16.mxu1 %v1559_v58 }
  0x9c   : > { %1006 = vmatpush2.bf16.msra.mxu0 %v1561_v60 }
  0x9d   : > { %1047 = vmatpush2.bf16.msra.mxu1 %v1562_v61  ;;  %1007 = vmatprep.subr.bf16.mxu0 %v1563_v63 }
  0x9e   : > { %1048 = vmatprep.subr.bf16.mxu1 %v1565_v0 }
  0xa0   : > { %1008 = vmatpush2.bf16.msra.mxu0 %v1567_v1 }
  0xa1   : > { %1049 = vmatpush2.bf16.msra.mxu1 %v1568_v2  ;;  %1009 = vmatprep.subr.bf16.mxu0 %v1569_v3 }
  0xa2   : > { %1050 = vmatprep.subr.bf16.mxu1 %v1571_v4 }
  0xa4   : > { %1010 = vmatpush2.bf16.msra.mxu0 %v1573_v5 }
  0xa5   : > { %1051 = vmatpush2.bf16.msra.mxu1 %v1574_v6  ;;  %1011 = vmatprep.subr.bf16.mxu0 %v1575_v7 }
  0xa6   : > { %1052 = vmatprep.subr.bf16.mxu1 %v1577_v8 }
  0xa8   : > { %1012 = vmatpush2.bf16.msra.mxu0 %v1579_v10 }
  0xa9   : > { %1053 = vmatpush2.bf16.msra.mxu1 %v1580_v11 }
  0xab   : > { %1014 = vmatmul.mubr.bf16.vlgmr.msra.gmra.mxu0 %v647_v9 }
  0xac   : > { %1055 = vmatmul.mubr.bf16.vlgmr.msra.gmra.mxu1 %v655_v12 }
 0x16b   : > { %v1015_v16 = vpop.f32.mrf.mxu0 }
 0x16c   : > { %v1056_v17 = vpop.f32.mrf.mxu1 }
 0x16d   : > { %v1017_v18 = vpop.f32.mrf.mxu0  ;;  %v1057_v20 = vadd.f32 %v1056_v17, %v1015_v16 }
 0x16e   : > { %v1058_v19 = vpop.f32.mrf.mxu1 }
 0x16f   : > { %v1059_v21 = vadd.f32 %v1058_v19, %v1017_v18  ;;  %v1019_v23 = vpop.f32.mrf.mxu0 }
 0x170   : > { %v1060_v24 = vpop.f32.mrf.mxu1 }
 0x171   : > { %v1065_v25 = vcombine.low %v1057_v20, %v1059_v21  ;;  %v1020_v27 = vpop.f32.mrf.mxu0 }
 0x172   : > { %v1061_v28 = vpop.f32.mrf.mxu1 }
 0x173   : > { %v1072_v29 = vrot.slane %v1065_v25, %v1966_v22  ;;  %1079 = sbr.rel (%p1420_p13) target bundleno = 467 (0x1d3), region = 82 }
 0x175   : > { %v1074_v30 = vadd.f32 %v1072_v29, %v566_v26 }
 0x177   : > { %1075 = vst [vmem:[#allocation2] sm:$0xf] %v1074_v30 }
 0x178   : > { %vm1092_vm0 = vcmask 1041408   ;;  %v1170_v12 = vsub.s32 0, %v1931_v47  ;;  %v1174_v13 = vsub.s32 1, %v1931_v47  ;;  %v1166_v14 = vld [vmem:[%s549_s15] sm:$0x3] }
 0x179   : > { %v1186_v15 = vld [vmem:[%s554_s18] sm:$0x3] }
 0x17a   : > { %v1171_v16 = vrot.slane %v1166_v14, %v1170_v12  ;;  %v1175_v17 = vrot.slane %v1166_v14, %v1174_v13  ;;  %v1191_v18 = vrot.slane %v1186_v15, %v1170_v12  ;;  %v1195_v19 = vrot.slane %v1186_v15, %v1174_v13 }
 0x17c   : > { %v1176_v21 = vcombine.low %v1171_v16, %v1175_v17  ;;  %v1196_v47 = vcombine.low %v1191_v18, %v1195_v19 }
 0x17e   : > { %v1080_v31 = vld [vmem:[#allocation2] sm:$0xf]  ;;  %v1183_v26 = vrot.slane %v1176_v21, %v1966_v22  ;;  %v1203_v28 = vrot.slane %v1196_v47, %v1966_v22 }
 0x17f   : > { %v1088_v32 = vrot.slane %v1080_v31, %v1966_v22 }
 0x181   : > { %v1089_v33 = vcombine.high %v1088_v32, %v1088_v32  ;;  %v1093_v34 = vsel %vm1092_vm0, %v1088_v32, 0.0 }
 0x182   : > { %v1094_v35 = vrot.slane %v1093_v34, 4 }
 0x183   : > { %v1100_v36 = vsel %vm1092_vm0, %v1089_v33, 0.0 }
 0x184   : > { %v1095_v37 = vadd.f32 %v1094_v35, %v1093_v34  ;;  %v1101_v38 = vrot.slane %v1100_v36, 4 }
 0x186   : > { %v1096_v39 = vrot.slane %v1095_v37, 2  ;;  %v1102_v40 = vadd.f32 %v1101_v38, %v1100_v36 }
 0x188   : > { %v1097_v41 = vadd.f32 %v1096_v39, %v1095_v37  ;;  %v1103_v42 = vrot.slane %v1102_v40, 2 }
 0x18a   : > { %v1098_v43 = vrot.slane %v1097_v41, 1  ;;  %v1104_v44 = vadd.f32 %v1103_v42, %v1102_v40 }
 0x18c   : > { %v1099_v45 = vadd.f32 %v1098_v43, %v1097_v41  ;;  %v1105_v46 = vrot.slane %v1104_v44, 1 }
 0x18e   : > { %v1106_v48 = vadd.f32 %v1105_v46, %v1104_v44  ;;  %v1108_v49 = vmul.f32 0.5, %v1099_v45 }
 0x190   : > { %v1109_v50 = vmul.f32 0.5, %v1106_v48 }
 0x192   : > { %v1112_v51 = vcombine.low %v1108_v49, %v1109_v50 }
 0x194   : > { %v1119_v53 = vrot.slane %v1112_v51, %v1966_v22 }
 0x196   : > { %v1121_v54 = vsub.f32 %v1080_v31, %v1119_v53 }
 0x198   : > { %v1122_v55 = vmul.f32 %v1121_v54, %v1121_v54 }
 0x19a   : > { %v1130_v56 = vrot.slane %v1122_v55, %v1966_v22 }
 0x19c   : > { %v1131_v57 = vcombine.high %v1130_v56, %v1130_v56  ;;  %v1134_v58 = vsel %vm1092_vm0, %v1130_v56, 0.0 }
 0x19d   : > { %v1135_v59 = vrot.slane %v1134_v58, 4 }
 0x19e   : > { %v1141_v60 = vsel %vm1092_vm0, %v1131_v57, 0.0 }
 0x19f   : > { %v1136_v61 = vadd.f32 %v1135_v59, %v1134_v58  ;;  %v1142_v62 = vrot.slane %v1141_v60, 4 }
 0x1a1   : > { %v1137_v63 = vrot.slane %v1136_v61, 2  ;;  %v1143_v0 = vadd.f32 %v1142_v62, %v1141_v60 }
 0x1a3   : > { %v1138_v1 = vadd.f32 %v1137_v63, %v1136_v61  ;;  %v1144_v2 = vrot.slane %v1143_v0, 2 }
 0x1a5   : > { %v1139_v3 = vrot.slane %v1138_v1, 1  ;;  %v1145_v4 = vadd.f32 %v1144_v2, %v1143_v0 }
 0x1a7   : > { %v1140_v5 = vadd.f32 %v1139_v3, %v1138_v1  ;;  %v1146_v6 = vrot.slane %v1145_v4, 1 }
 0x1a9   : > { %v1147_v7 = vadd.f32 %v1146_v6, %v1145_v4  ;;  %v1148_v8 = vmul.f32 0.5, %v1140_v5 }
 0x1ab   : > { %v1149_v9 = vmul.f32 0.5, %v1147_v7  ;;  %v1150_v10 = vadd.f32 1e-05, %v1148_v8 }
 0x1ad   : > { %v1151_v11 = vadd.f32 1e-05, %v1149_v9  ;;  %1581 = vrsqrt.f32 %v1150_v10 }
 0x1af   : > { %1583 = vrsqrt.f32 %v1151_v11 }
 0x1ba   : > { %v1582_v20 = vpop.eup %1581 }
 0x1bc   : > { %v1584_v23 = vpop.eup %1583 }
 0x1bd   : > { %v1156_v24 = vcombine.low %v1582_v20, %v1584_v23 }
 0x1bf   : > { %v1163_v25 = vrot.slane %v1156_v24, %v1966_v22 }
 0x1c1   : > { %v1165_v27 = vmul.f32 %v1163_v25, %v1121_v54 }
 0x1c3   : > { %v1185_v29 = vmul.f32 %v1183_v26, %v1165_v27 }
 0x1c5   : > { %v1205_v30 = vadd.f32 %v1203_v28, %v1185_v29 }
 0x1c7   : > { %vm1206_vm1 = vcmp.ge.f32.partialorder %v1205_v30, 0.0  ;;  %v1207_v31 = vmul.f32 0.3, %v1205_v30 }
 0x1c9   : > { %v1208_v32 = vsel %vm1206_vm1, %v1205_v30, %v1207_v31 }
 0x1ca   : > { %v1216_v33 = vrot.slane %v1208_v32, %v1966_v22 }
 0x1cc   : > { %v1217_v34 = vcombine.high %v1216_v33, %v1216_v33 }
 0x1ce   : > { %v1421_v35 = vpack.c.bf16 %v1217_v34, %v1216_v33 }
 0x1d0   : > { %v1231_v36 = vrot.slane %v1421_v35, %v1938_v52 }
 0x1d2   : > { %1422 = vst.sshfl [vmem:[%s559_s10] sm:$0x5 pattern:$0x73625140] %v1231_v36 }
 0x1d3 PF: > { %s14_s21 = sadd.s32 1, %s1639_s21   ;;  %s2025_s15 = smov %s1619_s16 }
 0x1d4   : > { %p11_p0 = scmp.ge.s32.totalorder %s14_s21, 66   ;;  %s2026_s16 = smov %s1720_s28 }
 0x1d5   : > { %s2027_s17 = smov %s1631_s19  ;;  %s2028_s18 = smov %s1635_s20 }
 0x1d6   : > { %s2029_s19 = smov %s2032_s22  ;;  %s2030_s20 = smov %s2036_s23 }
 0x1d7   :  { %13 = sbr.rel (!%p11_p0) target bundleno = 4 (0x4), region = 126 }

// kernel: discriminator_forward.9
= control target key start
LH: loop header
LB: loop body
LE: loop exit
PB: predicated region body
PF: predicated region fallthrough
CT: control target
= control target key end

     0   :  { %v24_v0 = vlaneseq  ;;  %v220_v2 = vmov 1983009808   ;;  %vm186_vm0 = vcmask 1041408   ;;  %vm212_vm1 = vcmask 1024   ;;  %s261_s1 = inlined_call_operand.vmem [shape: bf16[1,1024], index: 1, kind: input, shape index: {}]   ;;  %s262_s2 = inlined_call_operand.<no memory space> [shape: f32[1,1], index: 2, kind: input, shape index: {}]   ;;  %s263_s0 = inlined_call_operand.vmem [shape: bf16[2,1024], index: 0, kind: input, shape index: {}]   ;;  %s264_s3 = inlined_call_operand.vmem [shape: f32[2,1], index: 3, kind: output, shape index: {}]  }
   0x1   :  { %v19_v1 = vld [vmem:[%s261_s1] sm:$0xff]  ;;  %v107_v3 = vunpack.c.l.s4 %v220_v2  ;;  %v8_v4 = vstv %s262_s2 }
   0x2   :  { %9 = vst [vmem:[#allocation2] sm:$0x1] %v8_v4  ;;  %v20_v5 = vunpack.c.l.bf16 %v19_v1  ;;  %v25_v6 = vshrl.u32 %v24_v0, 7  ;;  %v21_v8 = vunpack.c.h.bf16 %v19_v1  ;;  %v16_v26 = vld [vmem:[%s263_s0] sm:$0xff] }
   0x3   :  { %v108_v7 = vunpack.c.0.s8 %v107_v3  ;;  %v17_v35 = vunpack.c.l.bf16 %v16_v26  ;;  %v18_v38 = vunpack.c.h.bf16 %v16_v26 }
   0x4   :  { %v26_v9 = vsub.s32 0, %v25_v6  ;;  %v30_v10 = vsub.s32 2, %v25_v6  ;;  %v34_v11 = vsub.s32 4, %v25_v6  ;;  %v38_v12 = vsub.s32 6, %v25_v6 }
   0x5   :  { %v111_v13 = vsub.s32 %v108_v7, %v25_v6 }
   0x6   :  { %v27_v14 = vrot.slane %v20_v5, %v26_v9  ;;  %v31_v15 = vrot.slane %v20_v5, %v30_v10  ;;  %v35_v16 = vrot.slane %v20_v5, %v34_v11  ;;  %v39_v17 = vrot.slane %v20_v5, %v38_v12 }
   0x7   :  { %v43_v18 = vrot.slane %v21_v8, %v26_v9  ;;  %v47_v19 = vrot.slane %v21_v8, %v30_v10  ;;  %v51_v20 = vrot.slane %v21_v8, %v34_v11  ;;  %v55_v21 = vrot.slane %v21_v8, %v38_v12 }
   0x8   :  { %v67_v22 = vrot.slane %v27_v14, %v26_v9  ;;  %v71_v23 = vrot.slane %v31_v15, %v26_v9  ;;  %v75_v24 = vrot.slane %v35_v16, %v26_v9  ;;  %v79_v25 = vrot.slane %v39_v17, %v26_v9 }
   0x9   :  { %v83_v27 = vrot.slane %v43_v18, %v26_v9  ;;  %v87_v28 = vrot.slane %v47_v19, %v26_v9  ;;  %v91_v29 = vrot.slane %v51_v20, %v26_v9  ;;  %v95_v30 = vrot.slane %v55_v21, %v26_v9  ;;  %v218_v6 = vld [vmem:[#allocation2] ss:$0 sm:$0xff] }
   0xa   :  { %v104_v31 = vcombine.low %v67_v22, %v71_v23  ;;  %v105_v32 = vcombine.low %v75_v24, %v79_v25 }
   0xb   :  { %v121_v33 = vcombine.low %v83_v27, %v87_v28  ;;  %v122_v34 = vcombine.low %v91_v29, %v95_v30 }
   0xc   :  { %v112_v36 = vrot.slane %v104_v31, %v111_v13  ;;  %v119_v37 = vrot.slane %v105_v32, %v111_v13 }
   0xd   :  { %v129_v39 = vrot.slane %v121_v33, %v111_v13  ;;  %v136_v40 = vrot.slane %v122_v34, %v111_v13 }
   0xe   :  { %v120_v41 = vcombine.low %v112_v36, %v119_v37 }
   0xf   :  { %v137_v42 = vcombine.low %v129_v39, %v136_v40 }
  0x10   :  { %v140_v43 = vmul.f32 %v120_v41, %v17_v35 }
  0x11   :  { %v141_v44 = vmul.f32 %v137_v42, %v18_v38 }
  0x12   :  { %v144_v45 = vcombine.high %v140_v43, %v140_v43  ;;  %v151_v46 = vrot.slane %v140_v43, %v111_v13 }
  0x13   :  { %v161_v47 = vcombine.high %v141_v44, %v141_v44  ;;  %v168_v50 = vrot.slane %v141_v44, %v111_v13 }
  0x14   :  { %v158_v48 = vrot.slane %v144_v45, %v111_v13  ;;  %v159_v49 = vcombine.high %v151_v46, %v151_v46  ;;  %v187_v51 = vsel %vm186_vm0, %v151_v46, 0.0 }
  0x15   :  { %v175_v56 = vrot.slane %v161_v47, %v111_v13  ;;  %v176_v57 = vcombine.high %v168_v50, %v168_v50  ;;  %v194_v60 = vsel %vm186_vm0, %v168_v50, 0.0 }
  0x16   :  { %v160_v52 = vcombine.high %v158_v48, %v158_v48  ;;  %v188_v53 = vsel %vm186_vm0, %v159_v49, 0.0  ;;  %v190_v54 = vsel %vm186_vm0, %v158_v48, 0.0 }
  0x17   :  { %v189_v55 = vadd.f32 %v188_v53, %v187_v51  ;;  %v177_v62 = vcombine.high %v175_v56, %v175_v56  ;;  %v196_v63 = vsel %vm186_vm0, %v176_v57, 0.0  ;;  %v198_v1 = vsel %vm186_vm0, %v175_v56, 0.0 }
  0x18   :  { %v192_v58 = vsel %vm186_vm0, %v160_v52, 0.0 }
  0x19   :  { %v191_v59 = vadd.f32 %v190_v54, %v189_v55  ;;  %v200_v3 = vsel %vm186_vm0, %v177_v62, 0.0 }
  0x1b   :  { %v193_v61 = vadd.f32 %v192_v58, %v191_v59 }
  0x1d   :  { %v195_v0 = vadd.f32 %v194_v60, %v193_v61 }
  0x1f   :  { %v197_v2 = vadd.f32 %v196_v63, %v195_v0 }
  0x21   :  { %v199_v4 = vadd.f32 %v198_v1, %v197_v2 }
  0x23   :  { %v201_v5 = vadd.f32 %v200_v3, %v199_v4 }
  0x25   :  { %202 = vadd.xlane.f32.xlu0 %v201_v5 }
  0xae   :  { %v203_v7 = vpop.xlane.xlu0 %202 }
  0xaf   :  { %v211_v8 = vadd.f32 %v218_v6, %v203_v7 }
  0xb1   :  { %213 = vst.msk [vmem:[%s264_s3] sm:$0x3] %vm212_vm1, %v211_v8 }

</bundles_post_ra>
